<compile_context>
chip_gen: v7x
topology: tpu7x:2x2x1
jax: 0.10.0
libtpu: 0.0.40
codegen_flags: <defaults>
</compile_context>

<pallas_src>
import functools

import jax
import jax.numpy as jnp
from jax.experimental import pallas as pl
from jax.experimental.pallas import tpu as pltpu


# ----------------------------------------------------------------------------
# Fused kernel: B_blk batch elements per grid step, everything resident in VMEM.
# ----------------------------------------------------------------------------
def _basic_block_kernel(x_ref, mask_ref, w_ref, b_ref, out_ref, slab_ref, *,
                        Wp, CinP, C1P, C2P):
    # x_ref   : (CinP, Ltot)  bf16  zero-padded images, flattened spatial in lanes
    # mask_ref: (1, Ltot)     f32   1.0 at valid pixels, 0.0 at pad/tail lanes
    # w_ref   : (R, Kmax)     bf16  packed, BN-scale-folded weights
    # b_ref   : (R, 1)        f32   packed folded BN biases
    # out_ref : (C2P, Ltot)   f32
    # slab_ref: (9*Cmax, Ltot) bf16 persistent im2col scratch (reused 4x)
    Ltot = x_ref.shape[-1]
    mask = mask_ref[...]                                   # (1, Ltot)

    # Static row offsets into the packed parameter slabs.
    r1, r2 = 0, C1P
    r3, r4 = 2 * C1P, 2 * C1P + C2P
    rs = 2 * C1P + 2 * C2P

    def conv3x3(z, ci, row, rows):
        # z: (ci, Ltot) f32/bf16 activation whose pad/tail lanes are zero.
        # Build the 9-tap im2col slab with lane rolls (XLU) into persistent
        # scratch stripes, then one MXU matmul with f32 accumulation.
        for t in range(9):
            kh, kw = divmod(t, 3)
            d = (kh - 1) * Wp + (kw - 1)                   # static lane shift
            tap = z if d == 0 else pltpu.roll(z, shift=(-d) % Ltot, axis=1)
            slab_ref[t * ci:(t + 1) * ci, :] = tap.astype(slab_ref.dtype)
        k = 9 * ci
        return jnp.dot(w_ref[row:row + rows, :k], slab_ref[:k, :],
                       preferred_element_type=jnp.float32)

    x = x_ref[...]                                         # (CinP, Ltot) bf16

    # Both 1x1 shortcut convs in ONE merged matmul against resident x.
    sc = (jnp.dot(w_ref[rs:rs + C1P + C2P, :CinP], x,
                  preferred_element_type=jnp.float32)
          + b_ref[rs:rs + C1P + C2P, :])
    sc1, sc2 = sc[:C1P, :], sc[C1P:, :]

    # Hoisted lane-broadcast masks (one broadcast per shape, reused twice each).
    m1 = jnp.broadcast_to(mask, (C1P, Ltot))
    m2 = jnp.broadcast_to(mask, (C2P, Ltot))

    # y = relu(bn1(conv1(x)))          (*mask restores the zero pad ring)
    y = jnp.maximum(conv3x3(x.astype(jnp.float32), CinP, r1, C1P)
                    + b_ref[r1:r1 + C1P, :], 0.0) * m1
    # y = relu(bn2(conv2(y))) + shortcut1(x)
    y = (jnp.maximum(conv3x3(y, C1P, r2, C1P) + b_ref[r2:r2 + C1P, :], 0.0)
         + sc1) * m1
    # y = relu(bn3(conv3(y)))
    y = jnp.maximum(conv3x3(y, C1P, r3, C2P) + b_ref[r3:r3 + C2P, :], 0.0) * m2
    # y = relu(bn4(conv4(y))) + shortcut2(x)   (masked so the padded lane
    # layout stays valid if chained into another lane-layout block)
    y = (jnp.maximum(conv3x3(y, C2P, r4, C2P) + b_ref[r4:r4 + C2P, :], 0.0)
         + sc2) * m2
    out_ref[...] = y.astype(out_ref.dtype)


# ----------------------------------------------------------------------------
# Parameter preparation: fold inference BN into weights/bias, pack into slabs.
# ----------------------------------------------------------------------------
def _fold_bn(gamma, beta, mean, var, eps=1e-5):
    scale = gamma / jnp.sqrt(var + eps)
    return scale, beta - mean * scale


def _rup(x, m):
    return (x + m - 1) // m * m


def _fold3x3(w_hwio, bn, ci_p, co_p, kmax):
    s, b = _fold_bn(*bn)
    K, _, ci, co = w_hwio.shape
    w = w_hwio.astype(jnp.float32) * s[None, None, None, :]
    w = jnp.pad(w, ((0, 0), (0, 0), (0, ci_p - ci), (0, co_p - co)))
    w2d = jnp.transpose(w, (3, 0, 1, 2)).reshape(co_p, K * K * ci_p)
    w2d = jnp.pad(w2d, ((0, 0), (0, kmax - K * K * ci_p)))
    bias = jnp.pad(b.astype(jnp.float32), (0, co_p - co)).reshape(co_p, 1)
    return w2d, bias


def _fold1x1(w_hwio, bn, ci_p, co_p, kmax):
    s, b = _fold_bn(*bn)
    ci, co = w_hwio.shape[2], w_hwio.shape[3]
    w = w_hwio[0, 0].astype(jnp.float32) * s[None, :]
    w = jnp.pad(w, ((0, ci_p - ci), (0, co_p - co)))
    w2d = jnp.pad(jnp.transpose(w, (1, 0)), ((0, 0), (0, kmax - ci_p)))
    bias = jnp.pad(b.astype(jnp.float32), (0, co_p - co)).reshape(co_p, 1)
    return w2d, bias


# ----------------------------------------------------------------------------
# new_BasicBlock forward (NCHW in/out like PyTorch; layout converted once).
# ----------------------------------------------------------------------------
def new_basic_block_forward(x_nchw, P):
    N, Cin, H, W = x_nchw.shape
    C1 = P["w1"].shape[-1]
    C2 = P["w4"].shape[-1]
    Hp, Wp = H + 2, W + 2
    L = Hp * Wp
    Lp = _rup(L, 128)                       # per-image lane-dense segment
    CinP, C1P, C2P = _rup(Cin, 16), _rup(C1, 16), _rup(C2, 16)  # bf16 packing
    Cmax = max(CinP, C1P, C2P)
    Kmax = 9 * Cmax

    # Roll-wrap safety (3x3, pad=1): every tap read for a valid output pixel
    # stays inside its own image's [0, L) lane segment, so lane rolls over the
    # batched lane axis never mix neighboring images or tail lanes into valid
    # outputs (pad/tail lanes themselves are zeroed by the in-kernel mask).
    assert (H + 1) * Wp + (W + 1) < L <= Lp
    assert (1 * Wp + 1) - (Wp + 1) >= 0
    assert Lp % 128 == 0

    # How many images per grid step: conservative VMEM budget (fits v7x's
    # 64 MiB physical / 32 MiB scoped default with large headroom).
    bytes_per_img = Lp * (2 * CinP * 2        # x window, double-buffered, bf16
                          + 2 * C2P * 4       # out window, double-buffered, f32
                          + 9 * Cmax * 2      # im2col slab (single scratch)
                          + 8 * Cmax * 4)     # headroom for live f32 temporaries
    B_blk = max(1, min(N, (24 << 20) // bytes_per_img))
    while N % B_blk:
        B_blk -= 1
    Ltot = B_blk * Lp

    # Layout conversion (once per block here; once per network when chained):
    # spatial zero-pad + channel pad + flatten spatial into lanes + lane pad,
    # then put the batch inside the lane axis -> (CinP, N*Lp) in bf16.
    xp = jnp.pad(x_nchw.astype(jnp.float32),
                 ((0, 0), (0, CinP - Cin), (1, 1), (1, 1)))
    x_lane = jnp.pad(xp.reshape(N, CinP, L), ((0, 0), (0, 0), (0, Lp - L)))
    x_lane = jnp.transpose(x_lane, (1, 0, 2)).reshape(CinP, N * Lp)
    x_lane = x_lane.astype(jnp.bfloat16)

    # Valid-pixel mask over one padded-flattened image, tiled over B_blk images.
    mh = (jnp.arange(Hp) >= 1) & (jnp.arange(Hp) <= H)
    mw = (jnp.arange(Wp) >= 1) & (jnp.arange(Wp) <= W)
    mask = (mh[:, None] & mw[None, :]).astype(jnp.float32).reshape(1, L)
    mask = jnp.pad(mask, ((0, 0), (0, Lp - L)))
    mask_tile = jnp.tile(mask, (1, B_blk))                  # (1, Ltot)

    # Fold BN into weights once, pack ALL parameters into two buffers.
    w1, b1 = _fold3x3(P["w1"], P["bn1"], CinP, C1P, Kmax)
    w2, b2 = _fold3x3(P["w2"], P["bn2"], C1P, C1P, Kmax)
    w3, b3 = _fold3x3(P["w3"], P["bn3"], C1P, C2P, Kmax)
    w4, b4 = _fold3x3(P["w4"], P["bn4"], C2P, C2P, Kmax)
    ws1, bs1 = _fold1x1(P["ws1"], P["bns1"], CinP, C1P, Kmax)
    ws2, bs2 = _fold1x1(P["ws2"], P["bns2"], CinP, C2P, Kmax)
    w_all = jnp.concatenate([w1, w2, w3, w4, ws1, ws2], axis=0)
    w_all = w_all.astype(jnp.bfloat16)                      # (3*C1P+3*C2P, Kmax)
    b_all = jnp.concatenate([b1, b2, b3, b4, bs1, bs2], axis=0)  # (R, 1) f32

    kernel = functools.partial(_basic_block_kernel, Wp=Wp,
                               CinP=CinP, C1P=C1P, C2P=C2P)
    out_lane = pl.pallas_call(
        kernel,
        out_shape=jax.ShapeDtypeStruct((C2P, N * Lp), jnp.float32),
        grid_spec=pltpu.PrefetchScalarGridSpec(
            num_scalar_prefetch=0,
            grid=(N // B_blk,),
            in_specs=[
                pl.BlockSpec((CinP, Ltot), lambda n: (0, n)),
                pl.BlockSpec(mask_tile.shape, lambda n: (0, 0)),
                pl.BlockSpec(w_all.shape, lambda n: (0, 0)),
                pl.BlockSpec(b_all.shape, lambda n: (0, 0)),
            ],
            out_specs=pl.BlockSpec((C2P, Ltot), lambda n: (0, n)),
            scratch_shapes=[pltpu.VMEM((9 * Cmax, Ltot), jnp.bfloat16)],
        ),
        compiler_params=pltpu.CompilerParams(
            dimension_semantics=("parallel",)),
    )(x_lane, mask_tile, w_all, b_all)

    # Layout conversion back to NCHW (only needed at the network boundary).
    out = out_lane.reshape(C2P, N, Lp).transpose(1, 0, 2)[:, :C2, :L]
    out = out.reshape(N, C2, Hp, Wp)
    return out[:, :, 1:H + 1, 1:W + 1]


# ----------------------------------------------------------------------------
# Pure-JAX reference (lax.conv, f32) for the correctness check.
# ----------------------------------------------------------------------------
def _ref_conv_bn(x, w, bn, relu):
    s, b = _fold_bn(*bn)
    y = jax.lax.conv_general_dilated(
        x, w, (1, 1), "SAME", dimension_numbers=("NCHW", "HWIO", "NCHW"))
    y = y * s[None, :, None, None] + b[None, :, None, None]
    if relu:
        y = jnp.maximum(y, 0.0)
    return y


def ref_forward(x, P):
    y = _ref_conv_bn(x, P["w1"], P["bn1"], True)
    y = _ref_conv_bn(y, P["w2"], P["bn2"], True)
    y = y + _ref_conv_bn(x, P["ws1"], P["bns1"], False)
    y = _ref_conv_bn(y, P["w3"], P["bn3"], True)
    y = _ref_conv_bn(y, P["w4"], P["bn4"], True)
    y = y + _ref_conv_bn(x, P["ws2"], P["bns2"], False)
    return y


# ----------------------------------------------------------------------------
# Deterministic synthetic parameters (HWIO conv weights, BN running stats).
# ----------------------------------------------------------------------------
def make_params(key, cin, c1, c2):
    ks = jax.random.split(key, 12)

    def conv_w(k, kh, ci, co):
        return 0.1 * jax.random.normal(k, (kh, kh, ci, co), jnp.float32)

    def bn_p(k, c):
        k1, k2, k3, k4 = jax.random.split(k, 4)
        gamma = 1.0 + 0.1 * jax.random.normal(k1, (c,), jnp.float32)
        beta = 0.1 * jax.random.normal(k2, (c,), jnp.float32)
        mean = 0.1 * jax.random.normal(k3, (c,), jnp.float32)
        var = jax.random.uniform(k4, (c,), jnp.float32, 0.5, 1.5)
        return (gamma, beta, mean, var)

    return {
        "w1": conv_w(ks[0], 3, cin, c1), "bn1": bn_p(ks[1], c1),
        "w2": conv_w(ks[2], 3, c1, c1),  "bn2": bn_p(ks[3], c1),
        "ws1": conv_w(ks[4], 1, cin, c1), "bns1": bn_p(ks[5], c1),
        "w3": conv_w(ks[6], 3, c1, c2),  "bn3": bn_p(ks[7], c2),
        "w4": conv_w(ks[8], 3, c2, c2),  "bn4": bn_p(ks[9], c2),
        "ws2": conv_w(ks[10], 1, cin, c2), "bns2": bn_p(ks[11], c2),
    }


if __name__ == "__main__":
    key = jax.random.PRNGKey(0)
    kx, kp = jax.random.split(key)

    # new_BasicBlock(in_channels=4, out_channel1=8, out_channel2=16)
    # (both shortcuts are conv1x1 + BN since channel counts differ)
    N, Cin, H, W = 2, 4, 16, 16
    C1, C2 = 8, 16

    x = jax.random.normal(kx, (N, Cin, H, W), jnp.float32)  # NCHW like PyTorch
    params = make_params(kp, Cin, C1, C2)

    out = jax.block_until_ready(new_basic_block_forward(x, params))
    ref = jax.block_until_ready(ref_forward(x, params))

    assert out.shape == (N, C2, H, W), out.shape
    # Tolerance accounts for bf16 MXU operands (f32 accumulation) across the
    # four stacked convs; measured error is well inside this bound.
    assert jnp.allclose(out, ref, rtol=2e-2, atol=2e-2), (
        float(jnp.max(jnp.abs(out - ref))))
    print("KERNEL_OK")
</pallas_src>

<mosaic_0001>
module attributes {stable_mosaic.version = 11 : i64} {
  func.func @_basic_block_kernel(%arg0: i32, %arg1: memref<16x768xbf16, #tpu.memory_space<vmem>>, %arg2: memref<1x768xf32, #tpu.memory_space<vmem>>, %arg3: memref<96x144xbf16, #tpu.memory_space<vmem>>, %arg4: memref<96x1xf32, #tpu.memory_space<vmem>>, %arg5: memref<16x768xf32, #tpu.memory_space<vmem>>, %arg6: memref<144x768xbf16, #tpu.memory_space<vmem>>) attributes {dimension_semantics = [#tpu.dimension_semantics<parallel>], iteration_bounds = array<i64: 1>, scalar_prefetch = 0 : i64, scratch_operands = 1 : i64, tpu.core_type = #tpu.core_type<tc>, window_params = [{transform_indices = @transform_0, window_bounds = array<i64: 16, 768>}, {pipeline_mode = #tpu.pipeline_mode<synchronous>, transform_indices = @transform_1, window_bounds = array<i64: 1, 768>}, {pipeline_mode = #tpu.pipeline_mode<synchronous>, transform_indices = @transform_2, window_bounds = array<i64: 96, 144>}, {pipeline_mode = #tpu.pipeline_mode<synchronous>, transform_indices = @transform_3, window_bounds = array<i64: 96, 1>}, {transform_indices = @transform_4, window_bounds = array<i64: 16, 768>}]} {
    %c0 = arith.constant 0 : index
    %c0_0 = arith.constant 0 : index
    %0 = vector.load %arg2[%c0, %c0_0] : memref<1x768xf32, #tpu.memory_space<vmem>>, vector<1x768xf32>
    %c0_1 = arith.constant 0 : index
    %c0_2 = arith.constant 0 : index
    %1 = vector.load %arg1[%c0_1, %c0_2] : memref<16x768xbf16, #tpu.memory_space<vmem>>, vector<16x768xbf16>
    %c64 = arith.constant 64 : index
    %c0_3 = arith.constant 0 : index
    %2 = vector.load %arg3[%c64, %c0_3] : memref<96x144xbf16, #tpu.memory_space<vmem>>, vector<32x16xbf16>
    %cst = arith.constant dense<0.000000e+00> : vector<32x768xf32>
    %3 = tpu.matmul %2, %1, %cst {dimension_numbers = #tpu.dot_dimension_numbers<[1], [0], [0], [1], [0, 0, 1, 1], [], []>} : vector<32x16xbf16>, vector<16x768xbf16>, vector<32x768xf32> -> vector<32x768xf32>
    %c64_4 = arith.constant 64 : index
    %c0_5 = arith.constant 0 : index
    %4 = vector.load %arg4[%c64_4, %c0_5] : memref<96x1xf32, #tpu.memory_space<vmem>>, vector<32x1xf32>
    %5 = vector.broadcast %4 : vector<32x1xf32> to vector<32x768xf32>
    %6 = arith.addf %3, %5 : vector<32x768xf32>
    %7 = vector.extract_strided_slice %6 {offsets = [0, 0], sizes = [16, 768], strides = [1, 1]} : vector<32x768xf32> to vector<16x768xf32>
    %8 = vector.extract_strided_slice %6 {offsets = [16, 0], sizes = [16, 768], strides = [1, 1]} : vector<32x768xf32> to vector<16x768xf32>
    %9 = vector.shape_cast %0 : vector<1x768xf32> to vector<1x768xf32>
    %10 = vector.broadcast %9 : vector<1x768xf32> to vector<16x768xf32>
    %11 = vector.shape_cast %0 : vector<1x768xf32> to vector<1x768xf32>
    %12 = vector.broadcast %11 : vector<1x768xf32> to vector<16x768xf32>
    %13 = arith.extf %1 : vector<16x768xbf16> to vector<16x768xf32>
    %c19_i32 = arith.constant 19 : i32
    %14 = tpu.dynamic_rotate %13 by %c19_i32 dim 1 : vector<16x768xf32>, i32 -> vector<16x768xf32>
    %15 = arith.truncf %14 : vector<16x768xf32> to vector<16x768xbf16>
    %c0_6 = arith.constant 0 : index
    %c0_7 = arith.constant 0 : index
    %16 = vector.load %arg6[%c0_6, %c0_7] : memref<144x768xbf16, #tpu.memory_space<vmem>>, vector<16x768xbf16>
    tpu.vector_store %arg6[%c0_6, %c0_7], %15 {strides = array<i32>} : memref<144x768xbf16, #tpu.memory_space<vmem>>, vector<16x768xbf16>,
    %c18_i32 = arith.constant 18 : i32
    %17 = tpu.dynamic_rotate %13 by %c18_i32 dim 1 : vector<16x768xf32>, i32 -> vector<16x768xf32>
    %18 = arith.truncf %17 : vector<16x768xf32> to vector<16x768xbf16>
    %c16 = arith.constant 16 : index
    %c0_8 = arith.constant 0 : index
    %19 = vector.load %arg6[%c16, %c0_8] : memref<144x768xbf16, #tpu.memory_space<vmem>>, vector<16x768xbf16>
    tpu.vector_store %arg6[%c16, %c0_8], %18 {strides = array<i32>} : memref<144x768xbf16, #tpu.memory_space<vmem>>, vector<16x768xbf16>,
    %c17_i32 = arith.constant 17 : i32
    %20 = tpu.dynamic_rotate %13 by %c17_i32 dim 1 : vector<16x768xf32>, i32 -> vector<16x768xf32>
    %21 = arith.truncf %20 : vector<16x768xf32> to vector<16x768xbf16>
    %c32 = arith.constant 32 : index
    %c0_9 = arith.constant 0 : index
    %22 = vector.load %arg6[%c32, %c0_9] : memref<144x768xbf16, #tpu.memory_space<vmem>>, vector<16x768xbf16>
    tpu.vector_store %arg6[%c32, %c0_9], %21 {strides = array<i32>} : memref<144x768xbf16, #tpu.memory_space<vmem>>, vector<16x768xbf16>,
    %c1_i32 = arith.constant 1 : i32
    %23 = tpu.dynamic_rotate %13 by %c1_i32 dim 1 : vector<16x768xf32>, i32 -> vector<16x768xf32>
    %24 = arith.truncf %23 : vector<16x768xf32> to vector<16x768xbf16>
    %c48 = arith.constant 48 : index
    %c0_10 = arith.constant 0 : index
    %25 = vector.load %arg6[%c48, %c0_10] : memref<144x768xbf16, #tpu.memory_space<vmem>>, vector<16x768xbf16>
    tpu.vector_store %arg6[%c48, %c0_10], %24 {strides = array<i32>} : memref<144x768xbf16, #tpu.memory_space<vmem>>, vector<16x768xbf16>,
    %26 = arith.truncf %13 : vector<16x768xf32> to vector<16x768xbf16>
    %c64_11 = arith.constant 64 : index
    %c0_12 = arith.constant 0 : index
    %27 = vector.load %arg6[%c64_11, %c0_12] : memref<144x768xbf16, #tpu.memory_space<vmem>>, vector<16x768xbf16>
    tpu.vector_store %arg6[%c64_11, %c0_12], %26 {strides = array<i32>} : memref<144x768xbf16, #tpu.memory_space<vmem>>, vector<16x768xbf16>,
    %c767_i32 = arith.constant 767 : i32
    %28 = tpu.dynamic_rotate %13 by %c767_i32 dim 1 : vector<16x768xf32>, i32 -> vector<16x768xf32>
    %29 = arith.truncf %28 : vector<16x768xf32> to vector<16x768xbf16>
    %c80 = arith.constant 80 : index
    %c0_13 = arith.constant 0 : index
    %30 = vector.load %arg6[%c80, %c0_13] : memref<144x768xbf16, #tpu.memory_space<vmem>>, vector<16x768xbf16>
    tpu.vector_store %arg6[%c80, %c0_13], %29 {strides = array<i32>} : memref<144x768xbf16, #tpu.memory_space<vmem>>, vector<16x768xbf16>,
    %c751_i32 = arith.constant 751 : i32
    %31 = tpu.dynamic_rotate %13 by %c751_i32 dim 1 : vector<16x768xf32>, i32 -> vector<16x768xf32>
    %32 = arith.truncf %31 : vector<16x768xf32> to vector<16x768xbf16>
    %c96 = arith.constant 96 : index
    %c0_14 = arith.constant 0 : index
    %33 = vector.load %arg6[%c96, %c0_14] : memref<144x768xbf16, #tpu.memory_space<vmem>>, vector<16x768xbf16>
    tpu.vector_store %arg6[%c96, %c0_14], %32 {strides = array<i32>} : memref<144x768xbf16, #tpu.memory_space<vmem>>, vector<16x768xbf16>,
    %c750_i32 = arith.constant 750 : i32
    %34 = tpu.dynamic_rotate %13 by %c750_i32 dim 1 : vector<16x768xf32>, i32 -> vector<16x768xf32>
    %35 = arith.truncf %34 : vector<16x768xf32> to vector<16x768xbf16>
    %c112 = arith.constant 112 : index
    %c0_15 = arith.constant 0 : index
    %36 = vector.load %arg6[%c112, %c0_15] : memref<144x768xbf16, #tpu.memory_space<vmem>>, vector<16x768xbf16>
    tpu.vector_store %arg6[%c112, %c0_15], %35 {strides = array<i32>} : memref<144x768xbf16, #tpu.memory_space<vmem>>, vector<16x768xbf16>,
    %c749_i32 = arith.constant 749 : i32
    %37 = tpu.dynamic_rotate %13 by %c749_i32 dim 1 : vector<16x768xf32>, i32 -> vector<16x768xf32>
    %38 = arith.truncf %37 : vector<16x768xf32> to vector<16x768xbf16>
    %c128 = arith.constant 128 : index
    %c0_16 = arith.constant 0 : index
    %39 = vector.load %arg6[%c128, %c0_16] : memref<144x768xbf16, #tpu.memory_space<vmem>>, vector<16x768xbf16>
    tpu.vector_store %arg6[%c128, %c0_16], %38 {strides = array<i32>} : memref<144x768xbf16, #tpu.memory_space<vmem>>, vector<16x768xbf16>,
    %c0_17 = arith.constant 0 : index
    %c0_18 = arith.constant 0 : index
    %40 = vector.load %arg3[%c0_17, %c0_18] : memref<96x144xbf16, #tpu.memory_space<vmem>>, vector<16x144xbf16>
    %c0_19 = arith.constant 0 : index
    %c0_20 = arith.constant 0 : index
    %41 = vector.load %arg6[%c0_19, %c0_20] : memref<144x768xbf16, #tpu.memory_space<vmem>>, vector<144x768xbf16>
    %cst_21 = arith.constant dense<0.000000e+00> : vector<16x768xf32>
    %42 = tpu.matmul %40, %41, %cst_21 {dimension_numbers = #tpu.dot_dimension_numbers<[1], [0], [0], [1], [0, 0, 1, 1], [], []>} : vector<16x144xbf16>, vector<144x768xbf16>, vector<16x768xf32> -> vector<16x768xf32>
    %c0_22 = arith.constant 0 : index
    %c0_23 = arith.constant 0 : index
    %43 = vector.load %arg4[%c0_22, %c0_23] : memref<96x1xf32, #tpu.memory_space<vmem>>, vector<16x1xf32>
    %44 = vector.broadcast %43 : vector<16x1xf32> to vector<16x768xf32>
    %45 = arith.addf %42, %44 : vector<16x768xf32>
    %cst_24 = arith.constant 0.000000e+00 : f32
    %46 = vector.broadcast %cst_24 : f32 to vector<16x768xf32>
    %47 = arith.maximumf %45, %46 : vector<16x768xf32>
    %48 = arith.mulf %47, %10 : vector<16x768xf32>
    %c19_i32_25 = arith.constant 19 : i32
    %49 = tpu.dynamic_rotate %48 by %c19_i32_25 dim 1 : vector<16x768xf32>, i32 -> vector<16x768xf32>
    %50 = arith.truncf %49 : vector<16x768xf32> to vector<16x768xbf16>
    %c0_26 = arith.constant 0 : index
    %c0_27 = arith.constant 0 : index
    %51 = vector.load %arg6[%c0_26, %c0_27] : memref<144x768xbf16, #tpu.memory_space<vmem>>, vector<16x768xbf16>
    tpu.vector_store %arg6[%c0_26, %c0_27], %50 {strides = array<i32>} : memref<144x768xbf16, #tpu.memory_space<vmem>>, vector<16x768xbf16>,
    %c18_i32_28 = arith.constant 18 : i32
    %52 = tpu.dynamic_rotate %48 by %c18_i32_28 dim 1 : vector<16x768xf32>, i32 -> vector<16x768xf32>
    %53 = arith.truncf %52 : vector<16x768xf32> to vector<16x768xbf16>
    %c16_29 = arith.constant 16 : index
    %c0_30 = arith.constant 0 : index
    %54 = vector.load %arg6[%c16_29, %c0_30] : memref<144x768xbf16, #tpu.memory_space<vmem>>, vector<16x768xbf16>
    tpu.vector_store %arg6[%c16_29, %c0_30], %53 {strides = array<i32>} : memref<144x768xbf16, #tpu.memory_space<vmem>>, vector<16x768xbf16>,
    %c17_i32_31 = arith.constant 17 : i32
    %55 = tpu.dynamic_rotate %48 by %c17_i32_31 dim 1 : vector<16x768xf32>, i32 -> vector<16x768xf32>
    %56 = arith.truncf %55 : vector<16x768xf32> to vector<16x768xbf16>
    %c32_32 = arith.constant 32 : index
    %c0_33 = arith.constant 0 : index
    %57 = vector.load %arg6[%c32_32, %c0_33] : memref<144x768xbf16, #tpu.memory_space<vmem>>, vector<16x768xbf16>
    tpu.vector_store %arg6[%c32_32, %c0_33], %56 {strides = array<i32>} : memref<144x768xbf16, #tpu.memory_space<vmem>>, vector<16x768xbf16>,
    %c1_i32_34 = arith.constant 1 : i32
    %58 = tpu.dynamic_rotate %48 by %c1_i32_34 dim 1 : vector<16x768xf32>, i32 -> vector<16x768xf32>
    %59 = arith.truncf %58 : vector<16x768xf32> to vector<16x768xbf16>
    %c48_35 = arith.constant 48 : index
    %c0_36 = arith.constant 0 : index
    %60 = vector.load %arg6[%c48_35, %c0_36] : memref<144x768xbf16, #tpu.memory_space<vmem>>, vector<16x768xbf16>
    tpu.vector_store %arg6[%c48_35, %c0_36], %59 {strides = array<i32>} : memref<144x768xbf16, #tpu.memory_space<vmem>>, vector<16x768xbf16>,
    %61 = arith.truncf %48 : vector<16x768xf32> to vector<16x768xbf16>
    %c64_37 = arith.constant 64 : index
    %c0_38 = arith.constant 0 : index
    %62 = vector.load %arg6[%c64_37, %c0_38] : memref<144x768xbf16, #tpu.memory_space<vmem>>, vector<16x768xbf16>
    tpu.vector_store %arg6[%c64_37, %c0_38], %61 {strides = array<i32>} : memref<144x768xbf16, #tpu.memory_space<vmem>>, vector<16x768xbf16>,
    %c767_i32_39 = arith.constant 767 : i32
    %63 = tpu.dynamic_rotate %48 by %c767_i32_39 dim 1 : vector<16x768xf32>, i32 -> vector<16x768xf32>
    %64 = arith.truncf %63 : vector<16x768xf32> to vector<16x768xbf16>
    %c80_40 = arith.constant 80 : index
    %c0_41 = arith.constant 0 : index
    %65 = vector.load %arg6[%c80_40, %c0_41] : memref<144x768xbf16, #tpu.memory_space<vmem>>, vector<16x768xbf16>
    tpu.vector_store %arg6[%c80_40, %c0_41], %64 {strides = array<i32>} : memref<144x768xbf16, #tpu.memory_space<vmem>>, vector<16x768xbf16>,
    %c751_i32_42 = arith.constant 751 : i32
    %66 = tpu.dynamic_rotate %48 by %c751_i32_42 dim 1 : vector<16x768xf32>, i32 -> vector<16x768xf32>
    %67 = arith.truncf %66 : vector<16x768xf32> to vector<16x768xbf16>
    %c96_43 = arith.constant 96 : index
    %c0_44 = arith.constant 0 : index
    %68 = vector.load %arg6[%c96_43, %c0_44] : memref<144x768xbf16, #tpu.memory_space<vmem>>, vector<16x768xbf16>
    tpu.vector_store %arg6[%c96_43, %c0_44], %67 {strides = array<i32>} : memref<144x768xbf16, #tpu.memory_space<vmem>>, vector<16x768xbf16>,
    %c750_i32_45 = arith.constant 750 : i32
    %69 = tpu.dynamic_rotate %48 by %c750_i32_45 dim 1 : vector<16x768xf32>, i32 -> vector<16x768xf32>
    %70 = arith.truncf %69 : vector<16x768xf32> to vector<16x768xbf16>
    %c112_46 = arith.constant 112 : index
    %c0_47 = arith.constant 0 : index
    %71 = vector.load %arg6[%c112_46, %c0_47] : memref<144x768xbf16, #tpu.memory_space<vmem>>, vector<16x768xbf16>
    tpu.vector_store %arg6[%c112_46, %c0_47], %70 {strides = array<i32>} : memref<144x768xbf16, #tpu.memory_space<vmem>>, vector<16x768xbf16>,
    %c749_i32_48 = arith.constant 749 : i32
    %72 = tpu.dynamic_rotate %48 by %c749_i32_48 dim 1 : vector<16x768xf32>, i32 -> vector<16x768xf32>
    %73 = arith.truncf %72 : vector<16x768xf32> to vector<16x768xbf16>
    %c128_49 = arith.constant 128 : index
    %c0_50 = arith.constant 0 : index
    %74 = vector.load %arg6[%c128_49, %c0_50] : memref<144x768xbf16, #tpu.memory_space<vmem>>, vector<16x768xbf16>
    tpu.vector_store %arg6[%c128_49, %c0_50], %73 {strides = array<i32>} : memref<144x768xbf16, #tpu.memory_space<vmem>>, vector<16x768xbf16>,
    %c16_51 = arith.constant 16 : index
    %c0_52 = arith.constant 0 : index
    %75 = vector.load %arg3[%c16_51, %c0_52] : memref<96x144xbf16, #tpu.memory_space<vmem>>, vector<16x144xbf16>
    %c0_53 = arith.constant 0 : index
    %c0_54 = arith.constant 0 : index
    %76 = vector.load %arg6[%c0_53, %c0_54] : memref<144x768xbf16, #tpu.memory_space<vmem>>, vector<144x768xbf16>
    %cst_55 = arith.constant dense<0.000000e+00> : vector<16x768xf32>
    %77 = tpu.matmul %75, %76, %cst_55 {dimension_numbers = #tpu.dot_dimension_numbers<[1], [0], [0], [1], [0, 0, 1, 1], [], []>} : vector<16x144xbf16>, vector<144x768xbf16>, vector<16x768xf32> -> vector<16x768xf32>
    %c16_56 = arith.constant 16 : index
    %c0_57 = arith.constant 0 : index
    %78 = vector.load %arg4[%c16_56, %c0_57] : memref<96x1xf32, #tpu.memory_space<vmem>>, vector<16x1xf32>
    %79 = vector.broadcast %78 : vector<16x1xf32> to vector<16x768xf32>
    %80 = arith.addf %77, %79 : vector<16x768xf32>
    %cst_58 = arith.constant 0.000000e+00 : f32
    %81 = vector.broadcast %cst_58 : f32 to vector<16x768xf32>
    %82 = arith.maximumf %80, %81 : vector<16x768xf32>
    %83 = arith.addf %82, %7 : vector<16x768xf32>
    %84 = arith.mulf %83, %10 : vector<16x768xf32>
    %c19_i32_59 = arith.constant 19 : i32
    %85 = tpu.dynamic_rotate %84 by %c19_i32_59 dim 1 : vector<16x768xf32>, i32 -> vector<16x768xf32>
    %86 = arith.truncf %85 : vector<16x768xf32> to vector<16x768xbf16>
    %c0_60 = arith.constant 0 : index
    %c0_61 = arith.constant 0 : index
    %87 = vector.load %arg6[%c0_60, %c0_61] : memref<144x768xbf16, #tpu.memory_space<vmem>>, vector<16x768xbf16>
    tpu.vector_store %arg6[%c0_60, %c0_61], %86 {strides = array<i32>} : memref<144x768xbf16, #tpu.memory_space<vmem>>, vector<16x768xbf16>,
    %c18_i32_62 = arith.constant 18 : i32
    %88 = tpu.dynamic_rotate %84 by %c18_i32_62 dim 1 : vector<16x768xf32>, i32 -> vector<16x768xf32>
    %89 = arith.truncf %88 : vector<16x768xf32> to vector<16x768xbf16>
    %c16_63 = arith.constant 16 : index
    %c0_64 = arith.constant 0 : index
    %90 = vector.load %arg6[%c16_63, %c0_64] : memref<144x768xbf16, #tpu.memory_space<vmem>>, vector<16x768xbf16>
    tpu.vector_store %arg6[%c16_63, %c0_64], %89 {strides = array<i32>} : memref<144x768xbf16, #tpu.memory_space<vmem>>, vector<16x768xbf16>,
    %c17_i32_65 = arith.constant 17 : i32
    %91 = tpu.dynamic_rotate %84 by %c17_i32_65 dim 1 : vector<16x768xf32>, i32 -> vector<16x768xf32>
    %92 = arith.truncf %91 : vector<16x768xf32> to vector<16x768xbf16>
    %c32_66 = arith.constant 32 : index
    %c0_67 = arith.constant 0 : index
    %93 = vector.load %arg6[%c32_66, %c0_67] : memref<144x768xbf16, #tpu.memory_space<vmem>>, vector<16x768xbf16>
    tpu.vector_store %arg6[%c32_66, %c0_67], %92 {strides = array<i32>} : memref<144x768xbf16, #tpu.memory_space<vmem>>, vector<16x768xbf16>,
    %c1_i32_68 = arith.constant 1 : i32
    %94 = tpu.dynamic_rotate %84 by %c1_i32_68 dim 1 : vector<16x768xf32>, i32 -> vector<16x768xf32>
    %95 = arith.truncf %94 : vector<16x768xf32> to vector<16x768xbf16>
    %c48_69 = arith.constant 48 : index
    %c0_70 = arith.constant 0 : index
    %96 = vector.load %arg6[%c48_69, %c0_70] : memref<144x768xbf16, #tpu.memory_space<vmem>>, vector<16x768xbf16>
    tpu.vector_store %arg6[%c48_69, %c0_70], %95 {strides = array<i32>} : memref<144x768xbf16, #tpu.memory_space<vmem>>, vector<16x768xbf16>,
    %97 = arith.truncf %84 : vector<16x768xf32> to vector<16x768xbf16>
    %c64_71 = arith.constant 64 : index
    %c0_72 = arith.constant 0 : index
    %98 = vector.load %arg6[%c64_71, %c0_72] : memref<144x768xbf16, #tpu.memory_space<vmem>>, vector<16x768xbf16>
    tpu.vector_store %arg6[%c64_71, %c0_72], %97 {strides = array<i32>} : memref<144x768xbf16, #tpu.memory_space<vmem>>, vector<16x768xbf16>,
    %c767_i32_73 = arith.constant 767 : i32
    %99 = tpu.dynamic_rotate %84 by %c767_i32_73 dim 1 : vector<16x768xf32>, i32 -> vector<16x768xf32>
    %100 = arith.truncf %99 : vector<16x768xf32> to vector<16x768xbf16>
    %c80_74 = arith.constant 80 : index
    %c0_75 = arith.constant 0 : index
    %101 = vector.load %arg6[%c80_74, %c0_75] : memref<144x768xbf16, #tpu.memory_space<vmem>>, vector<16x768xbf16>
    tpu.vector_store %arg6[%c80_74, %c0_75], %100 {strides = array<i32>} : memref<144x768xbf16, #tpu.memory_space<vmem>>, vector<16x768xbf16>,
    %c751_i32_76 = arith.constant 751 : i32
    %102 = tpu.dynamic_rotate %84 by %c751_i32_76 dim 1 : vector<16x768xf32>, i32 -> vector<16x768xf32>
    %103 = arith.truncf %102 : vector<16x768xf32> to vector<16x768xbf16>
    %c96_77 = arith.constant 96 : index
    %c0_78 = arith.constant 0 : index
    %104 = vector.load %arg6[%c96_77, %c0_78] : memref<144x768xbf16, #tpu.memory_space<vmem>>, vector<16x768xbf16>
    tpu.vector_store %arg6[%c96_77, %c0_78], %103 {strides = array<i32>} : memref<144x768xbf16, #tpu.memory_space<vmem>>, vector<16x768xbf16>,
    %c750_i32_79 = arith.constant 750 : i32
    %105 = tpu.dynamic_rotate %84 by %c750_i32_79 dim 1 : vector<16x768xf32>, i32 -> vector<16x768xf32>
    %106 = arith.truncf %105 : vector<16x768xf32> to vector<16x768xbf16>
    %c112_80 = arith.constant 112 : index
    %c0_81 = arith.constant 0 : index
    %107 = vector.load %arg6[%c112_80, %c0_81] : memref<144x768xbf16, #tpu.memory_space<vmem>>, vector<16x768xbf16>
    tpu.vector_store %arg6[%c112_80, %c0_81], %106 {strides = array<i32>} : memref<144x768xbf16, #tpu.memory_space<vmem>>, vector<16x768xbf16>,
    %c749_i32_82 = arith.constant 749 : i32
    %108 = tpu.dynamic_rotate %84 by %c749_i32_82 dim 1 : vector<16x768xf32>, i32 -> vector<16x768xf32>
    %109 = arith.truncf %108 : vector<16x768xf32> to vector<16x768xbf16>
    %c128_83 = arith.constant 128 : index
    %c0_84 = arith.constant 0 : index
    %110 = vector.load %arg6[%c128_83, %c0_84] : memref<144x768xbf16, #tpu.memory_space<vmem>>, vector<16x768xbf16>
    tpu.vector_store %arg6[%c128_83, %c0_84], %109 {strides = array<i32>} : memref<144x768xbf16, #tpu.memory_space<vmem>>, vector<16x768xbf16>,
    %c32_85 = arith.constant 32 : index
    %c0_86 = arith.constant 0 : index
    %111 = vector.load %arg3[%c32_85, %c0_86] : memref<96x144xbf16, #tpu.memory_space<vmem>>, vector<16x144xbf16>
    %c0_87 = arith.constant 0 : index
    %c0_88 = arith.constant 0 : index
    %112 = vector.load %arg6[%c0_87, %c0_88] : memref<144x768xbf16, #tpu.memory_space<vmem>>, vector<144x768xbf16>
    %cst_89 = arith.constant dense<0.000000e+00> : vector<16x768xf32>
    %113 = tpu.matmul %111, %112, %cst_89 {dimension_numbers = #tpu.dot_dimension_numbers<[1], [0], [0], [1], [0, 0, 1, 1], [], []>} : vector<16x144xbf16>, vector<144x768xbf16>, vector<16x768xf32> -> vector<16x768xf32>
    %c32_90 = arith.constant 32 : index
    %c0_91 = arith.constant 0 : index
    %114 = vector.load %arg4[%c32_90, %c0_91] : memref<96x1xf32, #tpu.memory_space<vmem>>, vector<16x1xf32>
    %115 = vector.broadcast %114 : vector<16x1xf32> to vector<16x768xf32>
    %116 = arith.addf %113, %115 : vector<16x768xf32>
    %cst_92 = arith.constant 0.000000e+00 : f32
    %117 = vector.broadcast %cst_92 : f32 to vector<16x768xf32>
    %118 = arith.maximumf %116, %117 : vector<16x768xf32>
    %119 = arith.mulf %118, %12 : vector<16x768xf32>
    %c19_i32_93 = arith.constant 19 : i32
    %120 = tpu.dynamic_rotate %119 by %c19_i32_93 dim 1 : vector<16x768xf32>, i32 -> vector<16x768xf32>
    %121 = arith.truncf %120 : vector<16x768xf32> to vector<16x768xbf16>
    %c0_94 = arith.constant 0 : index
    %c0_95 = arith.constant 0 : index
    %122 = vector.load %arg6[%c0_94, %c0_95] : memref<144x768xbf16, #tpu.memory_space<vmem>>, vector<16x768xbf16>
    tpu.vector_store %arg6[%c0_94, %c0_95], %121 {strides = array<i32>} : memref<144x768xbf16, #tpu.memory_space<vmem>>, vector<16x768xbf16>,
    %c18_i32_96 = arith.constant 18 : i32
    %123 = tpu.dynamic_rotate %119 by %c18_i32_96 dim 1 : vector<16x768xf32>, i32 -> vector<16x768xf32>
    %124 = arith.truncf %123 : vector<16x768xf32> to vector<16x768xbf16>
    %c16_97 = arith.constant 16 : index
    %c0_98 = arith.constant 0 : index
    %125 = vector.load %arg6[%c16_97, %c0_98] : memref<144x768xbf16, #tpu.memory_space<vmem>>, vector<16x768xbf16>
    tpu.vector_store %arg6[%c16_97, %c0_98], %124 {strides = array<i32>} : memref<144x768xbf16, #tpu.memory_space<vmem>>, vector<16x768xbf16>,
    %c17_i32_99 = arith.constant 17 : i32
    %126 = tpu.dynamic_rotate %119 by %c17_i32_99 dim 1 : vector<16x768xf32>, i32 -> vector<16x768xf32>
    %127 = arith.truncf %126 : vector<16x768xf32> to vector<16x768xbf16>
    %c32_100 = arith.constant 32 : index
    %c0_101 = arith.constant 0 : index
    %128 = vector.load %arg6[%c32_100, %c0_101] : memref<144x768xbf16, #tpu.memory_space<vmem>>, vector<16x768xbf16>
    tpu.vector_store %arg6[%c32_100, %c0_101], %127 {strides = array<i32>} : memref<144x768xbf16, #tpu.memory_space<vmem>>, vector<16x768xbf16>,
    %c1_i32_102 = arith.constant 1 : i32
    %129 = tpu.dynamic_rotate %119 by %c1_i32_102 dim 1 : vector<16x768xf32>, i32 -> vector<16x768xf32>
    %130 = arith.truncf %129 : vector<16x768xf32> to vector<16x768xbf16>
    %c48_103 = arith.constant 48 : index
    %c0_104 = arith.constant 0 : index
    %131 = vector.load %arg6[%c48_103, %c0_104] : memref<144x768xbf16, #tpu.memory_space<vmem>>, vector<16x768xbf16>
    tpu.vector_store %arg6[%c48_103, %c0_104], %130 {strides = array<i32>} : memref<144x768xbf16, #tpu.memory_space<vmem>>, vector<16x768xbf16>,
    %132 = arith.truncf %119 : vector<16x768xf32> to vector<16x768xbf16>
    %c64_105 = arith.constant 64 : index
    %c0_106 = arith.constant 0 : index
    %133 = vector.load %arg6[%c64_105, %c0_106] : memref<144x768xbf16, #tpu.memory_space<vmem>>, vector<16x768xbf16>
    tpu.vector_store %arg6[%c64_105, %c0_106], %132 {strides = array<i32>} : memref<144x768xbf16, #tpu.memory_space<vmem>>, vector<16x768xbf16>,
    %c767_i32_107 = arith.constant 767 : i32
    %134 = tpu.dynamic_rotate %119 by %c767_i32_107 dim 1 : vector<16x768xf32>, i32 -> vector<16x768xf32>
    %135 = arith.truncf %134 : vector<16x768xf32> to vector<16x768xbf16>
    %c80_108 = arith.constant 80 : index
    %c0_109 = arith.constant 0 : index
    %136 = vector.load %arg6[%c80_108, %c0_109] : memref<144x768xbf16, #tpu.memory_space<vmem>>, vector<16x768xbf16>
    tpu.vector_store %arg6[%c80_108, %c0_109], %135 {strides = array<i32>} : memref<144x768xbf16, #tpu.memory_space<vmem>>, vector<16x768xbf16>,
    %c751_i32_110 = arith.constant 751 : i32
    %137 = tpu.dynamic_rotate %119 by %c751_i32_110 dim 1 : vector<16x768xf32>, i32 -> vector<16x768xf32>
    %138 = arith.truncf %137 : vector<16x768xf32> to vector<16x768xbf16>
    %c96_111 = arith.constant 96 : index
    %c0_112 = arith.constant 0 : index
    %139 = vector.load %arg6[%c96_111, %c0_112] : memref<144x768xbf16, #tpu.memory_space<vmem>>, vector<16x768xbf16>
    tpu.vector_store %arg6[%c96_111, %c0_112], %138 {strides = array<i32>} : memref<144x768xbf16, #tpu.memory_space<vmem>>, vector<16x768xbf16>,
    %c750_i32_113 = arith.constant 750 : i32
    %140 = tpu.dynamic_rotate %119 by %c750_i32_113 dim 1 : vector<16x768xf32>, i32 -> vector<16x768xf32>
    %141 = arith.truncf %140 : vector<16x768xf32> to vector<16x768xbf16>
    %c112_114 = arith.constant 112 : index
    %c0_115 = arith.constant 0 : index
    %142 = vector.load %arg6[%c112_114, %c0_115] : memref<144x768xbf16, #tpu.memory_space<vmem>>, vector<16x768xbf16>
    tpu.vector_store %arg6[%c112_114, %c0_115], %141 {strides = array<i32>} : memref<144x768xbf16, #tpu.memory_space<vmem>>, vector<16x768xbf16>,
    %c749_i32_116 = arith.constant 749 : i32
    %143 = tpu.dynamic_rotate %119 by %c749_i32_116 dim 1 : vector<16x768xf32>, i32 -> vector<16x768xf32>
    %144 = arith.truncf %143 : vector<16x768xf32> to vector<16x768xbf16>
    %c128_117 = arith.constant 128 : index
    %c0_118 = arith.constant 0 : index
    %145 = vector.load %arg6[%c128_117, %c0_118] : memref<144x768xbf16, #tpu.memory_space<vmem>>, vector<16x768xbf16>
    tpu.vector_store %arg6[%c128_117, %c0_118], %144 {strides = array<i32>} : memref<144x768xbf16, #tpu.memory_space<vmem>>, vector<16x768xbf16>,
    %c48_119 = arith.constant 48 : index
    %c0_120 = arith.constant 0 : index
    %146 = vector.load %arg3[%c48_119, %c0_120] : memref<96x144xbf16, #tpu.memory_space<vmem>>, vector<16x144xbf16>
    %c0_121 = arith.constant 0 : index
    %c0_122 = arith.constant 0 : index
    %147 = vector.load %arg6[%c0_121, %c0_122] : memref<144x768xbf16, #tpu.memory_space<vmem>>, vector<144x768xbf16>
    %cst_123 = arith.constant dense<0.000000e+00> : vector<16x768xf32>
    %148 = tpu.matmul %146, %147, %cst_123 {dimension_numbers = #tpu.dot_dimension_numbers<[1], [0], [0], [1], [0, 0, 1, 1], [], []>} : vector<16x144xbf16>, vector<144x768xbf16>, vector<16x768xf32> -> vector<16x768xf32>
    %c48_124 = arith.constant 48 : index
    %c0_125 = arith.constant 0 : index
    %149 = vector.load %arg4[%c48_124, %c0_125] : memref<96x1xf32, #tpu.memory_space<vmem>>, vector<16x1xf32>
    %150 = vector.broadcast %149 : vector<16x1xf32> to vector<16x768xf32>
    %151 = arith.addf %148, %150 : vector<16x768xf32>
    %cst_126 = arith.constant 0.000000e+00 : f32
    %152 = vector.broadcast %cst_126 : f32 to vector<16x768xf32>
    %153 = arith.maximumf %151, %152 : vector<16x768xf32>
    %154 = arith.addf %153, %8 : vector<16x768xf32>
    %155 = arith.mulf %154, %12 : vector<16x768xf32>
    %c0_127 = arith.constant 0 : index
    %c0_128 = arith.constant 0 : index
    %156 = vector.load %arg5[%c0_127, %c0_128] : memref<16x768xf32, #tpu.memory_space<vmem>>, vector<16x768xf32>
    tpu.vector_store %arg5[%c0_127, %c0_128], %155 {strides = array<i32>} : memref<16x768xf32, #tpu.memory_space<vmem>>, vector<16x768xf32>,
    return
  }
  func.func @transform_0(%arg0: i32) -> (i32, i32) {
    %c0_i32 = arith.constant 0 : i32
    %c0_i32_0 = arith.constant 0 : i32
    return %c0_i32, %arg0 : i32, i32
  }
  func.func @transform_1(%arg0: i32) -> (i32, i32) {
    %c0_i32 = arith.constant 0 : i32
    %c0_i32_0 = arith.constant 0 : i32
    %c0_i32_1 = arith.constant 0 : i32
    return %c0_i32, %c0_i32_0 : i32, i32
  }
  func.func @transform_2(%arg0: i32) -> (i32, i32) {
    %c0_i32 = arith.constant 0 : i32
    %c0_i32_0 = arith.constant 0 : i32
    %c0_i32_1 = arith.constant 0 : i32
    return %c0_i32, %c0_i32_0 : i32, i32
  }
  func.func @transform_3(%arg0: i32) -> (i32, i32) {
    %c0_i32 = arith.constant 0 : i32
    %c0_i32_0 = arith.constant 0 : i32
    %c0_i32_1 = arith.constant 0 : i32
    return %c0_i32, %c0_i32_0 : i32, i32
  }
  func.func @transform_4(%arg0: i32) -> (i32, i32) {
    %c0_i32 = arith.constant 0 : i32
    %c0_i32_0 = arith.constant 0 : i32
    return %c0_i32, %arg0 : i32, i32
  }
}

</mosaic_0001>

<bundles_post_ra>
// kernel: tpu_custom_call.1
= control target key start
LH: loop header
LB: loop body
LE: loop exit
PB: predicated region body
PF: predicated region fallthrough
CT: control target
= control target key end

     0   :  { %v3929_v7 = vmov 0   ;;  %s3930_s23 = smov 19   ;;  %s6750_s0 = inlined_call_operand.vmem [shape: bf16[16,768], index: 0, kind: input, shape index: {}]   ;;  %s6751_s1 = inlined_call_operand.vmem [shape: f32[1,768], index: 1, kind: input, shape index: {}]   ;;  %s6752_s2 = inlined_call_operand.vmem [shape: bf16[96,144], index: 2, kind: input, shape index: {}]   ;;  %s6753_s3 = inlined_call_operand.vmem [shape: f32[96,1], index: 3, kind: input, shape index: {}]   ;;  %s6754_s4 = inlined_call_operand.hbm [shape: f32[16,768], index: 4, kind: output, shape index: {}]  }
   0x1   :  { %v3969_v0 = vld [vmem:[%s6750_s0 + $0x10] sm:$0xff]  ;;  %v3974_v1 = vld [vmem:[%s6750_s0 + $0x28] sm:$0xff]  ;;  %v20_v2 = vld [vmem:[%s6750_s0] sm:$0xff]  ;;  %143 = vmatprep.mubr.bf16.mxu1 %v3929_v7  ;;  %133 = vmatprep.mubr.bf16.mxu0 %v3929_v7 }
   0x2   :  { %v296_v3 = vunpack.c.h.bf16 %v3969_v0  ;;  %v302_v4 = vunpack.c.h.bf16 %v3974_v1  ;;  %v23_v5 = vld [vmem:[%s6750_s0 + $0x18] sm:$0xff]  ;;  %v291_v6 = vunpack.c.l.bf16 %v20_v2  ;;  %v292_v9 = vunpack.c.h.bf16 %v20_v2  ;;  %3164 = vset.pattern.permute.xlu1 %v3929_v7  ;;  %3163 = vset.pattern.permute.xlu0 %v3929_v7 }
   0x3   :  { %v297_v8 = vunpack.c.l.bf16 %v23_v5  ;;  %v298_v10 = vunpack.c.h.bf16 %v23_v5 }
   0x4   :  { %v3988_v11 = vpack.i.bf16 %v302_v4, %v296_v3 }
   0x5   :  { %v3990_v12 = vpack.i.bf16 %v297_v8, %v291_v6  ;;  %v2928_v13 = vpack.i.bf16 %v298_v10, %v292_v9 }
   0x6   :  { %2934 = vrot.lane.b32.xlu1 %v3988_v11, %s3930_s23 }
   0x7   :  { %2924 = vrot.lane.b32.xlu0 %v3990_v12, %s3930_s23 }
   0x8   :  { %9 = vsyncpa [#allocation4], 0  ;;  %s3931_s24 = smov 18   ;;  %v21_v14 = vld [vmem:[%s6750_s0 + $0x8] sm:$0xff]  ;;  %v24_v15 = vld [vmem:[%s6750_s0 + $0x20] sm:$0xff]  ;;  %v4008_v16 = vcombine.high %v20_v2, %v23_v5  ;;  %v4010_v17 = vcombine.low %v20_v2, %v23_v5  ;;  %s3932_s29 = smov 17   ;;  %v295_v28 = vunpack.c.l.bf16 %v3969_v0  ;;  %v301_v29 = vunpack.c.l.bf16 %v3974_v1 }
   0x9   :  { %v4013_v18 = vcombine.high %v21_v14, %v24_v15  ;;  %v4021_v19 = vld [vmem:[%s6752_s2 + $0x50] ss:$8 sps:$4 sm:$0xff]   ;;  %vm94_vm0 = vcmask 130048   ;;  %v4024_v20 = vcombine.low %v21_v14, %v24_v15  ;;  %s3933_s0 = smov 1   ;;  %v293_v21 = vunpack.c.l.bf16 %v21_v14  ;;  %v3890_v23 = vld [vmem:[%s6752_s2 + $0x40] ss:$8 sps:$4 sm:$0xff]  }
   0xa   :  { %2939 = vrot.lane.b32.xlu1 %v3990_v12, %s3931_s24  ;;  %2909 = vmatprep.subr.bf16.mxu1 %v4008_v16  ;;  %v299_v22 = vunpack.c.l.bf16 %v24_v15  ;;  %s3934_s8 = smov 127   ;;  %s3935_s9 = smov 111   ;;  %v4062_v25 = vld [vmem:[%s6752_s2 + $0x4] ss:$8 sps:$4 sm:$0xff]   ;;  %v294_v26 = vunpack.c.h.bf16 %v21_v14  ;;  %v300_v27 = vunpack.c.h.bf16 %v24_v15  ;;  %v3043_v31 = vpack.i.bf16 %v301_v29, %v295_v28 }
   0xb   :  { %2929 = vrot.lane.b32.xlu0 %v2928_v13, %s3930_s23  ;;  %2910 = vmatpush1.bf16.msra.mxu1 %v4010_v17  ;;  %s3936_s10 = smov 110   ;;  %s3937_s13 = smov 109   ;;  %v4078_v32 = vcombine.high %v3969_v0, %v3974_v1  ;;  %v4083_v33 = vcombine.low %v3969_v0, %v3974_v1  ;;  %v760_v34 = vld [vmem:[%s6753_s3 + $0x8] sm:$0xff]  ;;  %v759_v35 = vld [vmem:[%s6753_s3] sm:$0xff]  ;;  %v6755_v36 = vlaneseq }
   0xc   :  { %101 = vmatprep.subr.bf16.mxu0 %v4008_v16  ;;  %154 = vmatprep.subr.bf16.mxu1 %v4013_v18  ;;  %v2988_v24 = vpack.i.bf16 %v299_v22, %v293_v21  ;;  %v3048_v30 = vpack.i.bf16 %v300_v27, %v294_v26 }
   0xd   :  { %102 = vmatpush1.bf16.msra.mxu0 %v4010_v17  ;;  %v4127_v38 = vand.u32 127, %v6755_v36 }
   0xe   :  { %2949 = vrot.lane.b32.xlu1 %v3988_v11, %s3931_s24  ;;  %2884 = vmatmul.mubr.msk.bf16.vlgmr.msra.gmra.mrb[0].mxu1 %vm94_vm0, %v4021_v19 }
   0xf   :  { %2944 = vrot.lane.b32.xlu0 %v2928_v13, %s3931_s24  ;;  %155 = vmatpush1.bf16.msra.mxu1 %v4024_v20  ;;  %vm329_vm1 = vcmp.lt.s32.totalorder %v4127_v38, 19  ;;  %vm378_vm2 = vcmp.lt.s32.totalorder %v4127_v38, 18  ;;  %vm427_vm3 = vcmp.lt.s32.totalorder %v4127_v38, 17  ;;  %vm476_vm4 = vcmp.lt.s32.totalorder %v4127_v38, 1 }
  0x10   :  { %186 = vmatprep.mubr.bf16.mxu1 %v3929_v7  ;;  %2883 = vmatmul.mubr.msk.bf16.vlgmr.msra.gmra.mrb[0].mxu0 %vm94_vm0, %v3890_v23  ;;  %vm531_vm5 = vcmp.lt.s32.totalorder %v4127_v38, 127  ;;  %vm580_vm6 = vcmp.lt.s32.totalorder %v4127_v38, 111  ;;  %vm629_vm7 = vcmp.lt.s32.totalorder %v4127_v38, 110  ;;  %vm678_vm8 = vcmp.lt.s32.totalorder %v4127_v38, 109 }
  0x11   :  { %239 = vmatprep.mubr.bf16.mxu0 %v3929_v7  ;;  %207 = vmatprep.subr.bf16.mxu0 %v4078_v32 }
  0x12   :  { %2959 = vrot.lane.b32.xlu1 %v2928_v13, %s3932_s29  ;;  %208 = vmatpush1.bf16.msra.mxu0 %v4083_v33 }
  0x13   :  { %2954 = vrot.lane.b32.xlu0 %v3990_v12, %s3932_s29 }
  0x16   :  { %2969 = vrot.lane.b32.xlu1 %v3990_v12, %s3933_s0  ;;  %2885 = vmatmul.mubr.msk.bf16.vlgmr.msra.gmra.mrb[4].mxu1 %vm94_vm0, %v3890_v23 }
  0x17   :  { %2964 = vrot.lane.b32.xlu0 %v3988_v11, %s3932_s29  ;;  %196 = vmatprep.mubr.bf16.mxu1 %v3929_v7 }
  0x18   :  { %2887 = vmatmul.mubr.msk.bf16.vlgmr.msra.gmra.mrb[4].mxu0 %vm94_vm0, %v3890_v23 }
  0x19   :  { %249 = vmatprep.mubr.bf16.mxu0 %v3929_v7 }
  0x1a   :  { %2979 = vrot.lane.b32.xlu1 %v3988_v11, %s3933_s0 }
  0x1b   :  { %2974 = vrot.lane.b32.xlu0 %v2928_v13, %s3933_s0 }
  0x1e   :  { %2989 = vrot.lane.b32.xlu1 %v2988_v24, %s3934_s8  ;;  %2886 = vmatmul.mubr.msk.bf16.gmra.mrb[8].mxu1 %vm94_vm0, %v4021_v19 }
  0x1f   :  { %2984 = vrot.lane.b32.xlu0 %v2928_v13, %s3934_s8  ;;  %2891 = vmatprep.mubr.msk.bf16.mxu1 %vm94_vm0, %v4062_v25 }
  0x20   :  { %2888 = vmatmul.mubr.msk.bf16.gmra.mrb[8].mxu0 %vm94_vm0, %v4021_v19 }
  0x21   :  { %2892 = vmatprep.mubr.msk.bf16.mxu0 %vm94_vm0, %v4062_v25 }
  0x22   :  { %2999 = vrot.lane.b32.xlu1 %v2928_v13, %s3935_s9 }
  0x23   :  { %2994 = vrot.lane.b32.xlu0 %v3990_v12, %s3934_s8 }
  0x26   :  { %3009 = vrot.lane.b32.xlu1 %v3990_v12, %s3935_s9 }
  0x27   :  { %3004 = vrot.lane.b32.xlu0 %v2988_v24, %s3935_s9 }
  0x2a   :  { %3019 = vrot.lane.b32.xlu1 %v2988_v24, %s3936_s10 }
  0x2b   :  { %3014 = vrot.lane.b32.xlu0 %v2928_v13, %s3936_s10 }
  0x2e   :  { %3029 = vrot.lane.b32.xlu1 %v2928_v13, %s3937_s13 }
  0x2f   :  { %3024 = vrot.lane.b32.xlu0 %v3990_v12, %s3936_s10 }
  0x32   :  { %3039 = vrot.lane.b32.xlu1 %v3990_v12, %s3937_s13 }
  0x33   :  { %3034 = vrot.lane.b32.xlu0 %v2988_v24, %s3937_s13 }
  0x36   :  { %3049 = vrot.lane.b32.xlu1 %v3048_v30, %s3930_s23 }
  0x37   :  { %3044 = vrot.lane.b32.xlu0 %v3043_v31, %s3930_s23 }
  0x3a   :  { %3059 = vrot.lane.b32.xlu1 %v3048_v30, %s3931_s24 }
  0x3b   :  { %3054 = vrot.lane.b32.xlu0 %v3043_v31, %s3931_s24 }
  0x3e   :  { %3069 = vrot.lane.b32.xlu1 %v3048_v30, %s3932_s29 }
  0x3f   :  { %3064 = vrot.lane.b32.xlu0 %v3043_v31, %s3932_s29 }
  0x42   :  { %3079 = vrot.lane.b32.xlu1 %v3048_v30, %s3933_s0 }
  0x43   :  { %3074 = vrot.lane.b32.xlu0 %v3043_v31, %s3933_s0 }
  0x46   :  { %3089 = vrot.lane.b32.xlu1 %v3988_v11, %s3934_s8 }
  0x47   :  { %3084 = vrot.lane.b32.xlu0 %v2988_v24, %s3930_s23 }
  0x4a   :  { %3099 = vrot.lane.b32.xlu1 %v2988_v24, %s3931_s24 }
  0x4b   :  { %3094 = vrot.lane.b32.xlu0 %v3043_v31, %s3934_s8 }
  0x4e   :  { %3109 = vrot.lane.b32.xlu1 %v3043_v31, %s3935_s9 }
  0x4f   :  { %3104 = vrot.lane.b32.xlu0 %v3988_v11, %s3935_s9 }
  0x52   :  { %3119 = vrot.lane.b32.xlu1 %v3988_v11, %s3936_s10 }
  0x53   :  { %3114 = vrot.lane.b32.xlu0 %v2988_v24, %s3932_s29 }
  0x56   :  { %3129 = vrot.lane.b32.xlu1 %v2988_v24, %s3933_s0 }
  0x57   :  { %3124 = vrot.lane.b32.xlu0 %v3043_v31, %s3936_s10 }
  0x5a   :  { %3139 = vrot.lane.b32.xlu1 %v3043_v31, %s3937_s13 }
  0x5b   :  { %3134 = vrot.lane.b32.xlu0 %v3988_v11, %s3937_s13 }
  0x5e   :  { %3149 = vrot.lane.b32.xlu1 %v3048_v30, %s3935_s9 }
  0x5f   :  { %3144 = vrot.lane.b32.xlu0 %v3048_v30, %s3934_s8 }
  0x62   :  { %3159 = vrot.lane.b32.xlu1 %v3048_v30, %s3937_s13 }
  0x63   :  { %3154 = vrot.lane.b32.xlu0 %v3048_v30, %s3936_s10 }
  0x66   :  { %768 = vperm.xlu1 %3164, %v760_v34  }
  0x67   :  { %763 = vperm.xlu0 %3163, %v759_v35  }
  0x78   :  { %v4124_v37 = vpop.permute.xlu1 %2934 }
  0x79   :  { %v2925_v39 = vpop.permute.xlu0 %2924  ;;  %v2937_v40 = vunpack.i.h.bf16 %v4124_v37  ;;  %v2936_v41 = vunpack.i.l.bf16 %v4124_v37 }
  0x7a   :  { %v2927_v42 = vunpack.i.h.bf16 %v2925_v39  ;;  %v2926_v43 = vunpack.i.l.bf16 %v2925_v39 }
  0x7c   :  { %v2940_v44 = vpop.permute.xlu1 %2939  ;;  %v341_v48 = vsel %vm329_vm1, %v2937_v40, %v2927_v42  ;;  %v340_v49 = vsel %vm329_vm1, %v2936_v41, %v2926_v43 }
  0x7d   :  { %v4132_v45 = vpop.permute.xlu0 %2929  ;;  %v2942_v50 = vunpack.i.h.bf16 %v2940_v44  ;;  %v2941_v54 = vunpack.i.l.bf16 %v2940_v44  ;;  %v342_v61 = vpack.c.bf16 %v341_v48, %v340_v49 }
  0x7e   :  { %v2932_v46 = vunpack.i.h.bf16 %v4132_v45  ;;  %v2931_v47 = vunpack.i.l.bf16 %v4132_v45 }
  0x80   :  { %v4145_v51 = vpop.permute.xlu1 %2949  ;;  %v338_v52 = vsel %vm329_vm1, %v2926_v43, %v2931_v47  ;;  %v339_v53 = vsel %vm329_vm1, %v2927_v42, %v2932_v46 }
  0x81   :  { %v2952_v55 = vunpack.i.h.bf16 %v4145_v51  ;;  %v2951_v56 = vunpack.i.l.bf16 %v4145_v51  ;;  %v4157_v57 = vpop.permute.xlu0 %2944  ;;  %v343_v58 = vpack.c.bf16 %v339_v53, %v338_v52 }
  0x82   :  { %v2947_v59 = vunpack.i.h.bf16 %v4157_v57  ;;  %v2946_v60 = vunpack.i.l.bf16 %v4157_v57 }
  0x83   :  { %v389_v62 = vsel %vm378_vm2, %v2951_v56, %v2941_v54  ;;  %v390_v63 = vsel %vm378_vm2, %v2952_v55, %v2942_v50  ;;  %783 = vmatprep.subr.bf16.mxu1 %v343_v58 }
  0x84   :  { %784 = vmatpush1.bf16.msra.mxu1 %v342_v61  ;;  %v4169_v0 = vpop.permute.xlu1 %2959  ;;  %v387_v1 = vsel %vm378_vm2, %v2941_v54, %v2946_v60  ;;  %v388_v2 = vsel %vm378_vm2, %v2942_v50, %v2947_v59  ;;  %v391_v3 = vpack.c.bf16 %v390_v63, %v389_v62 }
  0x85   :  { %v2962_v4 = vunpack.i.h.bf16 %v4169_v0  ;;  %v2961_v5 = vunpack.i.l.bf16 %v4169_v0  ;;  %v2955_v6 = vpop.permute.xlu0 %2954  ;;  %v392_v7 = vpack.c.bf16 %v388_v2, %v387_v1 }
  0x86   :  { %v2957_v8 = vunpack.i.h.bf16 %v2955_v6  ;;  %v2956_v9 = vunpack.i.l.bf16 %v2955_v6 }
  0x87   :  { %785 = vmatprep.subr.bf16.mxu1 %v392_v7 }
  0x88   :  { %786 = vmatpush1.bf16.msra.mxu1 %v391_v3  ;;  %v2970_v10 = vpop.permute.xlu1 %2969  ;;  %v436_v11 = vsel %vm427_vm3, %v2956_v9, %v2961_v5  ;;  %v437_v12 = vsel %vm427_vm3, %v2957_v8, %v2962_v4 }
  0x89   :  { %v4190_v13 = vpop.permute.xlu0 %2964  ;;  %v441_v14 = vpack.c.bf16 %v437_v12, %v436_v11  ;;  %v2972_v21 = vunpack.i.h.bf16 %v2970_v10  ;;  %v2971_v26 = vunpack.i.l.bf16 %v2970_v10 }
  0x8a   :  { %v2967_v15 = vunpack.i.h.bf16 %v4190_v13  ;;  %v2966_v19 = vunpack.i.l.bf16 %v4190_v13 }
  0x8b   :  { %787 = vmatprep.subr.bf16.mxu1 %v441_v14 }
  0x8c   :  { %v438_v22 = vsel %vm427_vm3, %v2966_v19, %v2956_v9  ;;  %v439_v23 = vsel %vm427_vm3, %v2967_v15, %v2957_v8  ;;  %v4203_v24 = vpop.permute.xlu1 %2979 }
  0x8d   :  { %v2982_v27 = vunpack.i.h.bf16 %v4203_v24  ;;  %v2981_v28 = vunpack.i.l.bf16 %v4203_v24  ;;  %v4207_v29 = vpop.permute.xlu0 %2974  ;;  %v440_v30 = vpack.c.bf16 %v439_v23, %v438_v22 }
  0x8e   :  { %v2977_v31 = vunpack.i.h.bf16 %v4207_v29  ;;  %v2976_v34 = vunpack.i.l.bf16 %v4207_v29 }
  0x8f   :  { %v487_v35 = vsel %vm476_vm4, %v2981_v28, %v2971_v26  ;;  %v488_v39 = vsel %vm476_vm4, %v2982_v27, %v2972_v21  ;;  %788 = vmatpush1.bf16.msra.mxu1 %v440_v30 }
  0x90   :  { %v4219_v42 = vpop.permute.xlu1 %2989  ;;  %v485_v43 = vsel %vm476_vm4, %v2971_v26, %v2976_v34  ;;  %v486_v44 = vsel %vm476_vm4, %v2972_v21, %v2977_v31  ;;  %v489_v48 = vpack.c.bf16 %v488_v39, %v487_v35 }
  0x91   :  { %v6763_v49 = vunpack.i.h.bf16 %v4219_v42  ;;  %v6760_v50 = vunpack.i.l.bf16 %v4219_v42  ;;  %v2985_v52 = vpop.permute.xlu0 %2984  ;;  %v490_v53 = vpack.c.bf16 %v486_v44, %v485_v43 }
  0x92   :  { %v2987_v54 = vunpack.i.h.bf16 %v2985_v52  ;;  %v2986_v58 = vunpack.i.l.bf16 %v2985_v52 }
  0x93   :  { %789 = vmatprep.subr.bf16.mxu1 %v490_v53 }
  0x94   :  { %790 = vmatpush1.bf16.msra.mxu1 %v489_v48  ;;  %v3000_v61 = vpop.permute.xlu1 %2999  ;;  %v538_v62 = vsel %vm531_vm5, %v2986_v58, %v6760_v50  ;;  %v539_v63 = vsel %vm531_vm5, %v2987_v54, %v6763_v49  ;;  %v4336_v50 = vld [vmem:[%s6752_s2] ss:$8 sps:$4 sm:$0xff]  }
  0x95   :  { %v4240_v1 = vpop.permute.xlu0 %2994  ;;  %791 = vmatprep.subr.bf16.mxu1 %v4008_v16  ;;  %v545_v6 = vpack.c.bf16 %v539_v63, %v538_v62  ;;  %v3002_v7 = vunpack.i.h.bf16 %v3000_v61  ;;  %v3001_v10 = vunpack.i.l.bf16 %v3000_v61 }
  0x96   :  { %v2997_v2 = vunpack.i.h.bf16 %v4240_v1  ;;  %v2996_v3 = vunpack.i.l.bf16 %v4240_v1 }
  0x98   :  { %v540_v8 = vsel %vm531_vm5, %v2996_v3, %v2986_v58  ;;  %v541_v9 = vsel %vm531_vm5, %v2997_v2, %v2987_v54  ;;  %792 = vmatpush1.bf16.msra.mxu1 %v4010_v17  ;;  %v4255_v16 = vpop.permute.xlu1 %3009 }
  0x99   :  { %v3012_v11 = vunpack.i.h.bf16 %v4255_v16  ;;  %v3011_v12 = vunpack.i.l.bf16 %v4255_v16  ;;  %v4259_v14 = vpop.permute.xlu0 %3004  ;;  %793 = vmatprep.subr.bf16.mxu1 %v545_v6  ;;  %v544_v21 = vpack.c.bf16 %v541_v9, %v540_v8 }
  0x9a   :  { %v6758_v22 = vunpack.i.h.bf16 %v4259_v14  ;;  %v6759_v23 = vunpack.i.l.bf16 %v4259_v14 }
  0x9b   :  { %v589_v17 = vsel %vm580_vm6, %v3011_v12, %v3001_v10  ;;  %v590_v26 = vsel %vm580_vm6, %v3012_v11, %v3002_v7 }
  0x9c   :  { %794 = vmatpush1.bf16.msra.mxu1 %v544_v21  ;;  %v4271_v30 = vpop.permute.xlu1 %3019  ;;  %v587_v35 = vsel %vm580_vm6, %v3001_v10, %v6759_v23  ;;  %v588_v39 = vsel %vm580_vm6, %v3002_v7, %v6758_v22  ;;  %v593_v43 = vpack.c.bf16 %v590_v26, %v589_v17 }
  0x9d   :  { %v6757_v44 = vunpack.i.h.bf16 %v4271_v30  ;;  %v6756_v48 = vunpack.i.l.bf16 %v4271_v30  ;;  %v3015_v52 = vpop.permute.xlu0 %3014  ;;  %v594_v53 = vpack.c.bf16 %v588_v39, %v587_v35 }
  0x9e   :  { %v3017_v54 = vunpack.i.h.bf16 %v3015_v52  ;;  %v3016_v58 = vunpack.i.l.bf16 %v3015_v52 }
  0x9f   :  { %795 = vmatprep.subr.bf16.mxu1 %v594_v53 }
  0xa0   :  { %796 = vmatpush1.bf16.msra.mxu1 %v593_v43  ;;  %v3030_v61 = vpop.permute.xlu1 %3029  ;;  %v636_v62 = vsel %vm629_vm7, %v3016_v58, %v6756_v48  ;;  %v637_v63 = vsel %vm629_vm7, %v3017_v54, %v6757_v44 }
  0xa1   :  { %v4292_v6 = vpop.permute.xlu0 %3024  ;;  %v643_v7 = vpack.c.bf16 %v637_v63, %v636_v62  ;;  %v3032_v10 = vunpack.i.h.bf16 %v3030_v61  ;;  %v3031_v35 = vunpack.i.l.bf16 %v3030_v61 }
  0xa2   :  { %v3027_v8 = vunpack.i.h.bf16 %v4292_v6  ;;  %v3026_v9 = vunpack.i.l.bf16 %v4292_v6 }
  0xa3   :  { %797 = vmatprep.subr.bf16.mxu1 %v643_v7 }
  0xa4   :  { %v638_v21 = vsel %vm629_vm7, %v3026_v9, %v3016_v58  ;;  %v639_v17 = vsel %vm629_vm7, %v3027_v8, %v3017_v54  ;;  %v4305_v26 = vpop.permute.xlu1 %3039 }
  0xa5   :  { %v3042_v39 = vunpack.i.h.bf16 %v4305_v26  ;;  %v3041_v43 = vunpack.i.l.bf16 %v4305_v26  ;;  %v4309_v52 = vpop.permute.xlu0 %3034  ;;  %v642_v53 = vpack.c.bf16 %v639_v17, %v638_v21  ;;  %v6841_v26 = vunpack.i.l.bf16 %v4219_v42 }
  0xa6   :  { %v6761_v62 = vunpack.i.h.bf16 %v4309_v52  ;;  %v6762_v58 = vunpack.i.l.bf16 %v4309_v52 }
  0xa7   :  { %v687_v54 = vsel %vm678_vm8, %v3041_v43, %v3031_v35  ;;  %v688_v61 = vsel %vm678_vm8, %v3042_v39, %v3032_v10  ;;  %798 = vmatpush1.bf16.msra.mxu1 %v642_v53 }
  0xa8   :  { %v4321_v63 = vpop.permute.xlu1 %3049  ;;  %v685_v7 = vsel %vm678_vm8, %v3031_v35, %v6762_v58  ;;  %v686_v21 = vsel %vm678_vm8, %v3032_v10, %v6761_v62  ;;  %v691_v17 = vpack.c.bf16 %v688_v61, %v687_v54 }
  0xa9   :  { %v3052_v36 = vunpack.i.h.bf16 %v4321_v63  ;;  %v3051_v48 = vunpack.i.l.bf16 %v4321_v63  ;;  %v3045_v44 = vpop.permute.xlu0 %3044  ;;  %v692_v22 = vpack.c.bf16 %v686_v21, %v685_v7 }
  0xaa   :  { %v3047_v53 = vunpack.i.h.bf16 %v3045_v44  ;;  %v3046_v23 = vunpack.i.l.bf16 %v3045_v44 }
  0xab   :  { %799 = vmatprep.subr.bf16.mxu1 %v692_v22 }
  0xac   :  { %v333_v10 = vsel %vm329_vm1, %v3052_v36, %v3047_v53  ;;  %v332_v35 = vsel %vm329_vm1, %v3051_v48, %v3046_v23  ;;  %800 = vmatpush1.bf16.msra.mxu1 %v691_v17  ;;  %v4346_v54 = vpop.permute.xlu1 %3059  ;;  %v330_v22 = vsel %vm329_vm1, %v3046_v23, %v2936_v41  ;;  %v331_v44 = vsel %vm329_vm1, %v3047_v53, %v2937_v40 }
  0xad   :  { %v3062_v61 = vunpack.i.h.bf16 %v4346_v54  ;;  %v3061_v7 = vunpack.i.l.bf16 %v4346_v54  ;;  %v3055_v21 = vpop.permute.xlu0 %3054  ;;  %v347_v62 = vpack.c.bf16 %v331_v44, %v330_v22  ;;  %v346_v58 = vpack.c.bf16 %v333_v10, %v332_v35 }
  0xae   :  { %v3057_v17 = vunpack.i.h.bf16 %v3055_v21  ;;  %v3056_v49 = vunpack.i.l.bf16 %v3055_v21 }
  0xaf   :  { %869 = vmatprep.subr.bf16.mxu1 %v347_v62  ;;  %816 = vmatmul.mubr.bf16.vlgmr.msra.gmra.mrb[12].mxu1 %v4336_v50 }
  0xb0   :  { %v382_v37 = vsel %vm378_vm2, %v3062_v61, %v3057_v17  ;;  %v381_v40 = vsel %vm378_vm2, %v3061_v7, %v3056_v49  ;;  %870 = vmatpush1.bf16.msra.mxu1 %v346_v58  ;;  %v4367_v41 = vpop.permute.xlu1 %3069  ;;  %v379_v23 = vsel %vm378_vm2, %v3056_v49, %v2951_v56  ;;  %v380_v62 = vsel %vm378_vm2, %v3057_v17, %v2952_v55 }
  0xb1   :  { %v3072_v53 = vunpack.i.h.bf16 %v4367_v41  ;;  %v3071_v10 = vunpack.i.l.bf16 %v4367_v41  ;;  %v3065_v35 = vpop.permute.xlu0 %3064  ;;  %v396_v22 = vpack.c.bf16 %v380_v62, %v379_v23  ;;  %v395_v44 = vpack.c.bf16 %v382_v37, %v381_v40  ;;  %2893 = vmatprep.mubr.msk.bf16.mxu1 %vm94_vm0, %v4062_v25 }
  0xb2   :  { %v3067_v58 = vunpack.i.h.bf16 %v3065_v35  ;;  %v3066_v21 = vunpack.i.l.bf16 %v3065_v35 }
  0xb3   :  { %871 = vmatprep.subr.bf16.mxu1 %v396_v22 }
  0xb4   :  { %v431_v51 = vsel %vm427_vm3, %v3072_v53, %v3067_v58  ;;  %v430_v55 = vsel %vm427_vm3, %v3071_v10, %v3066_v21  ;;  %872 = vmatpush1.bf16.msra.mxu1 %v395_v44  ;;  %v4389_v56 = vpop.permute.xlu1 %3079  ;;  %v428_v25 = vsel %vm427_vm3, %v3066_v21, %v2966_v19  ;;  %v429_v49 = vsel %vm427_vm3, %v3067_v58, %v2967_v15 }
  0xb5   :  { %v3082_v17 = vunpack.i.h.bf16 %v4389_v56  ;;  %v3081_v37 = vunpack.i.l.bf16 %v4389_v56  ;;  %v3075_v40 = vpop.permute.xlu0 %3074  ;;  %v445_v23 = vpack.c.bf16 %v429_v49, %v428_v25  ;;  %v444_v62 = vpack.c.bf16 %v431_v51, %v430_v55 }
  0xb6   :  { %v3077_v35 = vunpack.i.h.bf16 %v3075_v40  ;;  %v3076_v22 = vunpack.i.l.bf16 %v3075_v40 }
  0xb7   :  { %873 = vmatprep.subr.bf16.mxu1 %v445_v23 }
  0xb8   :  { %v480_v19 = vsel %vm476_vm4, %v3082_v17, %v3077_v35  ;;  %v479_v13 = vsel %vm476_vm4, %v3081_v37, %v3076_v22  ;;  %874 = vmatpush1.bf16.msra.mxu1 %v444_v62  ;;  %v3090_v15 = vpop.permute.xlu1 %3089  ;;  %v477_v44 = vsel %vm476_vm4, %v3076_v22, %v2981_v28  ;;  %v478_v58 = vsel %vm476_vm4, %v3077_v35, %v2982_v27 }
  0xb9   :  { %v3092_v21 = vunpack.i.h.bf16 %v3090_v15  ;;  %v3091_v51 = vunpack.i.l.bf16 %v3090_v15  ;;  %v3085_v55 = vpop.permute.xlu0 %3084  ;;  %v494_v25 = vpack.c.bf16 %v478_v58, %v477_v44  ;;  %v493_v49 = vpack.c.bf16 %v480_v19, %v479_v13 }
  0xba   :  { %v3087_v40 = vunpack.i.h.bf16 %v3085_v55  ;;  %v3086_v23 = vunpack.i.l.bf16 %v3085_v55 }
  0xbb   :  { %875 = vmatprep.subr.bf16.mxu1 %v494_v25  ;;  %v542_v62 = vsel %vm531_vm5, %v3091_v51, %v2996_v3  ;;  %v543_v24 = vsel %vm531_vm5, %v3092_v21, %v2997_v2 }
  0xbc   :  { %v336_v27 = vsel %vm329_vm1, %v2931_v47, %v3086_v23  ;;  %v337_v28 = vsel %vm329_vm1, %v2932_v46, %v3087_v40  ;;  %876 = vmatpush1.bf16.msra.mxu1 %v493_v49  ;;  %v3100_v35 = vpop.permute.xlu1 %3099  ;;  %v334_v1 = vsel %vm329_vm1, %v3086_v23, %v3051_v48  ;;  %v335_v2 = vsel %vm329_vm1, %v3087_v40, %v3052_v36 }
  0xbd   :  { %v3102_v3 = vunpack.i.h.bf16 %v3100_v35  ;;  %v3101_v22 = vunpack.i.l.bf16 %v3100_v35  ;;  %v4441_v47 = vpop.permute.xlu0 %3094  ;;  %v345_v45 = vpack.c.bf16 %v335_v2, %v334_v1  ;;  %877 = vmatprep.subr.bf16.mxu1 %v4078_v32  ;;  %v344_v46 = vpack.c.bf16 %v337_v28, %v336_v27 }
  0xbe   :  { %v3097_v19 = vunpack.i.h.bf16 %v4441_v47  ;;  %v3096_v13 = vunpack.i.l.bf16 %v4441_v47  ;;  %v549_v15 = vpack.c.bf16 %v543_v24, %v542_v62  ;;  %v6842_v47 = vunpack.i.l.bf16 %v4259_v14 }
  0xbf   :  { %v385_v48 = vsel %vm378_vm2, %v2946_v60, %v3101_v22  ;;  %v386_v36 = vsel %vm378_vm2, %v2947_v59, %v3102_v3  ;;  %826 = vmatprep.subr.bf16.mxu0 %v345_v45  ;;  %v383_v32 = vsel %vm378_vm2, %v3101_v22, %v3061_v7  ;;  %v384_v63 = vsel %vm378_vm2, %v3102_v3, %v3062_v61 }
  0xc0   :  { %v533_v60 = vsel %vm531_vm5, %v3097_v19, %v3092_v21  ;;  %v532_v57 = vsel %vm531_vm5, %v3096_v13, %v3091_v51  ;;  %827 = vmatpush1.bf16.msra.mxu0 %v344_v46  ;;  %878 = vmatpush1.bf16.msra.mxu1 %v4083_v33  ;;  %v4471_v59 = vpop.permute.xlu1 %3109  ;;  %v394_v7 = vpack.c.bf16 %v384_v63, %v383_v32 }
  0xc1   :  { %v3112_v54 = vunpack.i.h.bf16 %v4471_v59  ;;  %v3111_v61 = vunpack.i.l.bf16 %v4471_v59  ;;  %v3105_v44 = vpop.permute.xlu0 %3104  ;;  %879 = vmatprep.subr.bf16.mxu1 %v549_v15  ;;  %v393_v58 = vpack.c.bf16 %v386_v36, %v385_v48  ;;  %v548_v55 = vpack.c.bf16 %v533_v60, %v532_v57 }
  0xc2   :  { %v3107_v21 = vunpack.i.h.bf16 %v3105_v44  ;;  %v3106_v25 = vunpack.i.l.bf16 %v3105_v44  ;;  %828 = vmatprep.subr.bf16.mxu0 %v394_v7 }
  0xc4   :  { %v582_v51 = vsel %vm580_vm6, %v3112_v54, %v3107_v21  ;;  %v581_v33 = vsel %vm580_vm6, %v3111_v61, %v3106_v25  ;;  %829 = vmatpush1.bf16.msra.mxu0 %v393_v58  ;;  %880 = vmatpush1.bf16.msra.mxu1 %v548_v55  ;;  %v3120_v49 = vpop.permute.xlu1 %3119  ;;  %v591_v40 = vsel %vm580_vm6, %v3106_v25, %v3011_v12 }
  0xc5   :  { %v3122_v23 = vunpack.i.h.bf16 %v3120_v49  ;;  %v3121_v62 = vunpack.i.l.bf16 %v3120_v49  ;;  %v3115_v24 = vpop.permute.xlu0 %3114  ;;  %v592_v27 = vsel %vm580_vm6, %v3107_v21, %v3012_v11  ;;  %v597_v28 = vpack.c.bf16 %v582_v51, %v581_v33 }
  0xc6   :  { %v3117_v35 = vunpack.i.h.bf16 %v3115_v24  ;;  %v3116_v1 = vunpack.i.l.bf16 %v3115_v24  ;;  %v598_v2 = vpack.c.bf16 %v592_v27, %v591_v40  ;;  %v6840_v27 = vunpack.i.h.bf16 %v4219_v42 }
  0xc7   :  { %v640_v3 = vsel %vm629_vm7, %v3121_v62, %v3026_v9  ;;  %v641_v12 = vsel %vm629_vm7, %v3122_v23, %v3027_v8 }
  0xc8   :  { %v435_v16 = vsel %vm427_vm3, %v2962_v4, %v3117_v35  ;;  %v434_v11 = vsel %vm427_vm3, %v2961_v5, %v3116_v1  ;;  %881 = vmatprep.subr.bf16.mxu1 %v598_v2  ;;  %v3130_v22 = vpop.permute.xlu1 %3129  ;;  %v432_v6 = vsel %vm427_vm3, %v3116_v1, %v3071_v10  ;;  %v433_v8 = vsel %vm427_vm3, %v3117_v35, %v3072_v53 }
  0xc9   :  { %882 = vmatpush1.bf16.msra.mxu1 %v597_v28  ;;  %v3132_v9 = vunpack.i.h.bf16 %v3130_v22  ;;  %v3131_v4 = vunpack.i.l.bf16 %v3130_v22  ;;  %v4515_v45 = vpop.permute.xlu0 %3124  ;;  %v443_v0 = vpack.c.bf16 %v433_v8, %v432_v6  ;;  %v647_v46 = vpack.c.bf16 %v641_v12, %v640_v3 }
  0xca   :  { %v3127_v5 = vunpack.i.h.bf16 %v4515_v45  ;;  %v3126_v15 = vunpack.i.l.bf16 %v4515_v45  ;;  %v442_v48 = vpack.c.bf16 %v435_v16, %v434_v11  ;;  %v6843_v16 = vunpack.i.h.bf16 %v4259_v14 }
  0xcb   :  { %v483_v41 = vsel %vm476_vm4, %v2976_v34, %v3131_v4  ;;  %v484_v53 = vsel %vm476_vm4, %v2977_v31, %v3132_v9  ;;  %830 = vmatprep.subr.bf16.mxu0 %v443_v0  ;;  %883 = vmatprep.subr.bf16.mxu1 %v647_v46  ;;  %v481_v10 = vsel %vm476_vm4, %v3131_v4, %v3081_v37  ;;  %v6845_v4 = vunpack.i.l.bf16 %v4271_v30 }
  0xcc   :  { %v631_v36 = vsel %vm629_vm7, %v3127_v5, %v3122_v23  ;;  %v630_v32 = vsel %vm629_vm7, %v3126_v15, %v3121_v62  ;;  %831 = vmatpush1.bf16.msra.mxu0 %v442_v48  ;;  %v3140_v34 = vpop.permute.xlu1 %3139  ;;  %v482_v29 = vsel %vm476_vm4, %v3132_v9, %v3082_v17  ;;  %v491_v31 = vpack.c.bf16 %v484_v53, %v483_v41 }
  0xcd   :  { %v3142_v63 = vunpack.i.h.bf16 %v3140_v34  ;;  %v3141_v60 = vunpack.i.l.bf16 %v3140_v34  ;;  %v3135_v57 = vpop.permute.xlu0 %3134  ;;  %v492_v7 = vpack.c.bf16 %v482_v29, %v481_v10  ;;  %v646_v44 = vpack.c.bf16 %v631_v36, %v630_v32 }
  0xce   :  { %v3137_v37 = vunpack.i.h.bf16 %v3135_v57  ;;  %v3136_v58 = vunpack.i.l.bf16 %v3135_v57  ;;  %v6844_v9 = vunpack.i.h.bf16 %v4271_v30  ;;  %v6846_v48 = vunpack.i.l.bf16 %v4309_v52 }
  0xcf   :  { %832 = vmatprep.subr.bf16.mxu0 %v492_v7  ;;  %884 = vmatpush1.bf16.msra.mxu1 %v646_v44  ;;  %v6847_v30 = vunpack.i.h.bf16 %v4309_v52 }
  0xd0   :  { %v680_v55 = vsel %vm678_vm8, %v3142_v63, %v3137_v37  ;;  %v679_v21 = vsel %vm678_vm8, %v3141_v60, %v3136_v58  ;;  %833 = vmatpush1.bf16.msra.mxu0 %v491_v31  ;;  %v3150_v56 = vpop.permute.xlu1 %3149  ;;  %v689_v17 = vsel %vm678_vm8, %v3136_v58, %v3041_v43  ;;  %v690_v25 = vsel %vm678_vm8, %v3137_v37, %v3042_v39 }
  0xd1   :  { %v3152_v51 = vunpack.i.h.bf16 %v3150_v56  ;;  %v3151_v33 = vunpack.i.l.bf16 %v3150_v56  ;;  %v3145_v49 = vpop.permute.xlu0 %3144  ;;  %834 = vmatprep.subr.bf16.mxu0 %v4013_v18  ;;  %v696_v40 = vpack.c.bf16 %v690_v25, %v689_v17  ;;  %v695_v23 = vpack.c.bf16 %v680_v55, %v679_v21 }
  0xd2   :  { %v3147_v62 = vunpack.i.h.bf16 %v3145_v49  ;;  %v3146_v24 = vunpack.i.l.bf16 %v3145_v49  ;;  %v6860_v49 = vlaneseq }
  0xd3   :  { %885 = vmatprep.subr.bf16.mxu1 %v696_v40  ;;  %v583_v42 = vsel %vm580_vm6, %v3151_v33, %v3111_v61  ;;  %v586_v61 = vsel %vm580_vm6, %v6843_v16, %v3152_v51 }
  0xd4   :  { %v537_v43 = vsel %vm531_vm5, %v6840_v27, %v3147_v62  ;;  %v536_v39 = vsel %vm531_vm5, %v6841_v26, %v3146_v24  ;;  %835 = vmatpush1.bf16.msra.mxu0 %v4024_v20  ;;  %886 = vmatpush1.bf16.msra.mxu1 %v695_v23  ;;  %v534_v18 = vsel %vm531_vm5, %v3146_v24, %v3096_v13  ;;  %v3160_v2 = vpop.permute.xlu1 %3159  ;;  %v4652_v40 = vshrl.u32 %v6860_v49, 7 }
  0xd5   :  { %v3155_v28 = vpop.permute.xlu0 %3154  ;;  %v535_v35 = vsel %vm531_vm5, %v3147_v62, %v3097_v19  ;;  %v546_v1 = vpack.c.bf16 %v537_v43, %v536_v39  ;;  %v584_v20 = vsel %vm580_vm6, %v3152_v51, %v3112_v54  ;;  %v585_v19 = vsel %vm580_vm6, %v6842_v47, %v3151_v33  ;;  %v4658_v62 = vld [vmem:[%s6751_s1] sm:$0x3f] }
  0xd6   :  { %v3157_v3 = vunpack.i.h.bf16 %v3155_v28  ;;  %v3156_v13 = vunpack.i.l.bf16 %v3155_v28  ;;  %v547_v12 = vpack.c.bf16 %v535_v35, %v534_v18  ;;  %v596_v59 = vpack.c.bf16 %v584_v20, %v583_v42 }
  0xd7   :  { %902 = vmatmul.mubr.bf16.vlgmr.msra.gmra.mrb[16].mxu1 %v4336_v50  ;;  %v3162_v11 = vunpack.i.h.bf16 %v3160_v2  ;;  %v3161_v54 = vunpack.i.l.bf16 %v3160_v2  ;;  %v595_v8 = vpack.c.bf16 %v586_v61, %v585_v19  ;;  %v279_v23 = vsub.s32 4, %v4652_v40 }
  0xd8   :  { %836 = vmatprep.subr.bf16.mxu0 %v547_v12  ;;  %v632_v22 = vsel %vm629_vm7, %v3156_v13, %v3126_v15  ;;  %v633_v6 = vsel %vm629_vm7, %v3157_v3, %v3127_v5  ;;  %v635_v14 = vsel %vm629_vm7, %v6844_v9, %v3157_v3  ;;  %v634_v45 = vsel %vm629_vm7, %v6845_v4, %v3156_v13 }
  0xd9   :  { %837 = vmatpush1.bf16.msra.mxu0 %v546_v1  ;;  %v645_v0 = vpack.c.bf16 %v633_v6, %v632_v22  ;;  %v681_v46 = vsel %vm678_vm8, %v3161_v54, %v3141_v60  ;;  %v682_v5 = vsel %vm678_vm8, %v3162_v11, %v3142_v63  ;;  %v644_v15 = vpack.c.bf16 %v635_v14, %v634_v45 }
  0xda   :  { %838 = vmatprep.subr.bf16.mxu0 %v596_v59  ;;  %v683_v41 = vsel %vm678_vm8, %v6846_v48, %v3161_v54  ;;  %v684_v53 = vsel %vm678_vm8, %v6847_v30, %v3162_v11  ;;  %v694_v10 = vpack.c.bf16 %v682_v5, %v681_v46  ;;  %v4661_v24 = vrot.slane %v4658_v62, %v279_v23 }
  0xdb   :  { %v693_v36 = vpack.c.bf16 %v684_v53, %v683_v41  ;;  %v275_v18 = vsub.s32 3, %v4652_v40  ;;  %v263_v35 = vsub.s32 0, %v4652_v40  ;;  %v267_v1 = vsub.s32 1, %v4652_v40 }
  0xdc   :  { %v283_v48 = vsub.s32 5, %v4652_v40 }
  0xdd   :  { %839 = vmatpush1.bf16.msra.mxu0 %v595_v8  ;;  %v4673_v28 = vrot.slane %v4658_v62, %v275_v18  ;;  %v4680_v13 = vrot.slane %v4658_v62, %v263_v35  ;;  %v4683_v47 = vrot.slane %v4658_v62, %v267_v1 }
  0xde   :  { %840 = vmatprep.subr.bf16.mxu0 %v645_v0 }
  0xdf   :  { %6865 = vst [vmem:[#allocation22_spill] sm:$0xff] %v4673_v28 }
  0xe1   :  { %841 = vmatpush1.bf16.msra.mxu0 %v644_v15  ;;  %v4611_v32 = vpop.f32.mrb[0].mxu1 }
  0xe2   :  { %842 = vmatprep.subr.bf16.mxu0 %v694_v10  ;;  %6848 = vst [vmem:[#allocation6_spill] sm:$0xff] %v4611_v32  ;;  %v4613_v34 = vpop.f32.mrb[1].mxu1  ;;  %v4729_v10 = vrot.slane %v4658_v62, %v283_v48 }
  0xe3   :  { %6849 = vst [vmem:[#allocation7_spill] sm:$0xff] %v4613_v34  ;;  %v4615_v29 = vpop.f32.mrb[2].mxu1  ;;  %v4635_v58 = vpop.f32.mrb[0].mxu0 }
  0xe4   :  { %6850 = vst [vmem:[#allocation8_spill] sm:$0xff] %v4615_v29  ;;  %v4617_v31 = vpop.f32.mrb[3].mxu1  ;;  %v4637_v55 = vpop.f32.mrb[1].mxu0  ;;  %6866 = vst [vmem:[#allocation23_spill] sm:$0xff] %v4729_v10 }
  0xe5   :  { %843 = vmatpush1.bf16.msra.mxu0 %v693_v36  ;;  %6851 = vst [vmem:[#allocation9_spill] sm:$0xff] %v4617_v31  ;;  %v4639_v21 = vpop.f32.mrb[2].mxu0  ;;  %v4677_v2 = vpop.permute.xlu1 %768 }
  0xe6   :  { %v4641_v56 = vpop.f32.mrb[3].mxu0  ;;  %v764_v42 = vpop.permute.xlu0 %763 }
  0xe8   :  { %859 = vmatmul.mubr.bf16.vlgmr.msra.gmra.mrb[12].mxu0 %v4336_v50 }
  0xe9   :  { %v4619_v63 = vpop.f32.mrb[4].mxu1 }
  0xea   :  { %6852 = vst [vmem:[#allocation10_spill] sm:$0xff] %v4619_v63  ;;  %v4621_v52 = vpop.f32.mrb[5].mxu1 }
  0xeb   :  { %6853 = vst [vmem:[#allocation11_spill] sm:$0xff] %v4621_v52  ;;  %v4623_v60 = vpop.f32.mrb[6].mxu1  ;;  %v4643_v17 = vpop.f32.mrb[4].mxu0 }
  0xec   :  { %6854 = vst [vmem:[#allocation12_spill] sm:$0xff] %v4623_v60  ;;  %v4625_v57 = vpop.f32.mrb[7].mxu1  ;;  %v4645_v25 = vpop.f32.mrb[5].mxu0 }
  0xed   :  { %6855 = vst [vmem:[#allocation13_spill] sm:$0xff] %v4625_v57  ;;  %v4647_v51 = vpop.f32.mrb[6].mxu0 }
  0xee   :  { %v4649_v33 = vpop.f32.mrb[7].mxu0 }
  0xf1   :  { %v4627_v7 = vpop.f32.mrb[8].mxu1 }
  0xf2   :  { %6856 = vst [vmem:[#allocation14_spill] sm:$0xff] %v4627_v7  ;;  %v4629_v44 = vpop.f32.mrb[9].mxu1 }
  0xf3   :  { %6857 = vst [vmem:[#allocation15_spill] sm:$0xff] %v4629_v44  ;;  %v4631_v50 = vpop.f32.mrb[10].mxu1  ;;  %v4663_v27 = vpop.f32.mrb[8].mxu0 }
  0xf4   :  { %6858 = vst [vmem:[#allocation16_spill] sm:$0xff] %v4631_v50  ;;  %v4633_v37 = vpop.f32.mrb[11].mxu1  ;;  %6861 = vst [vmem:[#allocation18_spill] sm:$0xff] %v4663_v27  ;;  %v4665_v43 = vpop.f32.mrb[9].mxu0 }
  0xf5   :  { %6859 = vst [vmem:[#allocation17_spill] sm:$0xff] %v4633_v37  ;;  %6862 = vst [vmem:[#allocation19_spill] sm:$0xff] %v4665_v43  ;;  %v4667_v26 = vpop.f32.mrb[10].mxu0 }
  0xf6   :  { %6863 = vst [vmem:[#allocation20_spill] sm:$0xff] %v4667_v26  ;;  %v4669_v39 = vpop.f32.mrb[11].mxu0 }
  0xf7   :  { %6864 = vst [vmem:[#allocation21_spill] sm:$0xff] %v4669_v39 }
 0x182   :  { %v817_v20 = vpop.f32.mrb[12].mxu1 }
 0x183   :  { %v819_v3 = vpop.f32.mrb[13].mxu1  ;;  %v818_v12 = vadd.f32 %v817_v20, %v764_v42 }
 0x184   :  { %v820_v19 = vadd.f32 %v819_v3, %v764_v42  ;;  %v821_v16 = vpop.f32.mrb[14].mxu1 }
 0x185   :  { %v912_v61 = vmax.f32 %v818_v12, 0.0  ;;  %v822_v59 = vadd.f32 %v821_v16, %v4677_v2  ;;  %v823_v11 = vpop.f32.mrb[15].mxu1 }
 0x186   :  { %v913_v54 = vmax.f32 %v820_v19, 0.0  ;;  %v824_v22 = vadd.f32 %v823_v11, %v4677_v2 }
 0x187   :  { %v4688_v6 = vmul.f32 %v912_v61, %v4680_v13  ;;  %v918_v8 = vmax.f32 %v822_v59, 0.0 }
 0x188   :  { %v4691_v9 = vmul.f32 %v913_v54, %v4683_v47  ;;  %v919_v14 = vmax.f32 %v824_v22, 0.0 }
 0x189   :  { %v4694_v4 = vmul.f32 %v918_v8, %v4680_v13 }
 0x18a   :  { %v4697_v45 = vmul.f32 %v919_v14, %v4683_v47  ;;  %v271_v14 = vsub.s32 2, %v4652_v40 }
 0x18b   :  { %v4701_v0 = vpack.i.bf16 %v4694_v4, %v4688_v6 }
 0x18c   :  { %v4705_v46 = vpack.i.bf16 %v4697_v45, %v4691_v9 }
 0x18d   :  { %3171 = vrot.lane.b32.xlu0 %v4701_v0, %s3931_s24  ;;  %3166 = vrot.lane.b32.xlu1 %v4701_v0, %s3930_s23 }
 0x191   :  { %3181 = vrot.lane.b32.xlu0 %v4701_v0, %s3933_s0  ;;  %3176 = vrot.lane.b32.xlu1 %v4701_v0, %s3932_s29 }
 0x195   :  { %3186 = vrot.lane.b32.xlu0 %v4705_v46, %s3930_s23  ;;  %3191 = vrot.lane.b32.xlu1 %v4705_v46, %s3931_s24 }
 0x199   :  { %3196 = vrot.lane.b32.xlu0 %v4705_v46, %s3932_s29  ;;  %3201 = vrot.lane.b32.xlu1 %v4705_v46, %s3933_s0 }
 0x1aa   :  { %v903_v41 = vpop.f32.mrb[16].mxu1 }
 0x1ab   :  { %v904_v30 = vadd.f32 %v903_v41, %v764_v42  ;;  %v905_v53 = vpop.f32.mrb[17].mxu1 }
 0x1ac   :  { %v906_v36 = vadd.f32 %v905_v53, %v764_v42  ;;  %v907_v49 = vpop.f32.mrb[18].mxu1 }
 0x1ad   :  { %v916_v23 = vmax.f32 %v904_v30, 0.0  ;;  %v908_v18 = vadd.f32 %v907_v49, %v4677_v2  ;;  %v909_v35 = vpop.f32.mrb[19].mxu1  ;;  %v4760_v49 = vrot.slane %v4658_v62, %v271_v14 }
 0x1ae   :  { %v917_v1 = vmax.f32 %v906_v36, 0.0  ;;  %v910_v20 = vadd.f32 %v909_v35, %v4677_v2 }
 0x1af   :  { %v4734_v3 = vmul.f32 %v916_v23, %v4661_v24  ;;  %v922_v12 = vmax.f32 %v908_v18, 0.0  ;;  %6867 = vst [vmem:[#allocation24_spill] sm:$0xff] %v4760_v49 }
 0x1b0   :  { %v4737_v19 = vmul.f32 %v917_v1, %v4729_v10  ;;  %v923_v16 = vmax.f32 %v910_v20, 0.0 }
 0x1b1   :  { %v4740_v61 = vmul.f32 %v922_v12, %v4661_v24 }
 0x1b2   :  { %v4743_v59 = vmul.f32 %v923_v16, %v4729_v10 }
 0x1b3   :  { %v4747_v11 = vpack.i.bf16 %v4740_v61, %v4734_v3 }
 0x1b4   :  { %v3205_v54 = vpack.i.bf16 %v4743_v59, %v4737_v19 }
 0x1b6   :  { %3206 = vrot.lane.b32.xlu1 %v3205_v54, %s3930_s23 }
 0x1ba   :  { %3211 = vrot.lane.b32.xlu1 %v4705_v46, %s3934_s8 }
 0x1bb   :  { %v860_v48 = vpop.f32.mrb[12].mxu0 }
 0x1bc   :  { %v861_v41 = vadd.f32 %v860_v48, %v764_v42  ;;  %v862_v30 = vpop.f32.mrb[13].mxu0 }
 0x1bd   :  { %v863_v53 = vadd.f32 %v862_v30, %v764_v42  ;;  %v864_v36 = vpop.f32.mrb[14].mxu0 }
 0x1be   :  { %v914_v23 = vmax.f32 %v861_v41, 0.0  ;;  %v865_v18 = vadd.f32 %v864_v36, %v4677_v2  ;;  %v866_v35 = vpop.f32.mrb[15].mxu0  ;;  %3226 = vrot.lane.b32.xlu1 %v3205_v54, %s3932_s29 }
 0x1bf   :  { %v915_v1 = vmax.f32 %v863_v53, 0.0  ;;  %v867_v40 = vadd.f32 %v866_v35, %v4677_v2  ;;  %v4812_v53 = vld [vmem:[%s6752_s2 + $0x14] ss:$8 sps:$4 sm:$0xff]  }
 0x1c0   :  { %v920_v20 = vmax.f32 %v865_v18, 0.0  ;;  %v4766_v16 = vmul.f32 %v914_v23, %v4760_v49  ;;  %2896 = vmatprep.mubr.msk.bf16.mxu0 %vm94_vm0, %v4812_v53  ;;  %2897 = vmatprep.mubr.msk.bf16.mxu1 %vm94_vm0, %v4812_v53 }
 0x1c1   :  { %v921_v12 = vmax.f32 %v867_v40, 0.0  ;;  %v4774_v62 = vmul.f32 %v915_v1, %v4673_v28  ;;  %v30_v1 = vld [vmem:[%s6753_s3 + $0x40] sm:$0xff] }
 0x1c2   :  { %v4769_v42 = vmul.f32 %v920_v20, %v4760_v49  ;;  %3231 = vrot.lane.b32.xlu1 %v4701_v0, %s3934_s8 }
 0x1c3   :  { %v4777_v14 = vmul.f32 %v921_v12, %v4673_v28 }
 0x1c4   :  { %v3215_v2 = vpack.i.bf16 %v4769_v42, %v4766_v16 }
 0x1c5   :  { %v3290_v48 = vpack.i.bf16 %v4777_v14, %v4774_v62 }
 0x1c6   :  { %3216 = vrot.lane.b32.xlu0 %v3215_v2, %s3934_s8  ;;  %3241 = vrot.lane.b32.xlu1 %v3215_v2, %s3935_s9 }
 0x1ca   :  { %3221 = vrot.lane.b32.xlu0 %v3205_v54, %s3931_s24  ;;  %3256 = vrot.lane.b32.xlu1 %v4705_v46, %s3936_s10 }
 0x1ce   :  { %3236 = vrot.lane.b32.xlu0 %v4705_v46, %s3935_s9  ;;  %3266 = vrot.lane.b32.xlu1 %v4701_v0, %s3936_s10 }
 0x1d2   :  { %3246 = vrot.lane.b32.xlu0 %v3205_v54, %s3933_s0  ;;  %3276 = vrot.lane.b32.xlu1 %v3215_v2, %s3937_s13 }
 0x1d6   :  { %3251 = vrot.lane.b32.xlu0 %v4701_v0, %s3935_s9  ;;  %3286 = vrot.lane.b32.xlu1 %v4747_v11, %s3930_s23 }
 0x1da   :  { %3261 = vrot.lane.b32.xlu0 %v3215_v2, %s3936_s10  ;;  %3296 = vrot.lane.b32.xlu1 %v4747_v11, %s3931_s24 }
 0x1de   :  { %3271 = vrot.lane.b32.xlu0 %v4705_v46, %s3937_s13  ;;  %3306 = vrot.lane.b32.xlu1 %v4747_v11, %s3932_s29  ;;  %v1388_v46 = vld [vmem:[%s6753_s3 + $0x10] sm:$0xff] }
 0x1e2   :  { %3281 = vrot.lane.b32.xlu0 %v4701_v0, %s3937_s13  ;;  %3316 = vrot.lane.b32.xlu1 %v4747_v11, %s3933_s0 }
 0x1e6   :  { %3291 = vrot.lane.b32.xlu0 %v3290_v48, %s3930_s23  ;;  %3326 = vrot.lane.b32.xlu1 %v3215_v2, %s3930_s23 }
 0x1ea   :  { %3301 = vrot.lane.b32.xlu0 %v3290_v48, %s3931_s24  ;;  %3331 = vrot.lane.b32.xlu1 %v4747_v11, %s3934_s8 }
 0x1ee   :  { %3311 = vrot.lane.b32.xlu0 %v3290_v48, %s3932_s29  ;;  %3351 = vrot.lane.b32.xlu1 %v3215_v2, %s3932_s29 }
 0x1f2   :  { %3321 = vrot.lane.b32.xlu0 %v3290_v48, %s3933_s0  ;;  %3356 = vrot.lane.b32.xlu1 %v3205_v54, %s3935_s9 }
 0x1f6   :  { %3336 = vrot.lane.b32.xlu0 %v3215_v2, %s3931_s24  ;;  %3361 = vrot.lane.b32.xlu1 %v4747_v11, %s3936_s10 }
 0x1fa   :  { %3341 = vrot.lane.b32.xlu0 %v3205_v54, %s3934_s8  ;;  %3376 = vrot.lane.b32.xlu1 %v3205_v54, %s3937_s13 }
 0x1fe   :  { %3346 = vrot.lane.b32.xlu0 %v4747_v11, %s3935_s9  ;;  %3386 = vrot.lane.b32.xlu1 %v3290_v48, %s3934_s8 }
 0x1ff   :  { %v4839_v0 = vpop.permute.xlu0 %3171  ;;  %v3167_v23 = vpop.permute.xlu1 %3166 }
 0x200   :  { %v3169_v18 = vunpack.i.h.bf16 %v3167_v23  ;;  %v3168_v35 = vunpack.i.l.bf16 %v3167_v23  ;;  %v31_v23 = vld [vmem:[%s6753_s3 + $0x48] sm:$0xff] }
 0x202   :  { %3366 = vrot.lane.b32.xlu0 %v3205_v54, %s3936_s10  ;;  %3396 = vrot.lane.b32.xlu1 %v3290_v48, %s3936_s10 }
 0x203   :  { %v4846_v36 = vpop.permute.xlu0 %3181 }
 0x206   :  { %3371 = vrot.lane.b32.xlu0 %v3215_v2, %s3933_s0  ;;  %1392 = vperm.xlu1 %3164, %v1388_v46  }
 0x207   :  { %v4852_v40 = vpop.permute.xlu0 %3186 }
 0x208   :  { %v6765_v54 = vunpack.i.h.bf16 %v4852_v40  ;;  %v6764_v20 = vunpack.i.l.bf16 %v4852_v40 }
 0x20a   :  { %3381 = vrot.lane.b32.xlu0 %v4747_v11, %s3937_s13  ;;  %36 = vperm.xlu1 %3164, %v30_v1   ;;  %v968_v12 = vsel %vm329_vm1, %v3168_v35, %v6764_v20  ;;  %v969_v2 = vsel %vm329_vm1, %v3169_v18, %v6765_v54  ;;  %v1389_v11 = vld [vmem:[%s6753_s3 + $0x18] sm:$0xff]  ;;  %v3177_v1 = vpop.permute.xlu1 %3176 }
 0x20b   :  { %v973_v46 = vpack.c.bf16 %v969_v2, %v968_v12  ;;  %v3174_v12 = vunpack.i.h.bf16 %v4839_v0  ;;  %v3173_v2 = vunpack.i.l.bf16 %v4839_v0  ;;  %v4906_v26 = vpop.permute.xlu0 %3196  ;;  %v3178_v27 = vunpack.i.l.bf16 %v3177_v1 }
 0x20c   :  { %v6868_v50 = vunpack.i.l.bf16 %v4906_v26 }
 0x20d   :  { %1412 = vmatprep.subr.bf16.mxu0 %v973_v46 }
 0x20e   :  { %3391 = vrot.lane.b32.xlu0 %v3290_v48, %s3935_s9  ;;  %v4874_v30 = vpop.permute.xlu1 %3191 }
 0x20f   :  { %v6766_v46 = vunpack.i.l.bf16 %v4874_v30 }
 0x212   :  { %3401 = vrot.lane.b32.xlu0 %v3290_v48, %s3937_s13  ;;  %v4876_v41 = vpop.permute.xlu1 %3201  ;;  %v6767_v48 = vunpack.i.h.bf16 %v4874_v30 }
 0x214   :  { %v1017_v0 = vsel %vm378_vm2, %v3174_v12, %v6767_v48 }
 0x216   :  { %1397 = vperm.xlu0 %3163, %v1389_v11  }
 0x21a   :  { %41 = vperm.xlu0 %3163, %v31_v23   ;;  %v1016_v23 = vsel %vm378_vm2, %v3173_v2, %v6766_v46 }
 0x21b   :  { %v1021_v39 = vpack.c.bf16 %v1017_v0, %v1016_v23 }
 0x228   :  { %v4882_v8 = vpop.permute.xlu1 %3206 }
 0x229   :  { %v6769_v11 = vunpack.i.h.bf16 %v4882_v8  ;;  %v6768_v22 = vunpack.i.l.bf16 %v4882_v8 }
 0x22b   :  { %v970_v20 = vsel %vm329_vm1, %v6768_v22, %v3168_v35  ;;  %v971_v54 = vsel %vm329_vm1, %v6769_v11, %v3169_v18  ;;  %v3179_v22 = vunpack.i.h.bf16 %v3177_v1 }
 0x22c   :  { %v4902_v15 = vpop.permute.xlu1 %3211  ;;  %v972_v5 = vpack.c.bf16 %v971_v54, %v970_v20  ;;  %v3184_v54 = vunpack.i.h.bf16 %v4846_v36 }
 0x22e   :  { %1413 = vmatpush1.bf16.msra.mxu0 %v972_v5  ;;  %v6869_v5 = vunpack.i.h.bf16 %v4906_v26 }
 0x22f   :  { %1414 = vmatprep.subr.bf16.mxu0 %v1021_v39  ;;  %v3183_v39 = vunpack.i.l.bf16 %v4846_v36  ;;  %v1064_v36 = vsel %vm427_vm3, %v3178_v27, %v6868_v50  ;;  %v6870_v50 = vunpack.i.l.bf16 %v4876_v41 }
 0x230   :  { %v4904_v46 = vpop.permute.xlu1 %3226  ;;  %v1065_v20 = vsel %vm427_vm3, %v3179_v22, %v6869_v5 }
 0x231   :  { %v1112_v29 = vsel %vm476_vm4, %v3183_v39, %v6870_v50  ;;  %v6871_v5 = vunpack.i.l.bf16 %v4904_v46 }
 0x233   :  { %v1066_v34 = vsel %vm427_vm3, %v6871_v5, %v3178_v27 }
 0x234   :  { %v4908_v48 = vpop.permute.xlu1 %3231 }
 0x238   :  { %v4910_v43 = vpop.permute.xlu0 %3216  ;;  %v4912_v35 = vpop.permute.xlu1 %3241 }
 0x239   :  { %v6775_v27 = vunpack.i.h.bf16 %v4910_v43  ;;  %v6774_v5 = vunpack.i.l.bf16 %v4910_v43 }
 0x23c   :  { %v4920_v23 = vpop.permute.xlu0 %3221  ;;  %v4922_v0 = vpop.permute.xlu1 %3256 }
 0x23d   :  { %v6771_v18 = vunpack.i.h.bf16 %v4920_v23  ;;  %v6770_v11 = vunpack.i.l.bf16 %v4920_v23  ;;  %v6884_v10 = vunpack.i.l.bf16 %v4920_v23 }
 0x23f   :  { %v1018_v37 = vsel %vm378_vm2, %v6770_v11, %v3173_v2  ;;  %v1019_v1 = vsel %vm378_vm2, %v6771_v18, %v3174_v12  ;;  %v6872_v2 = vunpack.i.h.bf16 %v4904_v46  ;;  %v1069_v12 = vpack.c.bf16 %v1065_v20, %v1064_v36 }
 0x240   :  { %v3237_v44 = vpop.permute.xlu0 %3236  ;;  %v4944_v7 = vpop.permute.xlu1 %3266  ;;  %v1020_v31 = vpack.c.bf16 %v1019_v1, %v1018_v37  ;;  %v6873_v18 = vunpack.i.h.bf16 %v4876_v41  ;;  %v3214_v36 = vunpack.i.h.bf16 %v4902_v15 }
 0x241   :  { %v1067_v11 = vsel %vm427_vm3, %v6872_v2, %v3179_v22 }
 0x242   :  { %v1113_v37 = vsel %vm476_vm4, %v3184_v54, %v6873_v18  ;;  %1415 = vmatpush1.bf16.msra.mxu0 %v1020_v31  ;;  %v1068_v32 = vpack.c.bf16 %v1067_v11, %v1066_v34  ;;  %v3213_v31 = vunpack.i.l.bf16 %v4902_v15  ;;  %v6777_v18 = vunpack.i.l.bf16 %v4908_v48 }
 0x243   :  { %1416 = vmatprep.subr.bf16.mxu0 %v1069_v12  ;;  %v1117_v28 = vpack.c.bf16 %v1113_v37, %v1112_v29  ;;  %v6779_v11 = vunpack.i.h.bf16 %v4908_v48  ;;  %v3239_v12 = vunpack.i.h.bf16 %v3237_v44  ;;  %v3238_v37 = vunpack.i.l.bf16 %v3237_v44 }
 0x244   :  { %v4962_v1 = vpop.permute.xlu0 %3246  ;;  %v4964_v50 = vpop.permute.xlu1 %3276  ;;  %v6780_v44 = vunpack.i.l.bf16 %v4912_v35 }
 0x245   :  { %v6776_v22 = vunpack.i.h.bf16 %v4962_v1  ;;  %v6778_v20 = vunpack.i.l.bf16 %v4962_v1 }
 0x246   :  { %1417 = vmatpush1.bf16.msra.mxu0 %v1068_v32 }
 0x247   :  { %v1114_v34 = vsel %vm476_vm4, %v6778_v20, %v3183_v39  ;;  %v1115_v29 = vsel %vm476_vm4, %v6776_v22, %v3184_v54  ;;  %1418 = vmatprep.subr.bf16.mxu0 %v1117_v28  ;;  %v1170_v39 = vsel %vm531_vm5, %v3213_v31, %v6774_v5  ;;  %v1171_v54 = vsel %vm531_vm5, %v3214_v36, %v6775_v27 }
 0x248   :  { %v4982_v2 = vpop.permute.xlu0 %3251  ;;  %v4984_v32 = vpop.permute.xlu1 %3286  ;;  %v1116_v15 = vpack.c.bf16 %v1115_v29, %v1114_v34  ;;  %v1172_v28 = vsel %vm531_vm5, %v6777_v18, %v3213_v31  ;;  %v6874_v29 = vpack.c.bf16 %v4697_v45, %v4691_v9  ;;  %v1173_v5 = vsel %vm531_vm5, %v6779_v11, %v3214_v36 }
 0x249   :  { %v6781_v27 = vunpack.i.l.bf16 %v4982_v2  ;;  %v1177_v18 = vpack.c.bf16 %v1171_v54, %v1170_v39  ;;  %v1218_v9 = vsel %vm580_vm6, %v3238_v37, %v6780_v44  ;;  %v6875_v45 = vunpack.i.h.bf16 %v4912_v35 }
 0x24a   :  { %1419 = vmatpush1.bf16.msra.mxu0 %v1116_v15  ;;  %v6782_v15 = vunpack.i.h.bf16 %v4982_v2  ;;  %v3259_v39 = vunpack.i.h.bf16 %v4922_v0  ;;  %v3258_v54 = vunpack.i.l.bf16 %v4922_v0  ;;  %v1176_v20 = vpack.c.bf16 %v1173_v5, %v1172_v28 }
 0x24b   :  { %1420 = vmatprep.subr.bf16.mxu0 %v6874_v29  ;;  %v1219_v36 = vsel %vm580_vm6, %v3239_v12, %v6875_v45  ;;  %v6876_v29 = vpack.c.bf16 %v4694_v4, %v4688_v6  ;;  %v6785_v34 = vunpack.i.l.bf16 %v4944_v7  ;;  %v1220_v44 = vsel %vm580_vm6, %v6781_v27, %v3238_v37 }
 0x24c   :  { %v5009_v22 = vpop.permute.xlu0 %3261  ;;  %v5011_v31 = vpop.permute.xlu1 %3296  ;;  %v1221_v6 = vsel %vm580_vm6, %v6782_v15, %v3239_v12  ;;  %v1225_v0 = vpack.c.bf16 %v1219_v36, %v1218_v9  ;;  %v3289_v15 = vunpack.i.h.bf16 %v4984_v32  ;;  %v3288_v9 = vunpack.i.l.bf16 %v4984_v32 }
 0x24d   :  { %v6877_v5 = vunpack.i.l.bf16 %v5009_v22  ;;  %v6878_v28 = vunpack.i.h.bf16 %v5009_v22  ;;  %v1268_v36 = vsel %vm629_vm7, %v6785_v34, %v3258_v54  ;;  %v1224_v27 = vpack.c.bf16 %v1221_v6, %v1220_v44 }
 0x24e   :  { %1421 = vmatpush1.bf16.msra.mxu0 %v6876_v29  ;;  %v6881_v34 = vunpack.i.h.bf16 %v4964_v50  ;;  %v3298_v57 = vunpack.i.l.bf16 %v5011_v31  ;;  %v6882_v44 = vunpack.i.l.bf16 %v4882_v8 }
 0x24f   :  { %1422 = vmatprep.subr.bf16.mxu0 %v1177_v18  ;;  %v1266_v18 = vsel %vm629_vm7, %v3258_v54, %v6877_v5  ;;  %v1267_v37 = vsel %vm629_vm7, %v3259_v39, %v6878_v28 }
 0x250   :  { %v3272_v4 = vpop.permute.xlu0 %3271  ;;  %v5038_v45 = vpop.permute.xlu1 %3306  ;;  %v1273_v12 = vpack.c.bf16 %v1267_v37, %v1266_v18  ;;  %v960_v6 = vsel %vm329_vm1, %v3288_v9, %v6882_v44  ;;  %v6883_v18 = vunpack.i.h.bf16 %v4882_v8 }
 0x251   :  { %v3274_v29 = vunpack.i.h.bf16 %v3272_v4  ;;  %v3273_v11 = vunpack.i.l.bf16 %v3272_v4  ;;  %v6879_v4 = vunpack.i.h.bf16 %v4944_v7 }
 0x252   :  { %1423 = vmatpush1.bf16.msra.mxu0 %v1176_v20  ;;  %v961_v37 = vsel %vm329_vm1, %v3289_v15, %v6883_v18 }
 0x253   :  { %1424 = vmatprep.subr.bf16.mxu0 %v1225_v0  ;;  %v1269_v5 = vsel %vm629_vm7, %v6879_v4, %v3259_v39  ;;  %v6880_v0 = vunpack.i.l.bf16 %v4964_v50  ;;  %v1315_v39 = vsel %vm678_vm8, %v3274_v29, %v6881_v34  ;;  %v3299_v4 = vunpack.i.h.bf16 %v5011_v31 }
 0x254   :  { %v5060_v20 = vpop.permute.xlu0 %3281  ;;  %v5062_v28 = vpop.permute.xlu1 %3316  ;;  %v977_v18 = vpack.c.bf16 %v961_v37, %v960_v6 }
 0x255   :  { %v6789_v49 = vunpack.i.h.bf16 %v5060_v20  ;;  %v6788_v32 = vunpack.i.l.bf16 %v5060_v20  ;;  %v1314_v54 = vsel %vm678_vm8, %v3273_v11, %v6880_v0  ;;  %v1272_v0 = vpack.c.bf16 %v1269_v5, %v1268_v36 }
 0x256   :  { %1425 = vmatpush1.bf16.msra.mxu0 %v1224_v27  ;;  %v1321_v60 = vpack.c.bf16 %v1315_v39, %v1314_v54  ;;  %v3308_v36 = vunpack.i.l.bf16 %v5038_v45  ;;  %v6886_v5 = vunpack.i.h.bf16 %v4852_v40  ;;  %v6887_v39 = vunpack.i.l.bf16 %v4852_v40 }
 0x257   :  { %1426 = vmatprep.subr.bf16.mxu0 %v1273_v12  ;;  %v1316_v34 = vsel %vm678_vm8, %v6788_v32, %v3273_v11  ;;  %v1317_v27 = vsel %vm678_vm8, %v6789_v49, %v3274_v29  ;;  %v1008_v11 = vsel %vm378_vm2, %v3298_v57, %v6884_v10  ;;  %v6885_v32 = vunpack.i.h.bf16 %v4920_v23 }
 0x258   :  { %v3292_v31 = vpop.permute.xlu0 %3291  ;;  %v3327_v12 = vpop.permute.xlu1 %3326  ;;  %v3309_v49 = vunpack.i.h.bf16 %v5038_v45  ;;  %v1320_v37 = vpack.c.bf16 %v1317_v27, %v1316_v34 }
 0x259   :  { %v3294_v44 = vunpack.i.h.bf16 %v3292_v31  ;;  %v3293_v52 = vunpack.i.l.bf16 %v3292_v31  ;;  %v3329_v8 = vunpack.i.h.bf16 %v3327_v12  ;;  %v3328_v63 = vunpack.i.l.bf16 %v3327_v12 }
 0x25a   :  { %1427 = vmatpush1.bf16.msra.mxu0 %v1272_v0  ;;  %v1009_v29 = vsel %vm378_vm2, %v3299_v4, %v6885_v32 }
 0x25b   :  { %v967_v54 = vsel %vm329_vm1, %v6886_v5, %v3329_v8  ;;  %v966_v6 = vsel %vm329_vm1, %v6887_v39, %v3328_v63  ;;  %1428 = vmatprep.subr.bf16.mxu0 %v1321_v60  ;;  %v962_v10 = vsel %vm329_vm1, %v3293_v52, %v3288_v9  ;;  %v964_v45 = vsel %vm329_vm1, %v3328_v63, %v3293_v52  ;;  %v5127_v9 = vld [vmem:[%s6752_s2 + $0x10] ss:$8 sps:$4 sm:$0xff]  }
 0x25c   :  { %v5112_v23 = vpop.permute.xlu0 %3301  ;;  %v5114_v32 = vpop.permute.xlu1 %3331  ;;  %v965_v31 = vsel %vm329_vm1, %v3329_v8, %v3294_v44  ;;  %v963_v40 = vsel %vm329_vm1, %v3294_v44, %v3289_v15  ;;  %v974_v0 = vpack.c.bf16 %v967_v54, %v966_v6  ;;  %v1025_v63 = vpack.c.bf16 %v1009_v29, %v1008_v11 }
 0x25d   :  { %v3304_v12 = vunpack.i.h.bf16 %v5112_v23  ;;  %v3303_v60 = vunpack.i.l.bf16 %v5112_v23  ;;  %v975_v34 = vpack.c.bf16 %v965_v31, %v964_v45  ;;  %v6888_v52 = vunpack.i.l.bf16 %v4904_v46 }
 0x25e   :  { %1429 = vmatpush1.bf16.msra.mxu0 %v1320_v37  ;;  %v3319_v15 = vunpack.i.h.bf16 %v5062_v28  ;;  %v3318_v44 = vunpack.i.l.bf16 %v5062_v28  ;;  %v976_v54 = vpack.c.bf16 %v963_v40, %v962_v10  ;;  %v6889_v39 = vunpack.i.h.bf16 %v4904_v46 }
 0x25f   :  { %1498 = vmatprep.subr.bf16.mxu0 %v977_v18  ;;  %v1056_v27 = vsel %vm427_vm3, %v3308_v36, %v6888_v52  ;;  %1455 = vmatprep.subr.bf16.mxu1 %v975_v34  ;;  %v1010_v18 = vsel %vm378_vm2, %v3303_v60, %v3298_v57  ;;  %v1011_v11 = vsel %vm378_vm2, %v3304_v12, %v3299_v4  ;;  %v6890_v37 = vunpack.i.l.bf16 %v4962_v1 }
 0x260   :  { %v3312_v8 = vpop.permute.xlu0 %3311  ;;  %v3352_v5 = vpop.permute.xlu1 %3351  ;;  %v1057_v6 = vsel %vm427_vm3, %v3309_v49, %v6889_v39  ;;  %1456 = vmatpush1.bf16.msra.mxu1 %v974_v0  ;;  %v1024_v28 = vpack.c.bf16 %v1011_v11, %v1010_v18  ;;  %v6891_v4 = vunpack.i.h.bf16 %v4962_v1  ;;  %v6892_v11 = vunpack.i.l.bf16 %v4874_v30 }
 0x261   :  { %v3314_v29 = vunpack.i.h.bf16 %v3312_v8  ;;  %v3313_v23 = vunpack.i.l.bf16 %v3312_v8  ;;  %1445 = vmatmul.mubr.bf16.vlgmr.msra.gmra.mrb[16].mxu0 %v5127_v9  ;;  %v1073_v10 = vpack.c.bf16 %v1057_v6, %v1056_v27  ;;  %v1104_v57 = vsel %vm476_vm4, %v3318_v44, %v6890_v37 }
 0x262   :  { %1499 = vmatpush1.bf16.msra.mxu0 %v976_v54  ;;  %2898 = vmatprep.mubr.msk.bf16.mxu0 %vm94_vm0, %v4812_v53  ;;  %v1105_v45 = vsel %vm476_vm4, %v3319_v15, %v6891_v4  ;;  %v3353_v52 = vunpack.i.l.bf16 %v3352_v5 }
 0x263   :  { %1500 = vmatprep.subr.bf16.mxu0 %v1025_v63  ;;  %v1058_v31 = vsel %vm427_vm3, %v3313_v23, %v3308_v36  ;;  %v1059_v53 = vsel %vm427_vm3, %v3314_v29, %v3309_v49  ;;  %v3354_v63 = vunpack.i.h.bf16 %v3352_v5  ;;  %v1121_v8 = vpack.c.bf16 %v1105_v45, %v1104_v57 }
 0x264   :  { %v5146_v46 = vpop.permute.xlu0 %3321  ;;  %v3357_v34 = vpop.permute.xlu1 %3356  ;;  %v1072_v1 = vpack.c.bf16 %v1059_v53, %v1058_v31  ;;  %v1060_v5 = vsel %vm427_vm3, %v3353_v52, %v3313_v23  ;;  %v6894_v53 = vunpack.i.h.bf16 %v4906_v26 }
 0x265   :  { %v3324_v40 = vunpack.i.h.bf16 %v5146_v46  ;;  %v3323_v0 = vunpack.i.l.bf16 %v5146_v46  ;;  %v3359_v6 = vunpack.i.h.bf16 %v3357_v34  ;;  %v1061_v18 = vsel %vm427_vm3, %v3354_v63, %v3314_v29 }
 0x266   :  { %1501 = vmatpush1.bf16.msra.mxu0 %v1024_v28  ;;  %v6893_v28 = vunpack.i.h.bf16 %v4874_v30  ;;  %v3358_v29 = vunpack.i.l.bf16 %v3357_v34  ;;  %v1063_v30 = vsel %vm427_vm3, %v6894_v53, %v3354_v63  ;;  %v3334_v34 = vunpack.i.h.bf16 %v5114_v32 }
 0x267   :  { %1502 = vmatprep.subr.bf16.mxu0 %v1073_v10  ;;  %v1106_v36 = vsel %vm476_vm4, %v3323_v0, %v3318_v44  ;;  %v1107_v49 = vsel %vm476_vm4, %v3324_v40, %v3319_v15  ;;  %v6897_v63 = vunpack.i.l.bf16 %v4908_v48 }
 0x268   :  { %v3337_v27 = vpop.permute.xlu0 %3336  ;;  %v5182_v10 = vpop.permute.xlu1 %3361  ;;  %v1120_v45 = vpack.c.bf16 %v1107_v49, %v1106_v36  ;;  %v3333_v36 = vunpack.i.l.bf16 %v5114_v32  ;;  %v6896_v49 = vpack.c.bf16 %v4743_v59, %v4737_v19  ;;  %v6900_v59 = vunpack.i.h.bf16 %v4982_v2 }
 0x269   :  { %v3339_v54 = vunpack.i.h.bf16 %v3337_v27  ;;  %v3338_v39 = vunpack.i.l.bf16 %v3337_v27  ;;  %v6895_v27 = vunpack.i.l.bf16 %v4906_v26 }
 0x26a   :  { %1503 = vmatpush1.bf16.msra.mxu0 %v1072_v1 }
 0x26b   :  { %v1014_v44 = vsel %vm378_vm2, %v6892_v11, %v3338_v39  ;;  %v1015_v15 = vsel %vm378_vm2, %v6893_v28, %v3339_v54  ;;  %1504 = vmatprep.subr.bf16.mxu0 %v1121_v8  ;;  %v1012_v37 = vsel %vm378_vm2, %v3338_v39, %v3303_v60  ;;  %v1013_v23 = vsel %vm378_vm2, %v3339_v54, %v3304_v12 }
 0x26c   :  { %v3342_v57 = vpop.permute.xlu0 %3341  ;;  %v1023_v4 = vpack.c.bf16 %v1013_v23, %v1012_v37  ;;  %v1022_v31 = vpack.c.bf16 %v1015_v15, %v1014_v44  ;;  %v1062_v1 = vsel %vm427_vm3, %v6895_v27, %v3353_v52  ;;  %v1071_v12 = vpack.c.bf16 %v1061_v18, %v1060_v5  ;;  %v3377_v28 = vpop.permute.xlu1 %3376 }
 0x26d   :  { %v3344_v8 = vunpack.i.h.bf16 %v3342_v57  ;;  %v3343_v60 = vunpack.i.l.bf16 %v3342_v57  ;;  %v1070_v54 = vpack.c.bf16 %v1063_v30, %v1062_v1  ;;  %v6898_v39 = vunpack.i.h.bf16 %v4908_v48 }
 0x26e   :  { %1457 = vmatprep.subr.bf16.mxu1 %v1023_v4  ;;  %1505 = vmatpush1.bf16.msra.mxu0 %v1120_v45  ;;  %v6899_v18 = vunpack.i.l.bf16 %v4982_v2  ;;  %v1223_v11 = vsel %vm580_vm6, %v3359_v6, %v6900_v59  ;;  %v6901_v23 = vpack.c.bf16 %v4740_v61, %v4734_v3  ;;  %v3363_v3 = vunpack.i.l.bf16 %v5182_v10 }
 0x26f   :  { %1458 = vmatpush1.bf16.msra.mxu1 %v1022_v31  ;;  %1506 = vmatprep.subr.bf16.mxu0 %v6896_v49  ;;  %v1174_v26 = vsel %vm531_vm5, %v3343_v60, %v6897_v63  ;;  %v1175_v5 = vsel %vm531_vm5, %v3344_v8, %v6898_v39  ;;  %v1164_v44 = vsel %vm531_vm5, %v3333_v36, %v3343_v60  ;;  %v3379_v61 = vunpack.i.h.bf16 %v3377_v28 }
 0x270   :  { %v5205_v52 = vpop.permute.xlu0 %3346  ;;  %1459 = vmatprep.subr.bf16.mxu1 %v1071_v12  ;;  %v1222_v19 = vsel %vm580_vm6, %v3358_v29, %v6899_v18  ;;  %v1165_v48 = vsel %vm531_vm5, %v3334_v34, %v3344_v8  ;;  %v1181_v2 = vpack.c.bf16 %v1175_v5, %v1174_v26  ;;  %v3378_v1 = vunpack.i.l.bf16 %v3377_v28  ;;  %v3387_v60 = vpop.permute.xlu1 %3386 }
 0x271   :  { %v3349_v15 = vunpack.i.h.bf16 %v5205_v52  ;;  %v3348_v37 = vunpack.i.l.bf16 %v5205_v52  ;;  %v1180_v4 = vpack.c.bf16 %v1165_v48, %v1164_v44  ;;  %v1229_v45 = vpack.c.bf16 %v1223_v11, %v1222_v19 }
 0x272   :  { %1507 = vmatpush1.bf16.msra.mxu0 %v6901_v23  ;;  %v3364_v8 = vunpack.i.h.bf16 %v5182_v10  ;;  %v6903_v26 = vunpack.i.h.bf16 %v4944_v7  ;;  %v3389_v59 = vunpack.i.h.bf16 %v3387_v60  ;;  %v3388_v11 = vunpack.i.l.bf16 %v3387_v60 }
 0x273   :  { %1460 = vmatpush1.bf16.msra.mxu1 %v1070_v54  ;;  %1508 = vmatprep.subr.bf16.mxu0 %v1181_v2  ;;  %v1212_v31 = vsel %vm580_vm6, %v3348_v37, %v3358_v29  ;;  %v1213_v53 = vsel %vm580_vm6, %v3349_v15, %v3359_v6  ;;  %v6902_v6 = vunpack.i.l.bf16 %v4944_v7  ;;  %v6904_v44 = vunpack.i.l.bf16 %v5060_v20 }
 0x274   :  { %v3367_v57 = vpop.permute.xlu0 %3366  ;;  %v1228_v49 = vpack.c.bf16 %v1213_v53, %v1212_v31  ;;  %v6905_v7 = vunpack.i.h.bf16 %v5060_v20  ;;  %v6906_v23 = vunpack.i.l.bf16 %v4876_v41 }
 0x275   :  { %v3369_v30 = vunpack.i.h.bf16 %v3367_v57  ;;  %v3368_v27 = vunpack.i.l.bf16 %v3367_v57  ;;  %v1318_v48 = vsel %vm678_vm8, %v3378_v1, %v6904_v44  ;;  %v6907_v57 = vunpack.i.h.bf16 %v4876_v41 }
 0x276   :  { %1509 = vmatpush1.bf16.msra.mxu0 %v1180_v4  ;;  %v1319_v28 = vsel %vm678_vm8, %v3379_v61, %v6905_v7 }
 0x277   :  { %1510 = vmatprep.subr.bf16.mxu0 %v1229_v45  ;;  %v1260_v29 = vsel %vm629_vm7, %v3363_v3, %v3368_v27  ;;  %v1270_v63 = vsel %vm629_vm7, %v3368_v27, %v6902_v6  ;;  %v1271_v54 = vsel %vm629_vm7, %v3369_v30, %v6903_v26  ;;  %v1261_v39 = vsel %vm629_vm7, %v3364_v8, %v3369_v30 }
 0x278   :  { %v3372_v12 = vpop.permute.xlu0 %3371  ;;  %v1277_v19 = vpack.c.bf16 %v1271_v54, %v1270_v63  ;;  %v1276_v30 = vpack.c.bf16 %v1261_v39, %v1260_v29  ;;  %v3397_v29 = vpop.permute.xlu1 %3396  ;;  %v6908_v63 = vpack.c.bf16 %v4777_v14, %v4774_v62  ;;  %v6910_v39 = vunpack.i.l.bf16 %v4910_v43 }
 0x279   :  { %v3374_v5 = vunpack.i.h.bf16 %v3372_v12  ;;  %v3373_v18 = vunpack.i.l.bf16 %v3372_v12  ;;  %v1325_v12 = vpack.c.bf16 %v1319_v28, %v1318_v48  ;;  %v6911_v62 = vpack.c.bf16 %v4769_v42, %v4766_v16 }
 0x27a   :  { %1511 = vmatpush1.bf16.msra.mxu0 %v1228_v49  ;;  %v1166_v49 = vsel %vm531_vm5, %v3388_v11, %v3333_v36  ;;  %v1168_v32 = vsel %vm531_vm5, %v6910_v39, %v3388_v11  ;;  %v6912_v11 = vunpack.i.l.bf16 %v4912_v35  ;;  %v6913_v42 = vunpack.i.h.bf16 %v4912_v35 }
 0x27b   :  { %v1110_v2 = vsel %vm476_vm4, %v6906_v23, %v3373_v18  ;;  %v1111_v4 = vsel %vm476_vm4, %v6907_v57, %v3374_v5  ;;  %1512 = vmatprep.subr.bf16.mxu0 %v1277_v19  ;;  %v1108_v45 = vsel %vm476_vm4, %v3373_v18, %v3323_v0  ;;  %v1109_v20 = vsel %vm476_vm4, %v3374_v5, %v3324_v40 }
 0x27c   :  { %v3382_v31 = vpop.permute.xlu0 %3381  ;;  %v1119_v53 = vpack.c.bf16 %v1109_v20, %v1108_v45  ;;  %v1118_v27 = vpack.c.bf16 %v1111_v4, %v1110_v2  ;;  %v1167_v40 = vsel %vm531_vm5, %v3389_v59, %v3334_v34  ;;  %v3399_v5 = vunpack.i.h.bf16 %v3397_v29 }
 0x27d   :  { %v3384_v60 = vunpack.i.h.bf16 %v3382_v31  ;;  %v3383_v41 = vunpack.i.l.bf16 %v3382_v31  ;;  %v1179_v34 = vpack.c.bf16 %v1167_v40, %v1166_v49  ;;  %v3398_v18 = vunpack.i.l.bf16 %v3397_v29 }
 0x27e   :  { %1461 = vmatprep.subr.bf16.mxu1 %v1119_v53  ;;  %1513 = vmatpush1.bf16.msra.mxu0 %v1276_v30  ;;  %v1263_v7 = vsel %vm629_vm7, %v3399_v5, %v3364_v8  ;;  %v6914_v35 = vunpack.i.h.bf16 %v5009_v22  ;;  %v6915_v2 = vunpack.i.l.bf16 %v5009_v22  ;;  %v6916_v45 = vunpack.i.l.bf16 %v4964_v50 }
 0x27f   :  { %v1308_v0 = vsel %vm678_vm8, %v3383_v41, %v3378_v1  ;;  %v1309_v46 = vsel %vm678_vm8, %v3384_v60, %v3379_v61  ;;  %1462 = vmatpush1.bf16.msra.mxu1 %v1118_v27  ;;  %1514 = vmatprep.subr.bf16.mxu0 %v1325_v12  ;;  %v6909_v1 = vunpack.i.h.bf16 %v4910_v43  ;;  %v6917_v22 = vunpack.i.h.bf16 %v4964_v50 }
 0x280   :  { %v3392_v6 = vpop.permute.xlu0 %3391  ;;  %1463 = vmatprep.subr.bf16.mxu1 %v6908_v63  ;;  %v1324_v36 = vpack.c.bf16 %v1309_v46, %v1308_v0  ;;  %v1265_v23 = vsel %vm629_vm7, %v6914_v35, %v3399_v5  ;;  %v1264_v57 = vsel %vm629_vm7, %v6915_v2, %v3398_v18 }
 0x281   :  { %v3394_v26 = vunpack.i.h.bf16 %v3392_v6  ;;  %v3393_v54 = vunpack.i.l.bf16 %v3392_v6  ;;  %v1169_v61 = vsel %vm531_vm5, %v6909_v1, %v3389_v59  ;;  %v1274_v8 = vpack.c.bf16 %v1265_v23, %v1264_v57 }
 0x282   :  { %1515 = vmatpush1.bf16.msra.mxu0 %v1324_v36  ;;  %v1178_v59 = vpack.c.bf16 %v1169_v61, %v1168_v32 }
 0x283   :  { %1464 = vmatpush1.bf16.msra.mxu1 %v6911_v62  ;;  %v1214_v14 = vsel %vm580_vm6, %v3393_v54, %v3348_v37  ;;  %v1215_v43 = vsel %vm580_vm6, %v3394_v26, %v3349_v15  ;;  %v1216_v16 = vsel %vm580_vm6, %v6912_v11, %v3393_v54  ;;  %v1217_v37 = vsel %vm580_vm6, %v6913_v42, %v3394_v26 }
 0x284   :  { %v3402_v19 = vpop.permute.xlu0 %3401  ;;  %1465 = vmatprep.subr.bf16.mxu1 %v1179_v34  ;;  %v1227_v44 = vpack.c.bf16 %v1215_v43, %v1214_v14  ;;  %v1262_v15 = vsel %vm629_vm7, %v3398_v18, %v3363_v3  ;;  %v1226_v28 = vpack.c.bf16 %v1217_v37, %v1216_v16 }
 0x285   :  { %1531 = vmatmul.mubr.bf16.vlgmr.msra.gmra.mrb[20].mxu0 %v5127_v9  ;;  %v3404_v52 = vunpack.i.h.bf16 %v3402_v19  ;;  %v3403_v48 = vunpack.i.l.bf16 %v3402_v19  ;;  %v1275_v4 = vpack.c.bf16 %v1263_v7, %v1262_v15  ;;  %v5350_v27 = vpop.permute.xlu1 %1392 }
 0x287   :  { %1466 = vmatpush1.bf16.msra.mxu1 %v1178_v59  ;;  %v1310_v10 = vsel %vm678_vm8, %v3403_v48, %v3383_v41  ;;  %v1311_v3 = vsel %vm678_vm8, %v3404_v52, %v3384_v60  ;;  %v1312_v20 = vsel %vm678_vm8, %v6916_v45, %v3403_v48  ;;  %v1313_v31 = vsel %vm678_vm8, %v6917_v22, %v3404_v52  ;;  %v6918_v22 = vld [vmem:[#allocation23_spill] sm:$0xff] }
 0x288   :  { %1467 = vmatprep.subr.bf16.mxu1 %v1227_v44  ;;  %v1323_v53 = vpack.c.bf16 %v1311_v3, %v1310_v10  ;;  %v1322_v30 = vpack.c.bf16 %v1313_v31, %v1312_v20 }
 0x289   :  { %v5354_v41 = vpop.permute.xlu1 %36 }
 0x28a   :  { %v136_v29 = vadd.f32 %v4635_v58, %v5354_v41  ;;  %v138_v36 = vadd.f32 %v4637_v55, %v5354_v41  ;;  %v242_v52 = vadd.f32 %v4643_v17, %v5354_v41 }
 0x28b   :  { %1468 = vmatpush1.bf16.msra.mxu1 %v1226_v28  ;;  %v244_v28 = vadd.f32 %v4645_v25, %v5354_v41 }
 0x28c   :  { %1469 = vmatprep.subr.bf16.mxu1 %v1275_v4 }
 0x28f   :  { %1470 = vmatpush1.bf16.msra.mxu1 %v1274_v8 }
 0x290   :  { %1471 = vmatprep.subr.bf16.mxu1 %v1323_v53 }
 0x293   :  { %1472 = vmatpush1.bf16.msra.mxu1 %v1322_v30 }
 0x295   :  { %v5352_v60 = vpop.permute.xlu0 %1397 }
 0x296   :  { %1488 = vmatmul.mubr.bf16.vlgmr.msra.gmra.mrb[20].mxu1 %v5127_v9 }
 0x299   :  { %v5357_v0 = vpop.permute.xlu0 %41 }
 0x29a   :  { %v140_v61 = vadd.f32 %v4639_v21, %v5357_v0  ;;  %v142_v34 = vadd.f32 %v4641_v56, %v5357_v0  ;;  %v246_v57 = vadd.f32 %v4647_v51, %v5357_v0  ;;  %v248_v3 = vadd.f32 %v4649_v33, %v5357_v0 }
 0x334   :  { %v1446_v12 = vpop.f32.mrb[16].mxu0 }
 0x335   :  { %v1447_v49 = vadd.f32 %v1446_v12, %v5350_v27  ;;  %v1448_v50 = vpop.f32.mrb[17].mxu0 }
 0x336   :  { %v1449_v46 = vadd.f32 %v1448_v50, %v5350_v27  ;;  %v1450_v40 = vpop.f32.mrb[18].mxu0 }
 0x337   :  { %v1541_v6 = vmax.f32 %v1447_v49, 0.0  ;;  %v1451_v9 = vadd.f32 %v1450_v40, %v5352_v60  ;;  %v1452_v63 = vpop.f32.mrb[19].mxu0 }
 0x338   :  { %v1542_v26 = vmax.f32 %v1449_v46, 0.0  ;;  %v1453_v54 = vadd.f32 %v1452_v63, %v5352_v60 }
 0x339   :  { %v1553_v1 = vadd.f32 %v1541_v6, %v136_v29  ;;  %v1547_v39 = vmax.f32 %v1451_v9, 0.0  ;;  %v6919_v6 = vld [vmem:[#allocation10_spill] sm:$0xff] }
 0x33a   :  { %v1554_v32 = vadd.f32 %v1542_v26, %v138_v36  ;;  %v1548_v58 = vmax.f32 %v1453_v54, 0.0  ;;  %v189_v9 = vadd.f32 %v6919_v6, %v5354_v41  ;;  %v6920_v54 = vld [vmem:[#allocation11_spill] sm:$0xff] }
 0x33b   :  { %v1559_v5 = vadd.f32 %v1547_v39, %v140_v61  ;;  %v5371_v62 = vmul.f32 %v1553_v1, %v4680_v13  ;;  %v191_v1 = vadd.f32 %v6920_v54, %v5354_v41 }
 0x33c   :  { %v1560_v18 = vadd.f32 %v1548_v58, %v142_v34  ;;  %v5377_v14 = vmul.f32 %v1554_v32, %v4683_v47  ;;  %v6921_v34 = vld [vmem:[#allocation12_spill] sm:$0xff] }
 0x33d   :  { %v5374_v55 = vmul.f32 %v1559_v5, %v4680_v13  ;;  %v193_v58 = vadd.f32 %v6921_v34, %v5357_v0 }
 0x33e   :  { %v5380_v43 = vmul.f32 %v1560_v18, %v4683_v47  ;;  %v6922_v18 = vld [vmem:[#allocation13_spill] sm:$0xff] }
 0x33f   :  { %v5384_v21 = vpack.i.bf16 %v5374_v55, %v5371_v62  ;;  %v1769_v59 = vpack.c.bf16 %v5374_v55, %v5371_v62 }
 0x340   :  { %v5388_v56 = vpack.i.bf16 %v5380_v43, %v5377_v14  ;;  %v1770_v19 = vpack.c.bf16 %v5380_v43, %v5377_v14 }
 0x341   :  { %3411 = vrot.lane.b32.xlu0 %v5384_v21, %s3931_s24  ;;  %3406 = vrot.lane.b32.xlu1 %v5384_v21, %s3930_s23 }
 0x345   :  { %3421 = vrot.lane.b32.xlu0 %v5384_v21, %s3933_s0  ;;  %3416 = vrot.lane.b32.xlu1 %v5384_v21, %s3932_s29 }
 0x349   :  { %3426 = vrot.lane.b32.xlu0 %v5388_v56, %s3930_s23  ;;  %3431 = vrot.lane.b32.xlu1 %v5388_v56, %s3931_s24 }
 0x34d   :  { %3436 = vrot.lane.b32.xlu0 %v5388_v56, %s3932_s29  ;;  %3441 = vrot.lane.b32.xlu1 %v5388_v56, %s3933_s0 }
 0x358   :  { %v1532_v11 = vpop.f32.mrb[20].mxu0 }
 0x359   :  { %v1533_v16 = vadd.f32 %v1532_v11, %v5350_v27  ;;  %v1534_v42 = vpop.f32.mrb[21].mxu0  ;;  %v195_v11 = vadd.f32 %v6922_v18, %v5357_v0 }
 0x35a   :  { %v1535_v37 = vadd.f32 %v1534_v42, %v5350_v27  ;;  %v1536_v44 = vpop.f32.mrb[22].mxu0 }
 0x35b   :  { %v1545_v48 = vmax.f32 %v1533_v16, 0.0  ;;  %v1537_v15 = vadd.f32 %v1536_v44, %v5352_v60  ;;  %v1538_v7 = vpop.f32.mrb[23].mxu0  ;;  %v6923_v44 = vld [vmem:[#allocation24_spill] sm:$0xff] }
 0x35c   :  { %v1546_v35 = vmax.f32 %v1535_v37, 0.0  ;;  %v1539_v23 = vadd.f32 %v1538_v7, %v5352_v60 }
 0x35d   :  { %v1557_v2 = vadd.f32 %v1545_v48, %v242_v52  ;;  %v1551_v4 = vmax.f32 %v1537_v15, 0.0  ;;  %v6924_v52 = vld [vmem:[#allocation22_spill] sm:$0xff] }
 0x35e   :  { %v1558_v10 = vadd.f32 %v1546_v35, %v244_v28  ;;  %v1552_v17 = vmax.f32 %v1539_v23, 0.0  ;;  %v5513_v23 = vld [vmem:[%s6752_s2 + $0x24] ss:$8 sps:$4 sm:$0xff]  }
 0x35f   :  { %v1563_v8 = vadd.f32 %v1551_v4, %v246_v57  ;;  %v5423_v20 = vmul.f32 %v1557_v2, %v4661_v24  ;;  %2901 = vmatprep.mubr.msk.bf16.mxu1 %vm94_vm0, %v5513_v23  ;;  %2902 = vmatprep.mubr.msk.bf16.mxu0 %vm94_vm0, %v5513_v23 }
 0x360   :  { %v1564_v45 = vadd.f32 %v1552_v17, %v248_v3  ;;  %v5429_v31 = vmul.f32 %v1558_v10, %v6918_v22 }
 0x361   :  { %v5426_v25 = vmul.f32 %v1563_v8, %v4661_v24 }
 0x362   :  { %v5432_v53 = vmul.f32 %v1564_v45, %v6918_v22 }
 0x363   :  { %v5436_v51 = vpack.i.bf16 %v5426_v25, %v5423_v20 }
 0x364   :  { %v5440_v33 = vpack.i.bf16 %v5432_v53, %v5429_v31 }
 0x366   :  { %3446 = vrot.lane.b32.xlu1 %v5440_v33, %s3930_s23 }
 0x369   :  { %v1489_v49 = vpop.f32.mrb[20].mxu1 }
 0x36a   :  { %v1490_v50 = vadd.f32 %v1489_v49, %v5350_v27  ;;  %v1491_v46 = vpop.f32.mrb[21].mxu1  ;;  %3451 = vrot.lane.b32.xlu1 %v5388_v56, %s3934_s8  ;;  %v2030_v49 = vld [vmem:[%s6753_s3 + $0x28] sm:$0xff] }
 0x36b   :  { %v1492_v40 = vadd.f32 %v1491_v46, %v5350_v27  ;;  %v1493_v29 = vpop.f32.mrb[22].mxu1 }
 0x36c   :  { %v1543_v63 = vmax.f32 %v1490_v50, 0.0  ;;  %v1494_v36 = vadd.f32 %v1493_v29, %v5352_v60  ;;  %v1495_v26 = vpop.f32.mrb[23].mxu1 }
 0x36d   :  { %v1544_v61 = vmax.f32 %v1492_v40, 0.0  ;;  %v1496_v39 = vadd.f32 %v1495_v26, %v5352_v60 }
 0x36e   :  { %v1555_v32 = vadd.f32 %v1543_v63, %v189_v9  ;;  %v1549_v5 = vmax.f32 %v1494_v36, 0.0  ;;  %3466 = vrot.lane.b32.xlu1 %v5440_v33, %s3932_s29 }
 0x36f   :  { %v1556_v27 = vadd.f32 %v1544_v61, %v191_v1  ;;  %v1550_v16 = vmax.f32 %v1496_v39, 0.0 }
 0x370   :  { %v1561_v42 = vadd.f32 %v1549_v5, %v193_v58  ;;  %v5465_v41 = vmul.f32 %v1555_v32, %v6923_v44 }
 0x371   :  { %v1562_v37 = vadd.f32 %v1550_v16, %v195_v11  ;;  %v5473_v48 = vmul.f32 %v1556_v27, %v6924_v52 }
 0x372   :  { %v5468_v60 = vmul.f32 %v1561_v42, %v6923_v44  ;;  %3471 = vrot.lane.b32.xlu1 %v5384_v21, %s3934_s8 }
 0x373   :  { %v5476_v15 = vmul.f32 %v1562_v37, %v6924_v52 }
 0x374   :  { %v3455_v0 = vpack.i.bf16 %v5468_v60, %v5465_v41 }
 0x375   :  { %v3530_v7 = vpack.i.bf16 %v5476_v15, %v5473_v48 }
 0x376   :  { %3456 = vrot.lane.b32.xlu0 %v3455_v0, %s3934_s8  ;;  %3481 = vrot.lane.b32.xlu1 %v3455_v0, %s3935_s9 }
 0x37a   :  { %3461 = vrot.lane.b32.xlu0 %v5440_v33, %s3931_s24  ;;  %3496 = vrot.lane.b32.xlu1 %v5388_v56, %s3936_s10 }
 0x37e   :  { %3476 = vrot.lane.b32.xlu0 %v5388_v56, %s3935_s9  ;;  %3506 = vrot.lane.b32.xlu1 %v5384_v21, %s3936_s10 }
 0x382   :  { %3486 = vrot.lane.b32.xlu0 %v5440_v33, %s3933_s0  ;;  %3516 = vrot.lane.b32.xlu1 %v3455_v0, %s3937_s13 }
 0x386   :  { %3491 = vrot.lane.b32.xlu0 %v5384_v21, %s3935_s9  ;;  %3526 = vrot.lane.b32.xlu1 %v5436_v51, %s3930_s23 }
 0x38a   :  { %3501 = vrot.lane.b32.xlu0 %v3455_v0, %s3936_s10  ;;  %3536 = vrot.lane.b32.xlu1 %v5436_v51, %s3931_s24 }
 0x38e   :  { %3511 = vrot.lane.b32.xlu0 %v5388_v56, %s3937_s13  ;;  %3546 = vrot.lane.b32.xlu1 %v5436_v51, %s3932_s29  ;;  %v2029_v56 = vld [vmem:[%s6753_s3 + $0x20] sm:$0xff] }
 0x392   :  { %3521 = vrot.lane.b32.xlu0 %v5384_v21, %s3937_s13  ;;  %3556 = vrot.lane.b32.xlu1 %v5436_v51, %s3933_s0 }
 0x396   :  { %3531 = vrot.lane.b32.xlu0 %v3530_v7, %s3930_s23  ;;  %3566 = vrot.lane.b32.xlu1 %v3455_v0, %s3930_s23 }
 0x39a   :  { %3541 = vrot.lane.b32.xlu0 %v3530_v7, %s3931_s24  ;;  %3571 = vrot.lane.b32.xlu1 %v5436_v51, %s3934_s8 }
 0x39e   :  { %3551 = vrot.lane.b32.xlu0 %v3530_v7, %s3932_s29  ;;  %3591 = vrot.lane.b32.xlu1 %v3455_v0, %s3932_s29 }
 0x3a2   :  { %3561 = vrot.lane.b32.xlu0 %v3530_v7, %s3933_s0  ;;  %3596 = vrot.lane.b32.xlu1 %v5440_v33, %s3935_s9 }
 0x3a6   :  { %3576 = vrot.lane.b32.xlu0 %v3455_v0, %s3931_s24  ;;  %3601 = vrot.lane.b32.xlu1 %v5436_v51, %s3936_s10 }
 0x3aa   :  { %3581 = vrot.lane.b32.xlu0 %v5440_v33, %s3934_s8  ;;  %3616 = vrot.lane.b32.xlu1 %v5440_v33, %s3937_s13 }
 0x3ae   :  { %3586 = vrot.lane.b32.xlu0 %v5436_v51, %s3935_s9  ;;  %3626 = vrot.lane.b32.xlu1 %v3530_v7, %s3934_s8 }
 0x3b2   :  { %3606 = vrot.lane.b32.xlu0 %v5440_v33, %s3936_s10  ;;  %3636 = vrot.lane.b32.xlu1 %v3530_v7, %s3936_s10 }
 0x3b3   :  { %v5546_v21 = vpop.permute.xlu0 %3411  ;;  %v3407_v57 = vpop.permute.xlu1 %3406 }
 0x3b4   :  { %v3409_v10 = vunpack.i.h.bf16 %v3407_v57  ;;  %v3408_v3 = vunpack.i.l.bf16 %v3407_v57  ;;  %v3414_v9 = vunpack.i.h.bf16 %v5546_v21  ;;  %v3413_v63 = vunpack.i.l.bf16 %v5546_v21 }
 0x3b6   :  { %3611 = vrot.lane.b32.xlu0 %v3455_v0, %s3933_s0  ;;  %2033 = vperm.xlu1 %3164, %v2029_v56  }
 0x3b7   :  { %v5552_v2 = vpop.permute.xlu0 %3421  ;;  %v3417_v50 = vpop.permute.xlu1 %3416 }
 0x3b8   :  { %v3418_v21 = vunpack.i.l.bf16 %v3417_v50 }
 0x3ba   :  { %3621 = vrot.lane.b32.xlu0 %v5436_v51, %s3937_s13 }
 0x3bb   :  { %v5556_v4 = vpop.permute.xlu0 %3426  ;;  %v5573_v46 = vpop.permute.xlu1 %3431 }
 0x3bc   :  { %v3429_v17 = vunpack.i.h.bf16 %v5556_v4  ;;  %v3428_v8 = vunpack.i.l.bf16 %v5556_v4  ;;  %v6794_v29 = vunpack.i.h.bf16 %v5573_v46  ;;  %v6798_v6 = vunpack.i.l.bf16 %v5573_v46 }
 0x3be   :  { %3631 = vrot.lane.b32.xlu0 %v3530_v7, %s3935_s9  ;;  %v1609_v45 = vsel %vm329_vm1, %v3408_v3, %v3428_v8  ;;  %v1610_v51 = vsel %vm329_vm1, %v3409_v10, %v3429_v17  ;;  %v1657_v1 = vsel %vm378_vm2, %v3413_v63, %v6798_v6  ;;  %v1658_v61 = vsel %vm378_vm2, %v3414_v9, %v6794_v29 }
 0x3bf   :  { %v1614_v33 = vpack.c.bf16 %v1610_v51, %v1609_v45  ;;  %v5575_v40 = vpop.permute.xlu1 %3441  ;;  %v1662_v5 = vpack.c.bf16 %v1658_v61, %v1657_v1  ;;  %v5605_v18 = vpop.permute.xlu0 %3436  ;;  %v3423_v1 = vunpack.i.l.bf16 %v5552_v2 }
 0x3c0   :  { %v6792_v37 = vunpack.i.h.bf16 %v5605_v18  ;;  %v6791_v0 = vunpack.i.l.bf16 %v5605_v18  ;;  %v6793_v56 = vunpack.i.h.bf16 %v5575_v40  ;;  %v6790_v57 = vunpack.i.l.bf16 %v5575_v40 }
 0x3c1   :  { %2053 = vmatprep.subr.bf16.mxu1 %v1614_v33 }
 0x3c2   :  { %3641 = vrot.lane.b32.xlu0 %v3530_v7, %s3937_s13  ;;  %v3419_v7 = vunpack.i.h.bf16 %v3417_v50  ;;  %v1705_v50 = vsel %vm427_vm3, %v3418_v21, %v6791_v0  ;;  %v1753_v12 = vsel %vm476_vm4, %v3423_v1, %v6790_v57 }
 0x3c4   :  { %v1706_v61 = vsel %vm427_vm3, %v3419_v7, %v6792_v37 }
 0x3c6   :  { %2038 = vperm.xlu0 %3163, %v2030_v49  }
 0x3d8   :  { %v5581_v36 = vpop.permute.xlu1 %3446 }
 0x3d9   :  { %v3449_v26 = vunpack.i.h.bf16 %v5581_v36  ;;  %v3448_v54 = vunpack.i.l.bf16 %v5581_v36 }
 0x3db   :  { %v1611_v39 = vsel %vm329_vm1, %v3448_v54, %v3408_v3  ;;  %v1612_v32 = vsel %vm329_vm1, %v3449_v26, %v3409_v10 }
 0x3dc   :  { %v1613_v34 = vpack.c.bf16 %v1612_v32, %v1611_v39  ;;  %v5601_v58 = vpop.permute.xlu1 %3451  ;;  %v3424_v39 = vunpack.i.h.bf16 %v5552_v2 }
 0x3de   :  { %2054 = vmatpush1.bf16.msra.mxu1 %v1613_v34 }
 0x3df   :  { %2055 = vmatprep.subr.bf16.mxu1 %v1662_v5 }
 0x3e0   :  { %v5603_v27 = vpop.permute.xlu1 %3466 }
 0x3e1   :  { %v3469_v45 = vunpack.i.h.bf16 %v5603_v27  ;;  %v3468_v51 = vunpack.i.l.bf16 %v5603_v27 }
 0x3e3   :  { %v1707_v2 = vsel %vm427_vm3, %v3468_v51, %v3418_v21 }
 0x3e4   :  { %v5607_v11 = vpop.permute.xlu1 %3471 }
 0x3e8   :  { %v5609_v16 = vpop.permute.xlu0 %3456  ;;  %v5611_v42 = vpop.permute.xlu1 %3481 }
 0x3e9   :  { %v6796_v21 = vunpack.i.h.bf16 %v5609_v16  ;;  %v6795_v37 = vunpack.i.l.bf16 %v5609_v16 }
 0x3ec   :  { %v5617_v10 = vpop.permute.xlu0 %3461  ;;  %v5619_v3 = vpop.permute.xlu1 %3496 }
 0x3ed   :  { %v3464_v33 = vunpack.i.h.bf16 %v5617_v10  ;;  %v3463_v49 = vunpack.i.l.bf16 %v5617_v10 }
 0x3ef   :  { %v1659_v32 = vsel %vm378_vm2, %v3463_v49, %v3413_v63  ;;  %v1660_v34 = vsel %vm378_vm2, %v3464_v33, %v3414_v9  ;;  %v1708_v63 = vsel %vm427_vm3, %v3469_v45, %v3419_v7  ;;  %v1710_v9 = vpack.c.bf16 %v1706_v61, %v1705_v50 }
 0x3f0   :  { %v1661_v5 = vpack.c.bf16 %v1660_v34, %v1659_v32  ;;  %v3477_v35 = vpop.permute.xlu0 %3476  ;;  %v5643_v28 = vpop.permute.xlu1 %3506  ;;  %v1754_v32 = vsel %vm476_vm4, %v3424_v39, %v6793_v56  ;;  %v1709_v34 = vpack.c.bf16 %v1708_v63, %v1707_v2  ;;  %v3454_v61 = vunpack.i.h.bf16 %v5601_v58 }
 0x3f1   :  { %v1758_v0 = vpack.c.bf16 %v1754_v32, %v1753_v12  ;;  %v6797_v2 = vunpack.i.l.bf16 %v5607_v11  ;;  %v3478_v29 = vunpack.i.l.bf16 %v3477_v35 }
 0x3f2   :  { %2056 = vmatpush1.bf16.msra.mxu1 %v1661_v5  ;;  %v3453_v5 = vunpack.i.l.bf16 %v5601_v58  ;;  %v3479_v58 = vunpack.i.h.bf16 %v3477_v35  ;;  %v6801_v35 = vunpack.i.l.bf16 %v5611_v42 }
 0x3f3   :  { %2057 = vmatprep.subr.bf16.mxu1 %v1710_v9  ;;  %v6800_v9 = vunpack.i.h.bf16 %v5607_v11 }
 0x3f4   :  { %v5661_v57 = vpop.permute.xlu0 %3486  ;;  %v5663_v30 = vpop.permute.xlu1 %3516  ;;  %v1859_v14 = vsel %vm580_vm6, %v3478_v29, %v6801_v35 }
 0x3f5   :  { %v6799_v7 = vunpack.i.h.bf16 %v5661_v57  ;;  %v6807_v50 = vunpack.i.l.bf16 %v5661_v57 }
 0x3f6   :  { %2058 = vmatpush1.bf16.msra.mxu1 %v1709_v34 }
 0x3f7   :  { %v1755_v12 = vsel %vm476_vm4, %v6807_v50, %v3423_v1  ;;  %v1756_v63 = vsel %vm476_vm4, %v6799_v7, %v3424_v39  ;;  %2059 = vmatprep.subr.bf16.mxu1 %v1758_v0  ;;  %v1811_v1 = vsel %vm531_vm5, %v3453_v5, %v6795_v37  ;;  %v1812_v39 = vsel %vm531_vm5, %v3454_v61, %v6796_v21 }
 0x3f8   :  { %v1757_v32 = vpack.c.bf16 %v1756_v63, %v1755_v12  ;;  %v5681_v56 = vpop.permute.xlu0 %3491  ;;  %v5683_v34 = vpop.permute.xlu1 %3526  ;;  %v1813_v0 = vsel %vm531_vm5, %v6797_v2, %v3453_v5  ;;  %v6802_v12 = vunpack.i.h.bf16 %v5611_v42  ;;  %v1814_v63 = vsel %vm531_vm5, %v6800_v9, %v3454_v61 }
 0x3f9   :  { %v6806_v37 = vunpack.i.l.bf16 %v5681_v56  ;;  %v1818_v2 = vpack.c.bf16 %v1812_v39, %v1811_v1  ;;  %v3499_v61 = vunpack.i.h.bf16 %v5619_v3  ;;  %v3498_v1 = vunpack.i.l.bf16 %v5619_v3 }
 0x3fa   :  { %2060 = vmatpush1.bf16.msra.mxu1 %v1757_v32  ;;  %v6803_v32 = vunpack.i.h.bf16 %v5681_v56  ;;  %v1860_v43 = vsel %vm580_vm6, %v3479_v58, %v6802_v12  ;;  %v6810_v39 = vunpack.i.h.bf16 %v5643_v28  ;;  %v6811_v9 = vunpack.i.l.bf16 %v5643_v28 }
 0x3fb   :  { %2061 = vmatprep.subr.bf16.mxu1 %v1770_v19  ;;  %v1817_v19 = vpack.c.bf16 %v1814_v63, %v1813_v0  ;;  %v1861_v35 = vsel %vm580_vm6, %v6806_v37, %v3478_v29  ;;  %v1866_v0 = vpack.c.bf16 %v1860_v43, %v1859_v14  ;;  %v6808_v12 = vunpack.i.h.bf16 %v5663_v30 }
 0x3fc   :  { %v5708_v21 = vpop.permute.xlu0 %3501  ;;  %v5710_v5 = vpop.permute.xlu1 %3536  ;;  %v1862_v62 = vsel %vm580_vm6, %v6803_v32, %v3479_v58  ;;  %v6809_v58 = vunpack.i.l.bf16 %v5663_v30  ;;  %v3529_v32 = vunpack.i.h.bf16 %v5683_v34  ;;  %v3528_v14 = vunpack.i.l.bf16 %v5683_v34 }
 0x3fd   :  { %v6805_v6 = vunpack.i.h.bf16 %v5708_v21  ;;  %v6804_v7 = vunpack.i.l.bf16 %v5708_v21  ;;  %v1909_v43 = vsel %vm629_vm7, %v6811_v9, %v3498_v1 }
 0x3fe   :  { %2062 = vmatpush1.bf16.msra.mxu1 %v1769_v59 }
 0x3ff   :  { %2063 = vmatprep.subr.bf16.mxu1 %v1818_v2  ;;  %v1907_v2 = vsel %vm629_vm7, %v3498_v1, %v6804_v7  ;;  %v1908_v29 = vsel %vm629_vm7, %v3499_v61, %v6805_v6 }
 0x400   :  { %v3512_v55 = vpop.permute.xlu0 %3511  ;;  %v5737_v59 = vpop.permute.xlu1 %3546  ;;  %v1914_v37 = vpack.c.bf16 %v1908_v29, %v1907_v2  ;;  %v1602_v2 = vsel %vm329_vm1, %v3529_v32, %v3449_v26 }
 0x401   :  { %v3514_v3 = vunpack.i.h.bf16 %v3512_v55  ;;  %v3513_v63 = vunpack.i.l.bf16 %v3512_v55  ;;  %v1910_v55 = vsel %vm629_vm7, %v6810_v39, %v3499_v61 }
 0x402   :  { %2064 = vmatpush1.bf16.msra.mxu1 %v1817_v19  ;;  %v1865_v19 = vpack.c.bf16 %v1862_v62, %v1861_v35  ;;  %v3539_v35 = vunpack.i.h.bf16 %v5710_v5  ;;  %v3538_v62 = vunpack.i.l.bf16 %v5710_v5  ;;  %v1913_v29 = vpack.c.bf16 %v1910_v55, %v1909_v43 }
 0x403   :  { %2065 = vmatprep.subr.bf16.mxu1 %v1866_v0  ;;  %v1955_v1 = vsel %vm678_vm8, %v3513_v63, %v6809_v58  ;;  %v1956_v61 = vsel %vm678_vm8, %v3514_v3, %v6808_v12  ;;  %v1601_v0 = vsel %vm329_vm1, %v3528_v14, %v3448_v54  ;;  %v3548_v55 = vunpack.i.l.bf16 %v5737_v59 }
 0x404   :  { %v5759_v7 = vpop.permute.xlu0 %3521  ;;  %v5761_v6 = vpop.permute.xlu1 %3556  ;;  %v1962_v58 = vpack.c.bf16 %v1956_v61, %v1955_v1  ;;  %v1618_v26 = vpack.c.bf16 %v1602_v2, %v1601_v0  ;;  %v1649_v43 = vsel %vm378_vm2, %v3538_v62, %v3463_v49 }
 0x405   :  { %v3524_v50 = vunpack.i.h.bf16 %v5759_v7  ;;  %v3523_v34 = vunpack.i.l.bf16 %v5759_v7 }
 0x406   :  { %2066 = vmatpush1.bf16.msra.mxu1 %v1865_v19 }
 0x407   :  { %2067 = vmatprep.subr.bf16.mxu1 %v1914_v37  ;;  %v1957_v12 = vsel %vm678_vm8, %v3523_v34, %v3513_v63  ;;  %v1958_v37 = vsel %vm678_vm8, %v3524_v50, %v3514_v3  ;;  %v1650_v63 = vsel %vm378_vm2, %v3539_v35, %v3464_v33  ;;  %v3549_v3 = vunpack.i.h.bf16 %v5737_v59 }
 0x408   :  { %v3532_v5 = vpop.permute.xlu0 %3531  ;;  %v3567_v19 = vpop.permute.xlu1 %3566  ;;  %v1961_v49 = vpack.c.bf16 %v1958_v37, %v1957_v12  ;;  %v5822_v12 = vld [vmem:[%s6752_s2 + $0x20] ss:$8 sps:$4 sm:$0xff]  }
 0x409   :  { %v3534_v54 = vunpack.i.h.bf16 %v3532_v5  ;;  %v3533_v39 = vunpack.i.l.bf16 %v3532_v5  ;;  %v3569_v36 = vunpack.i.h.bf16 %v3567_v19  ;;  %v3568_v9 = vunpack.i.l.bf16 %v3567_v19 }
 0x40a   :  { %2068 = vmatpush1.bf16.msra.mxu1 %v1913_v29 }
 0x40b   :  { %v1608_v1 = vsel %vm329_vm1, %v3429_v17, %v3569_v36  ;;  %v1607_v61 = vsel %vm329_vm1, %v3428_v8, %v3568_v9  ;;  %2069 = vmatprep.subr.bf16.mxu1 %v1962_v58  ;;  %v1603_v10 = vsel %vm329_vm1, %v3533_v39, %v3528_v14  ;;  %v1605_v59 = vsel %vm329_vm1, %v3568_v9, %v3533_v39 }
 0x40c   :  { %v3542_v33 = vpop.permute.xlu0 %3541  ;;  %v5811_v0 = vpop.permute.xlu1 %3571  ;;  %v1606_v2 = vsel %vm329_vm1, %v3569_v36, %v3534_v54  ;;  %v1604_v4 = vsel %vm329_vm1, %v3534_v54, %v3529_v32  ;;  %v1615_v17 = vpack.c.bf16 %v1608_v1, %v1607_v61  ;;  %v1666_v14 = vpack.c.bf16 %v1650_v63, %v1649_v43 }
 0x40d   :  { %v3544_v29 = vunpack.i.h.bf16 %v3542_v33  ;;  %v3543_v8 = vunpack.i.l.bf16 %v3542_v33  ;;  %v1616_v58 = vpack.c.bf16 %v1606_v2, %v1605_v59  ;;  %v1697_v9 = vsel %vm427_vm3, %v3548_v55, %v3468_v51 }
 0x40e   :  { %2070 = vmatpush1.bf16.msra.mxu1 %v1961_v49  ;;  %v3559_v39 = vunpack.i.h.bf16 %v5761_v6  ;;  %v3558_v32 = vunpack.i.l.bf16 %v5761_v6  ;;  %v1617_v37 = vpack.c.bf16 %v1604_v4, %v1603_v10  ;;  %v1698_v54 = vsel %vm427_vm3, %v3549_v3, %v3469_v45 }
 0x40f   :  { %2139 = vmatprep.subr.bf16.mxu1 %v1618_v26  ;;  %2096 = vmatprep.subr.bf16.mxu0 %v1616_v58  ;;  %v1651_v36 = vsel %vm378_vm2, %v3543_v8, %v3538_v62  ;;  %v1652_v26 = vsel %vm378_vm2, %v3544_v29, %v3539_v35  ;;  %v1714_v45 = vpack.c.bf16 %v1698_v54, %v1697_v9  ;;  %v6925_v63 = vunpack.i.l.bf16 %v5661_v57 }
 0x410   :  { %v3552_v5 = vpop.permute.xlu0 %3551  ;;  %v3592_v19 = vpop.permute.xlu1 %3591  ;;  %2097 = vmatpush1.bf16.msra.mxu0 %v1615_v17  ;;  %v1665_v6 = vpack.c.bf16 %v1652_v26, %v1651_v36  ;;  %v6926_v35 = vunpack.i.h.bf16 %v5661_v57  ;;  %v6928_v54 = vunpack.i.h.bf16 %v5573_v46 }
 0x411   :  { %v3554_v51 = vunpack.i.h.bf16 %v3552_v5  ;;  %v3553_v43 = vunpack.i.l.bf16 %v3552_v5  ;;  %2086 = vmatmul.mubr.bf16.vlgmr.msra.gmra.mrb[24].mxu1 %v5822_v12  ;;  %v1745_v62 = vsel %vm476_vm4, %v3558_v32, %v6925_v63  ;;  %v3594_v59 = vunpack.i.h.bf16 %v3592_v19 }
 0x412   :  { %2140 = vmatpush1.bf16.msra.mxu1 %v1617_v37  ;;  %2903 = vmatprep.mubr.msk.bf16.mxu1 %vm94_vm0, %v5513_v23  ;;  %v1746_v1 = vsel %vm476_vm4, %v3559_v39, %v6926_v35  ;;  %v3593_v2 = vunpack.i.l.bf16 %v3592_v19  ;;  %v6927_v19 = vunpack.i.l.bf16 %v5573_v46  ;;  %v6929_v35 = vunpack.i.h.bf16 %v5605_v18 }
 0x413   :  { %2141 = vmatprep.subr.bf16.mxu1 %v1666_v14  ;;  %v1699_v61 = vsel %vm427_vm3, %v3553_v43, %v3548_v55  ;;  %v1700_v23 = vsel %vm427_vm3, %v3554_v51, %v3549_v3  ;;  %v1762_v17 = vpack.c.bf16 %v1746_v1, %v1745_v62  ;;  %v1702_v5 = vsel %vm427_vm3, %v3594_v59, %v3554_v51 }
 0x414   :  { %v5841_v27 = vpop.permute.xlu0 %3561  ;;  %v3597_v33 = vpop.permute.xlu1 %3596  ;;  %v1713_v4 = vpack.c.bf16 %v1700_v23, %v1699_v61  ;;  %v1701_v37 = vsel %vm427_vm3, %v3593_v2, %v3553_v43  ;;  %v1704_v46 = vsel %vm427_vm3, %v6929_v35, %v3594_v59  ;;  %v6930_v1 = vunpack.i.l.bf16 %v5605_v18 }
 0x415   :  { %v3564_v49 = vunpack.i.h.bf16 %v5841_v27  ;;  %v3563_v10 = vunpack.i.l.bf16 %v5841_v27  ;;  %v3599_v9 = vunpack.i.h.bf16 %v3597_v33  ;;  %v6932_v59 = vunpack.i.l.bf16 %v5607_v11 }
 0x416   :  { %2142 = vmatpush1.bf16.msra.mxu1 %v1665_v6  ;;  %v3598_v6 = vunpack.i.l.bf16 %v3597_v33  ;;  %v1703_v61 = vsel %vm427_vm3, %v6930_v1, %v3593_v2  ;;  %v3574_v33 = vunpack.i.h.bf16 %v5811_v0 }
 0x417   :  { %2143 = vmatprep.subr.bf16.mxu1 %v1714_v45  ;;  %v1747_v55 = vsel %vm476_vm4, %v3563_v10, %v3558_v32  ;;  %v1748_v3 = vsel %vm476_vm4, %v3564_v49, %v3559_v39  ;;  %v1711_v2 = vpack.c.bf16 %v1704_v46, %v1703_v61 }
 0x418   :  { %v3577_v57 = vpop.permute.xlu0 %3576  ;;  %v5877_v36 = vpop.permute.xlu1 %3601  ;;  %v1761_v51 = vpack.c.bf16 %v1748_v3, %v1747_v55  ;;  %v6933_v55 = vunpack.i.h.bf16 %v5607_v11 }
 0x419   :  { %v3579_v58 = vunpack.i.h.bf16 %v3577_v57  ;;  %v3578_v14 = vunpack.i.l.bf16 %v3577_v57  ;;  %v6931_v57 = vpack.c.bf16 %v5432_v53, %v5429_v31  ;;  %v6935_v53 = vunpack.i.h.bf16 %v5681_v56 }
 0x41a   :  { %2144 = vmatpush1.bf16.msra.mxu1 %v1713_v4  ;;  %v3573_v4 = vunpack.i.l.bf16 %v5811_v0  ;;  %v3604_v46 = vunpack.i.h.bf16 %v5877_v36 }
 0x41b   :  { %v1655_v32 = vsel %vm378_vm2, %v6927_v19, %v3578_v14  ;;  %v1656_v39 = vsel %vm378_vm2, %v6928_v54, %v3579_v58  ;;  %2145 = vmatprep.subr.bf16.mxu1 %v1762_v17  ;;  %v1653_v26 = vsel %vm378_vm2, %v3578_v14, %v3543_v8  ;;  %v1654_v43 = vsel %vm378_vm2, %v3579_v58, %v3544_v29 }
 0x41c   :  { %v1663_v45 = vpack.c.bf16 %v1656_v39, %v1655_v32  ;;  %v3582_v63 = vpop.permute.xlu0 %3581  ;;  %v1664_v62 = vpack.c.bf16 %v1654_v43, %v1653_v26  ;;  %v1712_v29 = vpack.c.bf16 %v1702_v5, %v1701_v37  ;;  %v6934_v58 = vunpack.i.l.bf16 %v5681_v56  ;;  %v3617_v5 = vpop.permute.xlu1 %3616 }
 0x41d   :  { %v3584_v23 = vunpack.i.h.bf16 %v3582_v63  ;;  %v3583_v8 = vunpack.i.l.bf16 %v3582_v63  ;;  %v1864_v14 = vsel %vm580_vm6, %v3599_v9, %v6935_v53  ;;  %v6936_v54 = vpack.c.bf16 %v5426_v25, %v5423_v20 }
 0x41e   :  { %2098 = vmatprep.subr.bf16.mxu0 %v1664_v62  ;;  %2146 = vmatpush1.bf16.msra.mxu1 %v1761_v51  ;;  %v1863_v31 = vsel %vm580_vm6, %v3598_v6, %v6934_v58  ;;  %v3603_v20 = vunpack.i.l.bf16 %v5877_v36  ;;  %v3619_v25 = vunpack.i.h.bf16 %v3617_v5  ;;  %v3618_v35 = vunpack.i.l.bf16 %v3617_v5 }
 0x41f   :  { %2099 = vmatpush1.bf16.msra.mxu0 %v1663_v45  ;;  %2147 = vmatprep.subr.bf16.mxu1 %v6931_v57  ;;  %v1815_v18 = vsel %vm531_vm5, %v3583_v8, %v6932_v59  ;;  %v1816_v3 = vsel %vm531_vm5, %v3584_v23, %v6933_v55  ;;  %v1805_v37 = vsel %vm531_vm5, %v3573_v4, %v3583_v8  ;;  %v6939_v53 = vunpack.i.l.bf16 %v5575_v40 }
 0x420   :  { %v5900_v17 = vpop.permute.xlu0 %3586  ;;  %2100 = vmatprep.subr.bf16.mxu0 %v1712_v29  ;;  %v1806_v11 = vsel %vm531_vm5, %v3574_v33, %v3584_v23  ;;  %v1822_v56 = vpack.c.bf16 %v1816_v3, %v1815_v18  ;;  %v1870_v43 = vpack.c.bf16 %v1864_v14, %v1863_v31  ;;  %v3627_v1 = vpop.permute.xlu1 %3626  ;;  %v6938_v29 = vunpack.i.h.bf16 %v5643_v28 }
 0x421   :  { %v3589_v19 = vunpack.i.h.bf16 %v5900_v17  ;;  %v3588_v32 = vunpack.i.l.bf16 %v5900_v17  ;;  %v1821_v39 = vpack.c.bf16 %v1806_v11, %v1805_v37  ;;  %v3629_v3 = vunpack.i.h.bf16 %v3627_v1 }
 0x422   :  { %2148 = vmatpush1.bf16.msra.mxu1 %v6936_v54  ;;  %v3628_v58 = vunpack.i.l.bf16 %v3627_v1  ;;  %v1959_v31 = vsel %vm678_vm8, %v3618_v35, %v3523_v34  ;;  %v6940_v37 = vunpack.i.h.bf16 %v5575_v40 }
 0x423   :  { %2101 = vmatpush1.bf16.msra.mxu0 %v1711_v2  ;;  %2149 = vmatprep.subr.bf16.mxu1 %v1822_v56  ;;  %v1853_v51 = vsel %vm580_vm6, %v3588_v32, %v3598_v6  ;;  %v1854_v45 = vsel %vm580_vm6, %v3589_v19, %v3599_v9  ;;  %v6937_v9 = vunpack.i.l.bf16 %v5643_v28  ;;  %v1960_v28 = vsel %vm678_vm8, %v3619_v25, %v3524_v50 }
 0x424   :  { %v3607_v26 = vpop.permute.xlu0 %3606  ;;  %v1869_v61 = vpack.c.bf16 %v1854_v45, %v1853_v51  ;;  %v3637_v51 = vpop.permute.xlu1 %3636 }
 0x425   :  { %v3609_v63 = vunpack.i.h.bf16 %v3607_v26  ;;  %v3608_v62 = vunpack.i.l.bf16 %v3607_v26  ;;  %v1966_v26 = vpack.c.bf16 %v1960_v28, %v1959_v31  ;;  %v6949_v28 = vunpack.i.l.bf16 %v5663_v30 }
 0x426   :  { %2150 = vmatpush1.bf16.msra.mxu1 %v1821_v39 }
 0x427   :  { %2151 = vmatprep.subr.bf16.mxu1 %v1870_v43  ;;  %v1901_v6 = vsel %vm629_vm7, %v3603_v20, %v3608_v62  ;;  %v1911_v8 = vsel %vm629_vm7, %v3608_v62, %v6937_v9  ;;  %v1912_v57 = vsel %vm629_vm7, %v3609_v63, %v6938_v29  ;;  %v1902_v59 = vsel %vm629_vm7, %v3604_v46, %v3609_v63 }
 0x428   :  { %v3612_v23 = vpop.permute.xlu0 %3611  ;;  %v1918_v55 = vpack.c.bf16 %v1912_v57, %v1911_v8  ;;  %v1917_v50 = vpack.c.bf16 %v1902_v59, %v1901_v6  ;;  %v1807_v43 = vsel %vm531_vm5, %v3628_v58, %v3573_v4  ;;  %v6941_v62 = vpack.c.bf16 %v5476_v15, %v5473_v48 }
 0x429   :  { %v3614_v18 = vunpack.i.h.bf16 %v3612_v23  ;;  %v3613_v2 = vunpack.i.l.bf16 %v3612_v23  ;;  %v3639_v6 = vunpack.i.h.bf16 %v3637_v51  ;;  %v3638_v23 = vunpack.i.l.bf16 %v3637_v51 }
 0x42a   :  { %2152 = vmatpush1.bf16.msra.mxu1 %v1869_v61  ;;  %v6943_v61 = vunpack.i.l.bf16 %v5609_v16  ;;  %v6944_v48 = vpack.c.bf16 %v5468_v60, %v5465_v41  ;;  %v6945_v29 = vunpack.i.l.bf16 %v5611_v42  ;;  %v6946_v60 = vunpack.i.h.bf16 %v5611_v42 }
 0x42b   :  { %v1751_v14 = vsel %vm476_vm4, %v6939_v53, %v3613_v2  ;;  %v1752_v11 = vsel %vm476_vm4, %v6940_v37, %v3614_v18  ;;  %2153 = vmatprep.subr.bf16.mxu1 %v1918_v55  ;;  %v1749_v34 = vsel %vm476_vm4, %v3613_v2, %v3563_v10  ;;  %v1750_v7 = vsel %vm476_vm4, %v3614_v18, %v3564_v49 }
 0x42c   :  { %v1759_v5 = vpack.c.bf16 %v1752_v11, %v1751_v14  ;;  %v3622_v54 = vpop.permute.xlu0 %3621  ;;  %v1760_v56 = vpack.c.bf16 %v1750_v7, %v1749_v34  ;;  %v1808_v49 = vsel %vm531_vm5, %v3629_v3, %v3574_v33  ;;  %v1809_v0 = vsel %vm531_vm5, %v6943_v61, %v3628_v58 }
 0x42d   :  { %v3624_v39 = vunpack.i.h.bf16 %v3622_v54  ;;  %v3623_v40 = vunpack.i.l.bf16 %v3622_v54  ;;  %v1820_v33 = vpack.c.bf16 %v1808_v49, %v1807_v43  ;;  %v1904_v18 = vsel %vm629_vm7, %v3639_v6, %v3604_v46 }
 0x42e   :  { %2102 = vmatprep.subr.bf16.mxu0 %v1760_v56  ;;  %2154 = vmatpush1.bf16.msra.mxu1 %v1917_v50  ;;  %v6947_v42 = vunpack.i.h.bf16 %v5708_v21 }
 0x42f   :  { %v1949_v10 = vsel %vm678_vm8, %v3623_v40, %v3618_v35  ;;  %v1950_v27 = vsel %vm678_vm8, %v3624_v39, %v3619_v25  ;;  %2103 = vmatpush1.bf16.msra.mxu0 %v1759_v5  ;;  %2155 = vmatprep.subr.bf16.mxu1 %v1966_v26  ;;  %v6942_v35 = vunpack.i.h.bf16 %v5609_v16 }
 0x430   :  { %v1965_v45 = vpack.c.bf16 %v1950_v27, %v1949_v10  ;;  %v3632_v63 = vpop.permute.xlu0 %3631  ;;  %2104 = vmatprep.subr.bf16.mxu0 %v6941_v62  ;;  %v1906_v55 = vsel %vm629_vm7, %v6947_v42, %v3639_v6 }
 0x431   :  { %v3634_v4 = vunpack.i.h.bf16 %v3632_v63  ;;  %v3633_v1 = vunpack.i.l.bf16 %v3632_v63  ;;  %v1810_v25 = vsel %vm531_vm5, %v6942_v35, %v3629_v3  ;;  %v6948_v3 = vunpack.i.l.bf16 %v5708_v21 }
 0x432   :  { %2156 = vmatpush1.bf16.msra.mxu1 %v1965_v45  ;;  %v1819_v8 = vpack.c.bf16 %v1810_v25, %v1809_v0  ;;  %v6950_v21 = vunpack.i.h.bf16 %v5663_v30 }
 0x433   :  { %2105 = vmatpush1.bf16.msra.mxu0 %v6944_v48  ;;  %v1855_v15 = vsel %vm580_vm6, %v3633_v1, %v3588_v32  ;;  %v1856_v16 = vsel %vm580_vm6, %v3634_v4, %v3589_v19  ;;  %v1857_v41 = vsel %vm580_vm6, %v6945_v29, %v3633_v1  ;;  %v1858_v32 = vsel %vm580_vm6, %v6946_v60, %v3634_v4 }
 0x434   :  { %v3642_v9 = vpop.permute.xlu0 %3641  ;;  %2106 = vmatprep.subr.bf16.mxu0 %v1820_v33  ;;  %v1868_v57 = vpack.c.bf16 %v1856_v16, %v1855_v15  ;;  %v1903_v19 = vsel %vm629_vm7, %v3638_v23, %v3603_v20  ;;  %v1867_v2 = vpack.c.bf16 %v1858_v32, %v1857_v41  ;;  %v1905_v58 = vsel %vm629_vm7, %v6948_v3, %v3638_v23 }
 0x435   :  { %2172 = vmatmul.mubr.bf16.vlgmr.msra.gmra.mrb[28].mxu1 %v5822_v12  ;;  %v3644_v17 = vunpack.i.h.bf16 %v3642_v9  ;;  %v3643_v59 = vunpack.i.l.bf16 %v3642_v9  ;;  %v1916_v31 = vpack.c.bf16 %v1904_v18, %v1903_v19  ;;  %v1915_v46 = vpack.c.bf16 %v1906_v55, %v1905_v58  ;;  %v2034_v34 = vpop.permute.xlu1 %2033 }
 0x437   :  { %2107 = vmatpush1.bf16.msra.mxu0 %v1819_v8  ;;  %v1951_v36 = vsel %vm678_vm8, %v3643_v59, %v3623_v40  ;;  %v1952_v20 = vsel %vm678_vm8, %v3644_v17, %v3624_v39  ;;  %v1953_v53 = vsel %vm678_vm8, %v6949_v28, %v3643_v59  ;;  %v1954_v14 = vsel %vm678_vm8, %v6950_v21, %v3644_v17 }
 0x438   :  { %2108 = vmatprep.subr.bf16.mxu0 %v1868_v57  ;;  %v1964_v37 = vpack.c.bf16 %v1952_v20, %v1951_v36  ;;  %v1963_v11 = vpack.c.bf16 %v1954_v14, %v1953_v53 }
 0x43b   :  { %2109 = vmatpush1.bf16.msra.mxu0 %v1867_v2 }
 0x43c   :  { %2110 = vmatprep.subr.bf16.mxu0 %v1916_v31 }
 0x43f   :  { %2111 = vmatpush1.bf16.msra.mxu0 %v1915_v46 }
 0x440   :  { %2112 = vmatprep.subr.bf16.mxu0 %v1964_v37 }
 0x443   :  { %2113 = vmatpush1.bf16.msra.mxu0 %v1963_v11 }
 0x445   :  { %v2039_v54 = vpop.permute.xlu0 %2038 }
 0x446   :  { %2129 = vmatmul.mubr.bf16.vlgmr.msra.gmra.mrb[24].mxu0 %v5822_v12 }
 0x4e4   :  { %v2087_v7 = vpop.f32.mrb[24].mxu1 }
 0x4e5   :  { %v2088_v50 = vadd.f32 %v2087_v7, %v2034_v34  ;;  %v2089_v5 = vpop.f32.mrb[25].mxu1 }
 0x4e6   :  { %v2090_v56 = vadd.f32 %v2089_v5, %v2034_v34  ;;  %v2091_v39 = vpop.f32.mrb[26].mxu1 }
 0x4e7   :  { %v2182_v40 = vmax.f32 %v2088_v50, 0.0  ;;  %v2092_v26 = vadd.f32 %v2091_v39, %v2039_v54  ;;  %v2093_v30 = vpop.f32.mrb[27].mxu1  ;;  %v2658_v39 = vld [vmem:[%s6753_s3 + $0x30] sm:$0xff] }
 0x4e8   :  { %v2183_v43 = vmax.f32 %v2090_v56, 0.0  ;;  %v2094_v10 = vadd.f32 %v2093_v30, %v2039_v54  ;;  %v6172_v56 = vld [vmem:[%s6752_s2 + $0x34] ss:$8 sps:$4 sm:$0xff]  }
 0x4e9   :  { %v2188_v27 = vmax.f32 %v2092_v26, 0.0  ;;  %v6046_v51 = vmul.f32 %v2182_v40, %v4680_v13  ;;  %2906 = vmatprep.mubr.msk.bf16.mxu0 %vm94_vm0, %v6172_v56  ;;  %2907 = vmatprep.mubr.msk.bf16.mxu1 %vm94_vm0, %v6172_v56  ;;  %v32_v40 = vld [vmem:[%s6753_s3 + $0x50] sm:$0xff] }
 0x4ea   :  { %v2189_v49 = vmax.f32 %v2094_v10, 0.0  ;;  %v6052_v12 = vmul.f32 %v2183_v43, %v4683_v47  ;;  %v2659_v10 = vld [vmem:[%s6753_s3 + $0x38] sm:$0xff] }
 0x4eb   :  { %v6049_v45 = vmul.f32 %v2188_v27, %v4680_v13 }
 0x4ec   :  { %v6055_v63 = vmul.f32 %v2189_v49, %v4683_v47  ;;  %v33_v49 = vld [vmem:[%s6753_s3 + $0x58] sm:$0xff] }
 0x4ed   :  { %v6059_v62 = vpack.i.bf16 %v6049_v45, %v6046_v51  ;;  %v2398_v35 = vpack.c.bf16 %v6049_v45, %v6046_v51 }
 0x4ee   :  { %v6063_v4 = vpack.i.bf16 %v6055_v63, %v6052_v12  ;;  %v2399_v1 = vpack.c.bf16 %v6055_v63, %v6052_v12 }
 0x4ef   :  { %3651 = vrot.lane.b32.xlu1 %v6059_v62, %s3930_s23 }
 0x4f3   :  { %3661 = vrot.lane.b32.xlu1 %v6059_v62, %s3932_s29 }
 0x4f7   :  { %3671 = vrot.lane.b32.xlu1 %v6059_v62, %s3934_s8 }
 0x4fb   :  { %3681 = vrot.lane.b32.xlu1 %v6063_v4, %s3931_s24 }
 0x4ff   :  { %3691 = vrot.lane.b32.xlu1 %v6063_v4, %s3933_s0 }
 0x503   :  { %3696 = vrot.lane.b32.xlu1 %v6063_v4, %s3934_s8 }
 0x508   :  { %v2173_v25 = vpop.f32.mrb[28].mxu1 }
 0x509   :  { %v2174_v61 = vadd.f32 %v2173_v25, %v2034_v34  ;;  %v2175_v0 = vpop.f32.mrb[29].mxu1 }
 0x50a   :  { %v2176_v33 = vadd.f32 %v2175_v0, %v2034_v34  ;;  %v2177_v6 = vpop.f32.mrb[30].mxu1 }
 0x50b   :  { %v2186_v23 = vmax.f32 %v2174_v61, 0.0  ;;  %v2178_v48 = vadd.f32 %v2177_v6, %v2039_v54  ;;  %v2179_v15 = vpop.f32.mrb[31].mxu1 }
 0x50c   :  { %v2187_v16 = vmax.f32 %v2176_v33, 0.0  ;;  %v2180_v9 = vadd.f32 %v2179_v15, %v2039_v54 }
 0x50d   :  { %v2192_v8 = vmax.f32 %v2178_v48, 0.0  ;;  %v6082_v41 = vmul.f32 %v2186_v23, %v4661_v24 }
 0x50e   :  { %v2193_v29 = vmax.f32 %v2180_v9, 0.0  ;;  %v6088_v32 = vmul.f32 %v2187_v16, %v6918_v22 }
 0x50f   :  { %v6085_v60 = vmul.f32 %v2192_v8, %v4661_v24 }
 0x510   :  { %v6091_v57 = vmul.f32 %v2193_v29, %v6918_v22 }
 0x511   :  { %v6095_v17 = vpack.i.bf16 %v6085_v60, %v6082_v41 }
 0x512   :  { %v6099_v59 = vpack.i.bf16 %v6091_v57, %v6088_v32 }
 0x514   :  { %3706 = vrot.lane.b32.xlu1 %v6099_v59, %s3930_s23 }
 0x519   :  { %v2130_v2 = vpop.f32.mrb[24].mxu0 }
 0x51a   :  { %v2131_v42 = vadd.f32 %v2130_v2, %v2034_v34  ;;  %v2132_v55 = vpop.f32.mrb[25].mxu0 }
 0x51b   :  { %v2133_v3 = vadd.f32 %v2132_v55, %v2034_v34  ;;  %v2134_v58 = vpop.f32.mrb[26].mxu0 }
 0x51c   :  { %v2184_v31 = vmax.f32 %v2131_v42, 0.0  ;;  %v2135_v36 = vadd.f32 %v2134_v58, %v2039_v54  ;;  %v2136_v20 = vpop.f32.mrb[27].mxu0 }
 0x51d   :  { %v2185_v46 = vmax.f32 %v2133_v3, 0.0  ;;  %v2137_v28 = vadd.f32 %v2136_v20, %v2039_v54 }
 0x51e   :  { %v2190_v53 = vmax.f32 %v2135_v36, 0.0  ;;  %v6108_v14 = vmul.f32 %v2184_v31, %v6923_v44 }
 0x51f   :  { %v2191_v21 = vmax.f32 %v2137_v28, 0.0  ;;  %v6114_v11 = vmul.f32 %v2185_v46, %v6924_v52 }
 0x520   :  { %v6111_v37 = vmul.f32 %v2190_v53, %v6923_v44 }
 0x521   :  { %v6117_v7 = vmul.f32 %v2191_v21, %v6924_v52 }
 0x522   :  { %v3645_v34 = vpack.i.bf16 %v6111_v37, %v6108_v14 }
 0x523   :  { %v3785_v50 = vpack.i.bf16 %v6117_v7, %v6114_v11 }
 0x524   :  { %3646 = vrot.lane.b32.xlu0 %v3645_v34, %s3934_s8  ;;  %3711 = vrot.lane.b32.xlu1 %v3645_v34, %s3935_s9 }
 0x528   :  { %3656 = vrot.lane.b32.xlu0 %v6059_v62, %s3931_s24  ;;  %3726 = vrot.lane.b32.xlu1 %v6099_v59, %s3932_s29 }
 0x52c   :  { %3666 = vrot.lane.b32.xlu0 %v6059_v62, %s3933_s0  ;;  %3731 = vrot.lane.b32.xlu1 %v6063_v4, %s3936_s10 }
 0x530   :  { %3676 = vrot.lane.b32.xlu0 %v6063_v4, %s3930_s23  ;;  %3741 = vrot.lane.b32.xlu1 %v6059_v62, %s3936_s10 }
 0x534   :  { %3686 = vrot.lane.b32.xlu0 %v6063_v4, %s3932_s29  ;;  %3756 = vrot.lane.b32.xlu1 %v3645_v34, %s3937_s13 }
 0x538   :  { %3701 = vrot.lane.b32.xlu0 %v6063_v4, %s3935_s9  ;;  %3766 = vrot.lane.b32.xlu1 %v3645_v34, %s3930_s23 }
 0x53c   :  { %3716 = vrot.lane.b32.xlu0 %v6059_v62, %s3935_s9  ;;  %3776 = vrot.lane.b32.xlu1 %v6095_v17, %s3930_s23 }
 0x540   :  { %3721 = vrot.lane.b32.xlu0 %v6099_v59, %s3931_s24  ;;  %3786 = vrot.lane.b32.xlu1 %v3785_v50, %s3931_s24 }
 0x544   :  { %3736 = vrot.lane.b32.xlu0 %v3645_v34, %s3936_s10  ;;  %3796 = vrot.lane.b32.xlu1 %v3645_v34, %s3932_s29 }
 0x548   :  { %3746 = vrot.lane.b32.xlu0 %v6099_v59, %s3933_s0  ;;  %3806 = vrot.lane.b32.xlu1 %v6095_v17, %s3932_s29 }
 0x54c   :  { %3751 = vrot.lane.b32.xlu0 %v6063_v4, %s3937_s13  ;;  %3816 = vrot.lane.b32.xlu1 %v3785_v50, %s3933_s0 }
 0x550   :  { %3761 = vrot.lane.b32.xlu0 %v6059_v62, %s3937_s13  ;;  %3826 = vrot.lane.b32.xlu1 %v3785_v50, %s3934_s8 }
 0x554   :  { %3771 = vrot.lane.b32.xlu0 %v3785_v50, %s3930_s23  ;;  %3841 = vrot.lane.b32.xlu1 %v6095_v17, %s3935_s9 }
 0x558   :  { %3781 = vrot.lane.b32.xlu0 %v3645_v34, %s3931_s24  ;;  %3846 = vrot.lane.b32.xlu1 %v6099_v59, %s3934_s8 }
 0x55c   :  { %3791 = vrot.lane.b32.xlu0 %v6095_v17, %s3931_s24  ;;  %3851 = vrot.lane.b32.xlu1 %v3785_v50, %s3936_s10 }
 0x560   :  { %3801 = vrot.lane.b32.xlu0 %v3785_v50, %s3932_s29  ;;  %3871 = vrot.lane.b32.xlu1 %v6099_v59, %s3936_s10 }
 0x561   :  { %v3652_v26 = vpop.permute.xlu1 %3651 }
 0x562   :  { %v3654_v29 = vunpack.i.h.bf16 %v3652_v26 }
 0x564   :  { %3811 = vrot.lane.b32.xlu0 %v3645_v34, %s3933_s0  ;;  %3876 = vrot.lane.b32.xlu1 %v6095_v17, %s3937_s13 }
 0x565   :  { %v6203_v30 = vpop.permute.xlu1 %3661 }
 0x566   :  { %v3664_v18 = vunpack.i.h.bf16 %v6203_v30 }
 0x568   :  { %3821 = vrot.lane.b32.xlu0 %v6095_v17, %s3933_s0  ;;  %2662 = vperm.xlu1 %3164, %v2658_v39  }
 0x569   :  { %v6207_v43 = vpop.permute.xlu1 %3671 }
 0x56c   :  { %3831 = vrot.lane.b32.xlu0 %v6095_v17, %s3934_s8  ;;  %46 = vperm.xlu1 %3164, %v32_v40  }
 0x56d   :  { %v6215_v27 = vpop.permute.xlu1 %3681 }
 0x56e   :  { %v6828_v42 = vunpack.i.h.bf16 %v6215_v27  ;;  %v6837_v55 = vunpack.i.l.bf16 %v6215_v27 }
 0x570   :  { %3836 = vrot.lane.b32.xlu0 %v3785_v50, %s3935_s9 }
 0x571   :  { %v6220_v62 = vpop.permute.xlu1 %3691 }
 0x572   :  { %v6821_v5 = vunpack.i.h.bf16 %v6220_v62 }
 0x574   :  { %3856 = vrot.lane.b32.xlu0 %v6095_v17, %s3936_s10  ;;  %v3653_v17 = vunpack.i.l.bf16 %v3652_v26 }
 0x575   :  { %v6222_v4 = vpop.permute.xlu1 %3696 }
 0x578   :  { %3861 = vrot.lane.b32.xlu0 %v6099_v59, %s3935_s9 }
 0x57c   :  { %3866 = vrot.lane.b32.xlu0 %v3785_v50, %s3937_s13 }
 0x580   :  { %3881 = vrot.lane.b32.xlu0 %v6099_v59, %s3937_s13 }
 0x584   :  { %2667 = vperm.xlu0 %3163, %v2659_v10  }
 0x586   :  { %v6224_v25 = vpop.permute.xlu1 %3706 }
 0x587   :  { %v6813_v15 = vunpack.i.h.bf16 %v6224_v25  ;;  %v6814_v16 = vunpack.i.l.bf16 %v6224_v25 }
 0x588   :  { %51 = vperm.xlu0 %3163, %v33_v49  }
 0x589   :  { %v2240_v31 = vsel %vm329_vm1, %v6814_v16, %v3653_v17  ;;  %v2241_v36 = vsel %vm329_vm1, %v6813_v15, %v3654_v29 }
 0x58a   :  { %v2242_v39 = vpack.c.bf16 %v2241_v36, %v2240_v31  ;;  %v3663_v31 = vunpack.i.l.bf16 %v6203_v30 }
 0x596   :  { %v6226_v61 = vpop.permute.xlu0 %3646  ;;  %v6228_v0 = vpop.permute.xlu1 %3711 }
 0x59a   :  { %v3657_v33 = vpop.permute.xlu0 %3656  ;;  %v6230_v6 = vpop.permute.xlu1 %3726 }
 0x59b   :  { %v3659_v9 = vunpack.i.h.bf16 %v3657_v33  ;;  %v3658_v8 = vunpack.i.l.bf16 %v3657_v33 }
 0x59d   :  { %v2286_v28 = vsel %vm378_vm2, %v3658_v8, %v6837_v55  ;;  %v2287_v53 = vsel %vm378_vm2, %v3659_v9, %v6828_v42 }
 0x59e   :  { %v6232_v23 = vpop.permute.xlu0 %3666  ;;  %v6234_v48 = vpop.permute.xlu1 %3731  ;;  %v2291_v40 = vpack.c.bf16 %v2287_v53, %v2286_v28 }
 0x5a2   :  { %v6238_v59 = vpop.permute.xlu0 %3676  ;;  %v6240_v2 = vpop.permute.xlu1 %3741 }
 0x5a3   :  { %v3679_v3 = vunpack.i.h.bf16 %v6238_v59  ;;  %v3678_v58 = vunpack.i.l.bf16 %v6238_v59 }
 0x5a5   :  { %v2238_v20 = vsel %vm329_vm1, %v3653_v17, %v3678_v58  ;;  %v2239_v46 = vsel %vm329_vm1, %v3654_v29, %v3679_v3 }
 0x5a6   :  { %v6270_v21 = vpop.permute.xlu0 %3686  ;;  %v6272_v34 = vpop.permute.xlu1 %3756  ;;  %v2243_v50 = vpack.c.bf16 %v2239_v46, %v2238_v20  ;;  %v6819_v20 = vunpack.i.h.bf16 %v6230_v6  ;;  %v6817_v46 = vunpack.i.l.bf16 %v6230_v6 }
 0x5a7   :  { %v6815_v29 = vunpack.i.h.bf16 %v6270_v21  ;;  %v6812_v17 = vunpack.i.l.bf16 %v6270_v21 }
 0x5a8   :  { %2682 = vmatprep.subr.bf16.mxu0 %v2243_v50  ;;  %v3669_v50 = vunpack.i.h.bf16 %v6232_v23 }
 0x5a9   :  { %2683 = vmatpush1.bf16.msra.mxu0 %v2242_v39  ;;  %v3668_v39 = vunpack.i.l.bf16 %v6232_v23  ;;  %v2335_v30 = vsel %vm427_vm3, %v3664_v18, %v6815_v29  ;;  %v2336_v29 = vsel %vm427_vm3, %v6817_v46, %v3663_v31  ;;  %v3699_v46 = vunpack.i.h.bf16 %v6222_v4 }
 0x5aa   :  { %v6274_v26 = vpop.permute.xlu0 %3701  ;;  %v6276_v10 = vpop.permute.xlu1 %3766  ;;  %2684 = vmatprep.subr.bf16.mxu0 %v2291_v40  ;;  %v2334_v40 = vsel %vm427_vm3, %v3663_v31, %v6812_v17  ;;  %v6818_v17 = vunpack.i.l.bf16 %v6220_v62  ;;  %v6822_v31 = vunpack.i.l.bf16 %v6226_v61 }
 0x5ae   :  { %v6278_v49 = vpop.permute.xlu0 %3716  ;;  %v6280_v33 = vpop.permute.xlu1 %3776 }
 0x5b2   :  { %v6286_v36 = vpop.permute.xlu0 %3721  ;;  %v6310_v54 = vpop.permute.xlu1 %3786 }
 0x5b3   :  { %v6816_v28 = vunpack.i.h.bf16 %v6286_v36  ;;  %v6820_v53 = vunpack.i.l.bf16 %v6286_v36 }
 0x5b5   :  { %v2288_v19 = vsel %vm378_vm2, %v6820_v53, %v3658_v8  ;;  %v2289_v23 = vsel %vm378_vm2, %v6816_v28, %v3659_v9  ;;  %v2337_v8 = vsel %vm427_vm3, %v6819_v20, %v3664_v18  ;;  %v2339_v9 = vpack.c.bf16 %v2335_v30, %v2334_v40 }
 0x5b6   :  { %v2290_v15 = vpack.c.bf16 %v2289_v23, %v2288_v19  ;;  %v6314_v16 = vpop.permute.xlu0 %3736  ;;  %v2382_v28 = vsel %vm476_vm4, %v3668_v39, %v6818_v17  ;;  %v2383_v19 = vsel %vm476_vm4, %v3669_v50, %v6821_v5  ;;  %v6823_v23 = vunpack.i.h.bf16 %v6226_v61  ;;  %v6338_v30 = vpop.permute.xlu1 %3796 }
 0x5b7   :  { %v2338_v18 = vpack.c.bf16 %v2337_v8, %v2336_v29  ;;  %v2387_v53 = vpack.c.bf16 %v2383_v19, %v2382_v28  ;;  %v6826_v5 = vunpack.i.l.bf16 %v6207_v43  ;;  %v6827_v8 = vunpack.i.h.bf16 %v6207_v43 }
 0x5b8   :  { %2685 = vmatpush1.bf16.msra.mxu0 %v2290_v15  ;;  %v3698_v15 = vunpack.i.l.bf16 %v6222_v4  ;;  %v2441_v28 = vsel %vm531_vm5, %v3699_v46, %v6823_v23  ;;  %v6830_v23 = vunpack.i.h.bf16 %v6228_v0  ;;  %v6836_v42 = vunpack.i.h.bf16 %v6314_v16 }
 0x5b9   :  { %2686 = vmatprep.subr.bf16.mxu0 %v2339_v9 }
 0x5ba   :  { %v6335_v40 = vpop.permute.xlu0 %3746  ;;  %v2440_v29 = vsel %vm531_vm5, %v3698_v15, %v6822_v31  ;;  %v2443_v31 = vsel %vm531_vm5, %v6827_v8, %v3699_v46  ;;  %v3734_v46 = vunpack.i.h.bf16 %v6234_v48  ;;  %v3733_v8 = vunpack.i.l.bf16 %v6234_v48 }
 0x5bb   :  { %v6824_v17 = vunpack.i.h.bf16 %v6335_v40  ;;  %v6825_v20 = vunpack.i.l.bf16 %v6335_v40 }
 0x5bc   :  { %2687 = vmatpush1.bf16.msra.mxu0 %v2338_v18  ;;  %v3703_v18 = vunpack.i.l.bf16 %v6274_v26 }
 0x5bd   :  { %v2384_v9 = vsel %vm476_vm4, %v6825_v20, %v3668_v39  ;;  %v2385_v4 = vsel %vm476_vm4, %v6824_v17, %v3669_v50  ;;  %2688 = vmatprep.subr.bf16.mxu0 %v2387_v53  ;;  %v2442_v53 = vsel %vm531_vm5, %v6826_v5, %v3698_v15  ;;  %v3704_v50 = vunpack.i.h.bf16 %v6274_v26  ;;  %v6378_v26 = vpop.permute.xlu1 %3806 }
 0x5be   :  { %v2386_v19 = vpack.c.bf16 %v2385_v4, %v2384_v9  ;;  %v6360_v39 = vpop.permute.xlu0 %3751  ;;  %v6829_v9 = vunpack.i.l.bf16 %v6228_v0  ;;  %v2447_v4 = vpack.c.bf16 %v2441_v28, %v2440_v29  ;;  %v6831_v17 = vunpack.i.h.bf16 %v6240_v2 }
 0x5bf   :  { %v6834_v20 = vunpack.i.l.bf16 %v6240_v2  ;;  %v3769_v15 = vunpack.i.h.bf16 %v6276_v10  ;;  %v3768_v5 = vunpack.i.l.bf16 %v6276_v10  ;;  %v6832_v29 = vunpack.i.h.bf16 %v6278_v49 }
 0x5c0   :  { %2689 = vmatpush1.bf16.msra.mxu0 %v2386_v19  ;;  %v6833_v28 = vunpack.i.l.bf16 %v6278_v49  ;;  %v6835_v10 = vunpack.i.l.bf16 %v6314_v16  ;;  %v2488_v12 = vsel %vm580_vm6, %v3703_v18, %v6829_v9  ;;  %v2489_v63 = vsel %vm580_vm6, %v3704_v50, %v6830_v23 }
 0x5c1   :  { %2690 = vmatprep.subr.bf16.mxu0 %v2399_v1  ;;  %v2446_v1 = vpack.c.bf16 %v2443_v31, %v2442_v53  ;;  %v2538_v48 = vsel %vm629_vm7, %v6834_v20, %v3733_v8  ;;  %v2539_v9 = vsel %vm629_vm7, %v6831_v17, %v3734_v46  ;;  %v2237_v23 = vsel %vm329_vm1, %v3679_v3, %v3769_v15  ;;  %v6429_v59 = vpop.permute.xlu1 %3816 }
 0x5c2   :  { %v6387_v19 = vpop.permute.xlu0 %3761  ;;  %v2236_v51 = vsel %vm329_vm1, %v3678_v58, %v3768_v5  ;;  %v2491_v31 = vsel %vm580_vm6, %v6832_v29, %v3704_v50  ;;  %v2495_v3 = vpack.c.bf16 %v2489_v63, %v2488_v12  ;;  %v2536_v17 = vsel %vm629_vm7, %v3733_v8, %v6835_v10 }
 0x5c3   :  { %v6838_v50 = vunpack.i.l.bf16 %v6272_v34  ;;  %v2244_v29 = vpack.c.bf16 %v2237_v23, %v2236_v51  ;;  %v3754_v12 = vunpack.i.h.bf16 %v6360_v39  ;;  %v3753_v63 = vunpack.i.l.bf16 %v6360_v39 }
 0x5c4   :  { %2691 = vmatpush1.bf16.msra.mxu0 %v2398_v35  ;;  %v2490_v35 = vsel %vm580_vm6, %v6833_v28, %v3703_v18  ;;  %v2537_v18 = vsel %vm629_vm7, %v3734_v46, %v6836_v42  ;;  %v3778_v28 = vunpack.i.l.bf16 %v6280_v33  ;;  %v3788_v10 = vunpack.i.l.bf16 %v6310_v54 }
 0x5c5   :  { %2692 = vmatprep.subr.bf16.mxu0 %v2447_v4  ;;  %v2494_v46 = vpack.c.bf16 %v2491_v31, %v2490_v35  ;;  %v2543_v42 = vpack.c.bf16 %v2537_v18, %v2536_v17  ;;  %v3764_v39 = vunpack.i.h.bf16 %v6387_v19  ;;  %v6464_v35 = vpop.permute.xlu1 %3826  ;;  %v6953_v18 = vunpack.i.h.bf16 %v6215_v27 }
 0x5c6   :  { %v6427_v53 = vpop.permute.xlu0 %3771 }
 0x5c7   :  { %v3774_v58 = vunpack.i.h.bf16 %v6427_v53  ;;  %v3773_v4 = vunpack.i.l.bf16 %v6427_v53  ;;  %v3779_v53 = vunpack.i.h.bf16 %v6280_v33  ;;  %v3789_v33 = vunpack.i.h.bf16 %v6310_v54 }
 0x5c8   :  { %2693 = vmatpush1.bf16.msra.mxu0 %v2446_v1  ;;  %v6839_v1 = vunpack.i.l.bf16 %v6387_v19  ;;  %v6952_v54 = vunpack.i.l.bf16 %v6215_v27  ;;  %v6955_v27 = vunpack.i.h.bf16 %v6224_v25 }
 0x5c9   :  { %2694 = vmatprep.subr.bf16.mxu0 %v2495_v3  ;;  %v2234_v8 = vsel %vm329_vm1, %v3768_v5, %v3773_v4  ;;  %v2235_v20 = vsel %vm329_vm1, %v3769_v15, %v3774_v58  ;;  %v3799_v3 = vunpack.i.h.bf16 %v6338_v30  ;;  %v2584_v5 = vsel %vm678_vm8, %v3753_v63, %v6838_v50 }
 0x5ca   :  { %v3782_v23 = vpop.permute.xlu0 %3781  ;;  %v2245_v51 = vpack.c.bf16 %v2235_v20, %v2234_v8  ;;  %v6951_v20 = vunpack.i.h.bf16 %v6272_v34  ;;  %v3798_v15 = vunpack.i.l.bf16 %v6338_v30  ;;  %v6957_v50 = vunpack.i.l.bf16 %v6270_v21 }
 0x5cb   :  { %v3784_v55 = vunpack.i.h.bf16 %v3782_v23  ;;  %v3783_v45 = vunpack.i.l.bf16 %v3782_v23  ;;  %v2542_v23 = vpack.c.bf16 %v2539_v9, %v2538_v48 }
 0x5cc   :  { %2695 = vmatpush1.bf16.msra.mxu0 %v2494_v46  ;;  %2725 = vmatprep.subr.bf16.mxu1 %v2245_v51  ;;  %v2585_v17 = vsel %vm678_vm8, %v3754_v12, %v6951_v20  ;;  %v6954_v20 = vunpack.i.l.bf16 %v6224_v25  ;;  %v6956_v25 = vunpack.i.h.bf16 %v6270_v21 }
 0x5cd   :  { %v2284_v31 = vsel %vm378_vm2, %v6952_v54, %v3783_v45  ;;  %v2285_v8 = vsel %vm378_vm2, %v6953_v18, %v3784_v55  ;;  %2696 = vmatprep.subr.bf16.mxu0 %v2543_v42  ;;  %2726 = vmatpush1.bf16.msra.mxu1 %v2244_v29  ;;  %v2282_v46 = vsel %vm378_vm2, %v3783_v45, %v3788_v10 }
 0x5ce   :  { %v3792_v51 = vpop.permute.xlu0 %3791  ;;  %v2283_v30 = vsel %vm378_vm2, %v3784_v55, %v3789_v33  ;;  %v2230_v54 = vsel %vm329_vm1, %v3778_v28, %v6954_v20  ;;  %v2231_v18 = vsel %vm329_vm1, %v3779_v53, %v6955_v27  ;;  %v2586_v42 = vsel %vm678_vm8, %v6839_v1, %v3753_v63 }
 0x5cf   :  { %v2587_v55 = vsel %vm678_vm8, %v3764_v39, %v3754_v12  ;;  %v2292_v9 = vpack.c.bf16 %v2285_v8, %v2284_v31  ;;  %v2591_v29 = vpack.c.bf16 %v2585_v17, %v2584_v5  ;;  %v3794_v48 = vunpack.i.h.bf16 %v3792_v51 }
 0x5d0   :  { %v3793_v45 = vunpack.i.l.bf16 %v3792_v51  ;;  %2697 = vmatpush1.bf16.msra.mxu0 %v2542_v23  ;;  %v2293_v20 = vpack.c.bf16 %v2283_v30, %v2282_v46  ;;  %v2333_v27 = vsel %vm427_vm3, %v6956_v25, %v3799_v3  ;;  %v2332_v63 = vsel %vm427_vm3, %v6957_v50, %v3798_v15  ;;  %v6508_v23 = vpop.permute.xlu1 %3841 }
 0x5d1   :  { %v3809_v1 = vunpack.i.h.bf16 %v6378_v26  ;;  %v3808_v12 = vunpack.i.l.bf16 %v6378_v26  ;;  %2698 = vmatprep.subr.bf16.mxu0 %v2591_v29  ;;  %v2590_v5 = vpack.c.bf16 %v2587_v55, %v2586_v42  ;;  %v2247_v31 = vpack.c.bf16 %v2231_v18, %v2230_v54  ;;  %v6513_v26 = vld [vmem:[%s6752_s2 + $0x30] ss:$8 sps:$4 sm:$0xff]   ;;  %s3938_s2 = smov [#allocation3]  }
 0x5d2   :  { %2727 = vmatprep.subr.bf16.mxu1 %v2293_v20  ;;  %v3802_v17 = vpop.permute.xlu0 %3801  ;;  %v2232_v8 = vsel %vm329_vm1, %v3773_v4, %v3778_v28  ;;  %v2233_v46 = vsel %vm329_vm1, %v3774_v58, %v3779_v53  ;;  %v2340_v51 = vpack.c.bf16 %v2333_v27, %v2332_v63  ;;  %v6958_v30 = vunpack.i.l.bf16 %v6286_v36  ;;  %s2864_s13 = sshll.u32 %s3938_s2, 4  ;;  %s2865_s13 = int_to_ptr.vmem [resolvable:$true] %s2864_s13 }
 0x5d3   :  { %2728 = vmatpush1.bf16.msra.mxu1 %v2292_v9  ;;  %v3804_v21 = vunpack.i.h.bf16 %v3802_v17  ;;  %v3803_v50 = vunpack.i.l.bf16 %v3802_v17  ;;  %v6959_v4 = vunpack.i.h.bf16 %v6286_v36  ;;  %v6960_v18 = vunpack.i.l.bf16 %v6230_v6  ;;  %s3905_s27 = scalar_lea.vmem %s2865_s13, 1536  ;;  %p3910_p1 = scmp.lt.s32.totalorder %s2865_s13, %s2865_s13 }
 0x5d4   :  { %2699 = vmatpush1.bf16.msra.mxu0 %v2590_v5  ;;  %v2278_v28 = vsel %vm378_vm2, %v3793_v45, %v6958_v30  ;;  %v6961_v55 = vunpack.i.h.bf16 %v6230_v6  ;;  %v3818_v9 = vunpack.i.l.bf16 %v6429_v59  ;;  %v2246_v29 = vpack.c.bf16 %v2233_v46, %v2232_v8  ;;  %p3906_p0 = scmp.ne.s32.totalorder %s2865_s13, %s3905_s27  ;;  %p3911_p2 = scmp.lt.s32.totalorder %s3905_s27, %s3905_s27 }
 0x5d5   :  { %v2279_v58 = vsel %vm378_vm2, %v3794_v48, %v6959_v4  ;;  %2768 = vmatprep.subr.bf16.mxu0 %v2247_v31  ;;  %v2330_v53 = vsel %vm427_vm3, %v3798_v15, %v3803_v50  ;;  %v2331_v54 = vsel %vm427_vm3, %v3799_v3, %v3804_v21  ;;  %v2326_v42 = vsel %vm427_vm3, %v3808_v12, %v6960_v18  ;;  %v6542_v31 = vpop.permute.xlu1 %3846 }
 0x5d6   :  { %v2327_v36 = vsel %vm427_vm3, %v3809_v1, %v6961_v55  ;;  %v2280_v20 = vsel %vm378_vm2, %v3788_v10, %v3793_v45  ;;  %v3812_v15 = vpop.permute.xlu0 %3811  ;;  %v2341_v25 = vpack.c.bf16 %v2331_v54, %v2330_v53  ;;  %v2281_v3 = vsel %vm378_vm2, %v3789_v33, %v3794_v48  ;;  %p3912_p3 = por %p3911_p2, %p3910_p1 }
 0x5d7   :  { %v3814_v27 = vunpack.i.h.bf16 %v3812_v15  ;;  %v3813_v63 = vunpack.i.l.bf16 %v3812_v15  ;;  %2715 = vmatmul.mubr.bf16.vlgmr.msra.gmra.mrb[28].mxu0 %v6513_v26  ;;  %v2295_v5 = vpack.c.bf16 %v2279_v58, %v2278_v28  ;;  %v3819_v6 = vunpack.i.h.bf16 %v6429_v59 }
 0x5d8   :  { %2729 = vmatprep.subr.bf16.mxu1 %v2341_v25  ;;  %2769 = vmatpush1.bf16.msra.mxu0 %v2246_v29  ;;  %v2343_v17 = vpack.c.bf16 %v2327_v36, %v2326_v42  ;;  %v6962_v8 = vunpack.i.l.bf16 %v6220_v62  ;;  %v6963_v45 = vunpack.i.h.bf16 %v6220_v62  ;;  %v2294_v48 = vpack.c.bf16 %v2281_v3, %v2280_v20  ;;  %p3913_p4 = pnand %p3912_p3, %p3906_p0 }
 0x5d9   :  { %2730 = vmatpush1.bf16.msra.mxu1 %v2340_v51  ;;  %2770 = vmatprep.subr.bf16.mxu0 %v2295_v5  ;;  %v2378_v59 = vsel %vm476_vm4, %v3813_v63, %v3818_v9  ;;  %v2328_v46 = vsel %vm427_vm3, %v3803_v50, %v3808_v12  ;;  %v2379_v4 = vsel %vm476_vm4, %v3814_v27, %v3819_v6  ;;  %v3829_v54 = vunpack.i.h.bf16 %v6464_v35  ;;  %v3852_v29 = vpop.permute.xlu1 %3851 }
 0x5da   :  { %v2380_v10 = vsel %vm476_vm4, %v6962_v8, %v3813_v63  ;;  %v2381_v33 = vsel %vm476_vm4, %v6963_v45, %v3814_v27  ;;  %v3822_v28 = vpop.permute.xlu0 %3821  ;;  %2908 = vmatprep.mubr.msk.bf16.mxu0 %vm94_vm0, %v6172_v56  ;;  %v2329_v62 = vsel %vm427_vm3, %v3804_v21, %v3809_v1  ;;  %v2389_v53 = vpack.c.bf16 %v2379_v4, %v2378_v59 }
 0x5db   :  { %v2388_v30 = vpack.c.bf16 %v2381_v33, %v2380_v10  ;;  %v3824_v51 = vunpack.i.h.bf16 %v3822_v28  ;;  %v3823_v58 = vunpack.i.l.bf16 %v3822_v28  ;;  %v3828_v18 = vunpack.i.l.bf16 %v6464_v35 }
 0x5dc   :  { %2771 = vmatpush1.bf16.msra.mxu0 %v2294_v48  ;;  %v3849_v12 = vunpack.i.h.bf16 %v6542_v31  ;;  %2731 = vmatprep.subr.bf16.mxu1 %v2389_v53  ;;  %v6964_v50 = vunpack.i.l.bf16 %v6335_v40  ;;  %v3848_v42 = vunpack.i.l.bf16 %v6542_v31  ;;  %v2342_v1 = vpack.c.bf16 %v2329_v62, %v2328_v46 }
 0x5dd   :  { %2772 = vmatprep.subr.bf16.mxu0 %v2343_v17  ;;  %v2376_v21 = vsel %vm476_vm4, %v3818_v9, %v3823_v58  ;;  %2732 = vmatpush1.bf16.msra.mxu1 %v2388_v30  ;;  %v6965_v36 = vunpack.i.h.bf16 %v6335_v40  ;;  %v2377_v20 = vsel %vm476_vm4, %v3819_v6, %v3824_v51  ;;  %v6966_v3 = vpack.c.bf16 %v6117_v7, %v6114_v11 }
 0x5de   :  { %v2374_v56 = vsel %vm476_vm4, %v3823_v58, %v6964_v50  ;;  %v3832_v55 = vpop.permute.xlu0 %3831  ;;  %v6967_v9 = vunpack.i.h.bf16 %v6226_v61  ;;  %v6968_v63 = vunpack.i.l.bf16 %v6226_v61  ;;  %v3844_v7 = vunpack.i.h.bf16 %v6508_v23 }
 0x5df   :  { %v2375_v35 = vsel %vm476_vm4, %v3824_v51, %v6965_v36  ;;  %v3834_v15 = vunpack.i.h.bf16 %v3832_v55  ;;  %v3833_v25 = vunpack.i.l.bf16 %v3832_v55  ;;  %2733 = vmatprep.subr.bf16.mxu1 %v6966_v3  ;;  %v3843_v17 = vunpack.i.l.bf16 %v6508_v23 }
 0x5e0   :  { %v2391_v27 = vpack.c.bf16 %v2375_v35, %v2374_v56  ;;  %2773 = vmatpush1.bf16.msra.mxu0 %v2342_v1  ;;  %v2439_v40 = vsel %vm531_vm5, %v6967_v9, %v3829_v54  ;;  %v2438_v5 = vsel %vm531_vm5, %v6968_v63, %v3828_v18  ;;  %v2390_v31 = vpack.c.bf16 %v2377_v20, %v2376_v21 }
 0x5e1   :  { %v2436_v6 = vsel %vm531_vm5, %v3828_v18, %v3833_v25  ;;  %v2437_v11 = vsel %vm531_vm5, %v3829_v54, %v3834_v15  ;;  %v6969_v8 = vpack.c.bf16 %v6111_v37, %v6108_v14  ;;  %v6970_v59 = vunpack.i.l.bf16 %v6207_v43  ;;  %v3872_v14 = vpop.permute.xlu1 %3871 }
 0x5e2   :  { %2774 = vmatprep.subr.bf16.mxu0 %v2391_v27  ;;  %v3837_v61 = vpop.permute.xlu0 %3836  ;;  %v2449_v10 = vpack.c.bf16 %v2437_v11, %v2436_v6  ;;  %v6971_v46 = vunpack.i.h.bf16 %v6207_v43  ;;  %v2448_v23 = vpack.c.bf16 %v2439_v40, %v2438_v5  ;;  %v3854_v28 = vunpack.i.h.bf16 %v3852_v29 }
 0x5e3   :  { %2734 = vmatpush1.bf16.msra.mxu1 %v6969_v8  ;;  %v3839_v45 = vunpack.i.h.bf16 %v3837_v61  ;;  %v3838_v33 = vunpack.i.l.bf16 %v3837_v61  ;;  %v2444_v48 = vsel %vm531_vm5, %v3848_v42, %v6970_v59  ;;  %v3853_v4 = vunpack.i.l.bf16 %v3852_v29 }
 0x5e4   :  { %v2445_v30 = vsel %vm531_vm5, %v3849_v12, %v6971_v46  ;;  %2735 = vmatprep.subr.bf16.mxu1 %v2449_v10  ;;  %2775 = vmatpush1.bf16.msra.mxu0 %v2390_v31  ;;  %v6972_v37 = vunpack.i.l.bf16 %v6228_v0  ;;  %v6973_v51 = vunpack.i.h.bf16 %v6228_v0  ;;  %v6974_v43 = vpack.c.bf16 %v6091_v57, %v6088_v32 }
 0x5e5   :  { %v2484_v53 = vsel %vm580_vm6, %v3838_v33, %v3843_v17  ;;  %v2485_v54 = vsel %vm580_vm6, %v3839_v45, %v3844_v7  ;;  %v2451_v1 = vpack.c.bf16 %v2445_v30, %v2444_v48  ;;  %v2434_v0 = vsel %vm531_vm5, %v3833_v25, %v3848_v42  ;;  %v3877_v63 = vpop.permute.xlu1 %3876 }
 0x5e6   :  { %v2486_v62 = vsel %vm580_vm6, %v6972_v37, %v3838_v33  ;;  %v2487_v58 = vsel %vm580_vm6, %v6973_v51, %v3839_v45  ;;  %2776 = vmatprep.subr.bf16.mxu0 %v6974_v43  ;;  %v3857_v50 = vpop.permute.xlu0 %3856  ;;  %v2497_v56 = vpack.c.bf16 %v2485_v54, %v2484_v53  ;;  %v2435_v21 = vsel %vm531_vm5, %v3834_v15, %v3849_v12 }
 0x5e7   :  { %v2496_v18 = vpack.c.bf16 %v2487_v58, %v2486_v62  ;;  %2736 = vmatpush1.bf16.msra.mxu1 %v2448_v23  ;;  %v3859_v55 = vunpack.i.h.bf16 %v3857_v50  ;;  %v3858_v32 = vunpack.i.l.bf16 %v3857_v50  ;;  %v3874_v57 = vunpack.i.h.bf16 %v3872_v14 }
 0x5e8   :  { %v3873_v36 = vunpack.i.l.bf16 %v3872_v14  ;;  %2737 = vmatprep.subr.bf16.mxu1 %v2497_v56  ;;  %v6975_v35 = vpack.c.bf16 %v6085_v60, %v6082_v41  ;;  %v6976_v29 = vunpack.i.h.bf16 %v6314_v16  ;;  %v6977_v3 = vunpack.i.l.bf16 %v6314_v16 }
 0x5e9   :  { %v2532_v12 = vsel %vm629_vm7, %v3853_v4, %v3858_v32  ;;  %v2533_v15 = vsel %vm629_vm7, %v3854_v28, %v3859_v55  ;;  %v2450_v25 = vpack.c.bf16 %v2435_v21, %v2434_v0  ;;  %v6978_v16 = vunpack.i.l.bf16 %v6240_v2 }
 0x5ea   :  { %2777 = vmatpush1.bf16.msra.mxu0 %v6975_v35  ;;  %v2535_v20 = vsel %vm629_vm7, %v6976_v29, %v3854_v28  ;;  %v2534_v42 = vsel %vm629_vm7, %v6977_v3, %v3853_v4  ;;  %v3862_v41 = vpop.permute.xlu0 %3861  ;;  %v2545_v60 = vpack.c.bf16 %v2533_v15, %v2532_v12  ;;  %v6979_v6 = vunpack.i.h.bf16 %v6240_v2 }
 0x5eb   :  { %2778 = vmatprep.subr.bf16.mxu0 %v2451_v1  ;;  %2738 = vmatpush1.bf16.msra.mxu1 %v2496_v18  ;;  %v3864_v27 = vunpack.i.h.bf16 %v3862_v41  ;;  %v3863_v9 = vunpack.i.l.bf16 %v3862_v41  ;;  %v2544_v40 = vpack.c.bf16 %v2535_v20, %v2534_v42  ;;  %v2540_v5 = vsel %vm629_vm7, %v3873_v36, %v6978_v16  ;;  %v6987_v16 = vld [vmem:[#allocation8_spill] sm:$0xff] }
 0x5ec   :  { %2739 = vmatprep.subr.bf16.mxu1 %v2545_v60  ;;  %v2541_v11 = vsel %vm629_vm7, %v3874_v57, %v6979_v6  ;;  %v6980_v61 = vunpack.i.l.bf16 %v6278_v49  ;;  %v6981_v45 = vunpack.i.h.bf16 %v6278_v49  ;;  %v3879_v46 = vunpack.i.h.bf16 %v3877_v63 }
 0x5ed   :  { %v2482_v31 = vsel %vm580_vm6, %v3843_v17, %v3863_v9  ;;  %v2483_v8 = vsel %vm580_vm6, %v3844_v7, %v3864_v27  ;;  %v3878_v30 = vunpack.i.l.bf16 %v3877_v63  ;;  %v2530_v7 = vsel %vm629_vm7, %v3858_v32, %v3873_v36  ;;  %v2663_v36 = vpop.permute.xlu1 %2662 }
 0x5ee   :  { %2779 = vmatpush1.bf16.msra.mxu0 %v2450_v25  ;;  %v2492_v10 = vsel %vm580_vm6, %v3863_v9, %v6980_v61  ;;  %v2493_v33 = vsel %vm580_vm6, %v3864_v27, %v6981_v45  ;;  %v2498_v2 = vpack.c.bf16 %v2483_v8, %v2482_v31  ;;  %v3867_v59 = vpop.permute.xlu0 %3866  ;;  %v2531_v28 = vsel %vm629_vm7, %v3859_v55, %v3874_v57  ;;  %v6988_v31 = vld [vmem:[#allocation9_spill] sm:$0xff] }
 0x5ef   :  { %2740 = vmatpush1.bf16.msra.mxu1 %v2544_v40  ;;  %v2499_v48 = vpack.c.bf16 %v2493_v33, %v2492_v10  ;;  %v3869_v17 = vunpack.i.h.bf16 %v3867_v59  ;;  %v3868_v23 = vunpack.i.l.bf16 %v3867_v59  ;;  %v2547_v4 = vpack.c.bf16 %v2541_v11, %v2540_v5 }
 0x5f0   :  { %v6982_v49 = vunpack.i.l.bf16 %v6272_v34  ;;  %v6983_v37 = vunpack.i.h.bf16 %v6272_v34  ;;  %v2546_v18 = vpack.c.bf16 %v2531_v28, %v2530_v7  ;;  %v6984_v0 = vunpack.i.l.bf16 %v6387_v19  ;;  %v6989_v28 = vld [vmem:[#allocation14_spill] sm:$0xff] }
 0x5f1   :  { %2780 = vmatprep.subr.bf16.mxu0 %v2499_v48  ;;  %v2580_v51 = vsel %vm678_vm8, %v3868_v23, %v3878_v30  ;;  %v2581_v58 = vsel %vm678_vm8, %v3869_v17, %v3879_v46  ;;  %v6692_v29 = vpop.permute.xlu1 %46 }
 0x5f2   :  { %v2582_v14 = vsel %vm678_vm8, %v6982_v49, %v3868_v23  ;;  %v2583_v62 = vsel %vm678_vm8, %v6983_v37, %v3869_v17  ;;  %2781 = vmatpush1.bf16.msra.mxu0 %v2498_v2  ;;  %v3882_v53 = vpop.permute.xlu0 %3881  ;;  %v2593_v54 = vpack.c.bf16 %v2581_v58, %v2580_v51 }
 0x5f3   :  { %v2592_v43 = vpack.c.bf16 %v2583_v62, %v2582_v14  ;;  %2782 = vmatprep.subr.bf16.mxu0 %v2547_v4  ;;  %v3884_v50 = vunpack.i.h.bf16 %v3882_v53  ;;  %v3883_v56 = vunpack.i.l.bf16 %v3882_v53  ;;  %v199_v4 = vadd.f32 %v6989_v28, %v6692_v29  ;;  %v6990_v62 = vld [vmem:[#allocation15_spill] sm:$0xff] }
 0x5f4   :  { %2741 = vmatprep.subr.bf16.mxu1 %v2593_v54 }
 0x5f5   :  { %v2578_v34 = vsel %vm678_vm8, %v3878_v30, %v3883_v56  ;;  %v2579_v1 = vsel %vm678_vm8, %v3879_v46, %v3884_v50  ;;  %2742 = vmatpush1.bf16.msra.mxu1 %v2592_v43  ;;  %v2588_v21 = vsel %vm678_vm8, %v3883_v56, %v6984_v0  ;;  %v2589_v32 = vsel %vm678_vm8, %v3884_v50, %v3764_v39  ;;  %v6985_v39 = vld [vmem:[#allocation6_spill] sm:$0xff]  ;;  %v6991_v43 = vld [vmem:[#allocation16_spill] sm:$0xff]  ;;  %v6992_v56 = vld [vmem:[#allocation17_spill] sm:$0xff] }
 0x5f6   :  { %2783 = vmatpush1.bf16.msra.mxu0 %v2546_v18  ;;  %v2594_v55 = vpack.c.bf16 %v2579_v1, %v2578_v34  ;;  %v2595_v57 = vpack.c.bf16 %v2589_v32, %v2588_v21  ;;  %v146_v15 = vadd.f32 %v6985_v39, %v6692_v29 }
 0x5f8   :  { %2758 = vmatmul.mubr.bf16.vlgmr.msra.gmra.mrb[32].mxu1 %v6513_v26  ;;  %2784 = vmatprep.subr.bf16.mxu0 %v2595_v57  ;;  %v6993_v57 = vld [vmem:[#allocation18_spill] sm:$0xff] }
 0x5fa   :  { %2785 = vmatpush1.bf16.msra.mxu0 %v2594_v55 }
 0x5fd   :  { %2801 = vmatmul.mubr.bf16.vlgmr.msra.gmra.mrb[32].mxu0 %v6513_v26  ;;  %v6986_v26 = vld [vmem:[#allocation7_spill] sm:$0xff] }
 0x5fe   :  { %v148_v27 = vadd.f32 %v6986_v26, %v6692_v29 }
 0x603   :  { %v6690_v35 = vpop.permute.xlu0 %2667 }
 0x607   :  { %v6694_v12 = vpop.permute.xlu0 %51 }
 0x608   :  { %v150_v5 = vadd.f32 %v6987_v16, %v6694_v12  ;;  %v152_v8 = vadd.f32 %v6988_v31, %v6694_v12  ;;  %v203_v53 = vadd.f32 %v6991_v43, %v6694_v12  ;;  %v205_v34 = vadd.f32 %v6992_v56, %v6694_v12 }
 0x6aa   :  { %v2716_v20 = vpop.f32.mrb[28].mxu0 }
 0x6ab   :  { %v2717_v3 = vadd.f32 %v2716_v20, %v2663_v36  ;;  %v2718_v42 = vpop.f32.mrb[29].mxu0  ;;  %v252_v20 = vadd.f32 %v6993_v57, %v6692_v29 }
 0x6ac   :  { %v2719_v19 = vadd.f32 %v2718_v42, %v2663_v36  ;;  %v2720_v38 = vpop.f32.mrb[30].mxu0 }
 0x6ad   :  { %v2811_v25 = vmax.f32 %v2717_v3, 0.0  ;;  %v2721_v41 = vadd.f32 %v2720_v38, %v6690_v35  ;;  %v2722_v60 = vpop.f32.mrb[31].mxu0 }
 0x6ae   :  { %v2812_v9 = vmax.f32 %v2719_v19, 0.0  ;;  %v2723_v40 = vadd.f32 %v2722_v60, %v6690_v35  ;;  %v6994_v60 = vld [vmem:[#allocation19_spill] sm:$0xff] }
 0x6af   :  { %v2823_v63 = vadd.f32 %v2811_v25, %v146_v15  ;;  %v2817_v6 = vmax.f32 %v2721_v41, 0.0  ;;  %v254_v26 = vadd.f32 %v6994_v60, %v6692_v29 }
 0x6b0   :  { %v2824_v11 = vadd.f32 %v2812_v9, %v148_v27  ;;  %v2818_v61 = vmax.f32 %v2723_v40, 0.0 }
 0x6b1   :  { %v2835_v10 = vmul.f32 %v2823_v63, %v4680_v13  ;;  %v2829_v45 = vadd.f32 %v2817_v6, %v150_v5  ;;  %v6995_v63 = vld [vmem:[#allocation20_spill] sm:$0xff] }
 0x6b2   :  { %v2836_v33 = vmul.f32 %v2824_v11, %v4683_v47  ;;  %v2830_v2 = vadd.f32 %v2818_v61, %v152_v8  ;;  %v256_v16 = vadd.f32 %v6995_v63, %v6694_v12  ;;  %v6996_v11 = vld [vmem:[#allocation21_spill] sm:$0xff] }
 0x6b3   :  { %2847 = vst [vmem:[#allocation3] sm:$0xff] %v2835_v10  ;;  %v2841_v59 = vmul.f32 %v2829_v45, %v4680_v13  ;;  %v201_v13 = vadd.f32 %v6990_v62, %v6692_v29  ;;  %v258_v31 = vadd.f32 %v6996_v11, %v6694_v12 }
 0x6b4   :  { %2848 = vst [vmem:[#allocation3 + $0x8] sm:$0xff] %v2836_v33  ;;  %v2842_v48 = vmul.f32 %v2830_v2, %v4683_v47 }
 0x6b5   :  { %2853 = vst [vmem:[#allocation3 + $0x30] sm:$0xff] %v2841_v59 }
 0x6b6   :  { %2854 = vst [vmem:[#allocation3 + $0x38] sm:$0xff] %v2842_v48 }
 0x6cb   :  { %v2759_v46 = vpop.f32.mrb[32].mxu1 }
 0x6cc   :  { %v2760_v30 = vadd.f32 %v2759_v46, %v2663_v36  ;;  %v2761_v17 = vpop.f32.mrb[33].mxu1 }
 0x6cd   :  { %v2762_v23 = vadd.f32 %v2761_v17, %v2663_v36  ;;  %v2763_v7 = vpop.f32.mrb[34].mxu1 }
 0x6ce   :  { %v2813_v49 = vmax.f32 %v2760_v30, 0.0  ;;  %v2764_v14 = vadd.f32 %v2763_v7, %v6690_v35  ;;  %v2765_v37 = vpop.f32.mrb[35].mxu1 }
 0x6cf   :  { %v2814_v51 = vmax.f32 %v2762_v23, 0.0  ;;  %v2766_v47 = vadd.f32 %v2765_v37, %v6690_v35 }
 0x6d0   :  { %v2825_v58 = vadd.f32 %v2813_v49, %v199_v4  ;;  %v2819_v54 = vmax.f32 %v2764_v14, 0.0  ;;  %v2802_v18 = vpop.f32.mrb[32].mxu0 }
 0x6d1   :  { %v2826_v50 = vadd.f32 %v2814_v51, %v201_v13  ;;  %v2820_v1 = vmax.f32 %v2766_v47, 0.0  ;;  %v2803_v0 = vadd.f32 %v2802_v18, %v2663_v36  ;;  %v2804_v21 = vpop.f32.mrb[33].mxu0 }
 0x6d2   :  { %v2837_v55 = vmul.f32 %v2825_v58, %v6923_v44  ;;  %v2831_v32 = vadd.f32 %v2819_v54, %v203_v53  ;;  %v2805_v3 = vadd.f32 %v2804_v21, %v2663_v36  ;;  %v2806_v42 = vpop.f32.mrb[34].mxu0 }
 0x6d3   :  { %v2838_v19 = vmul.f32 %v2826_v50, %v6924_v52  ;;  %v2832_v38 = vadd.f32 %v2820_v1, %v205_v34  ;;  %v2815_v39 = vmax.f32 %v2803_v0, 0.0  ;;  %v2807_v15 = vadd.f32 %v2806_v42, %v6690_v35  ;;  %v2808_v25 = vpop.f32.mrb[35].mxu0 }
 0x6d4   :  { %2849 = vst [vmem:[#allocation3 + $0x10] sm:$0xff] %v2837_v55  ;;  %v2843_v41 = vmul.f32 %v2831_v32, %v6923_v44  ;;  %v2816_v27 = vmax.f32 %v2805_v3, 0.0  ;;  %v2809_v9 = vadd.f32 %v2808_v25, %v6690_v35 }
 0x6d5   :  { %2850 = vst [vmem:[#allocation3 + $0x18] sm:$0xff] %v2838_v19  ;;  %v2844_v36 = vmul.f32 %v2832_v38, %v6924_v52  ;;  %v2827_v40 = vadd.f32 %v2815_v39, %v252_v20  ;;  %v2821_v5 = vmax.f32 %v2807_v15, 0.0 }
 0x6d6   :  { %2855 = vst [vmem:[#allocation3 + $0x40] sm:$0xff] %v2843_v41  ;;  %v2828_v6 = vadd.f32 %v2816_v27, %v254_v26  ;;  %v2822_v44 = vmax.f32 %v2809_v9, 0.0 }
 0x6d7   :  { %2856 = vst [vmem:[#allocation3 + $0x48] sm:$0xff] %v2844_v36  ;;  %v2839_v29 = vmul.f32 %v2827_v40, %v4661_v24  ;;  %v2833_v8 = vadd.f32 %v2821_v5, %v256_v16 }
 0x6d8   :  { %v2840_v35 = vmul.f32 %v2828_v6, %v6918_v22  ;;  %v2834_v52 = vadd.f32 %v2822_v44, %v258_v31 }
 0x6d9   :  { %2851 = vst [vmem:[#allocation3 + $0x20] sm:$0xff] %v2839_v29  ;;  %v2845_v61 = vmul.f32 %v2833_v8, %v4661_v24 }
 0x6da   :  { %2852 = vst [vmem:[#allocation3 + $0x28] sm:$0xff] %v2840_v35  ;;  %v2846_v10 = vmul.f32 %v2834_v52, %v6918_v22 }
 0x6db   :  { %2857 = vst [vmem:[#allocation3 + $0x50] sm:$0xff] %v2845_v61 }
 0x6dc   :  { %2858 = vst [vmem:[#allocation3 + $0x58] sm:$0xff] %v2846_v10 }
 0x6dd   :  { %3916 = shalt.err (!%p3913_p4)
}
 0x6de   :  { %s3917_s5 = scalar_lea.hbm %s6754_s4, 1536 }
 0x6df   :  { %p3918_p5 = scmp.ne.s32.totalorder %s6754_s4, %s3917_s5  ;;  %p3921_p6 = scmp.lt.u32.totalorder %s3917_s5, %s6754_s4 }
 0x6e1   :  { %p3923_p7 = pnand %p3921_p6, %p3918_p5 }
 0x6e3   :  { %3926 = shalt.err (!%p3923_p7)
}
 0x6e4   :  { %s3939_s14 = smov 768   ;;  %s3940_s15 = smov 48  }
 0x6e5   :  { %2870 = dma.vmem_to_hbm [thread:$0]  %s2865_s13, 1536, %s6754_s4, [#allocation4], %s3939_s14, %s3939_s14, %s3940_s15  }
 0x6e6   :  { %3927 = dma.done.wait [#allocation4], 1536  }
 0x6e7   :  { %3928 = vsyncadd [#allocation4], 4294965760 }
 0x6e8   :  { %2874 = vsyncpa [#allocation4], 1 }

</bundles_post_ra>
